<compile_context>
chip_gen: v7x
topology: tpu7x:2x2x1
jax: 0.10.0
libtpu: 0.0.40
codegen_flags: <defaults>
</compile_context>

<pallas_src>
import numpy as np
import jax
import jax.numpy as jnp
from jax.experimental import pallas as pl
from jax.experimental.pallas import tpu as pltpu

# ----------------------------- configuration --------------------------------
ENTITY_EMBED_DIM = 32          # args.entity_embed_dim
HEADS = 2                      # args.head
DEPTH = 2                      # args.depth
FF_MULT = 4                    # UPDeT TransformerBlock ff_hidden_mult
SSL_HIDDEN = 128               # moco projection hidden width

N_AGENTS = 2
N_ENEMIES = 3
N_ALLIES = N_AGENTS - 1
OBS_OWN_DIM = 10               # decomposer.aligned_own_obs_dim
OBS_NF_EN = 6                  # decomposer.aligned_obs_nf_en
OBS_NF_AL = 5                  # decomposer.aligned_obs_nf_al
N_ACTIONS_NO_ATTACK = 6
N_ACTIONS = N_ACTIONS_NO_ATTACK + N_ENEMIES
ID_LENGTH = 4                  # args.id_length

OBS_DIM = OBS_OWN_DIM + N_ENEMIES * OBS_NF_EN + N_ALLIES * OBS_NF_AL
LAST_ACTION_SHAPE = N_ACTIONS
OBS_EN_DIM = OBS_NF_EN + 1                                   # obs_last_action
WRAPPED_OWN_DIM = OBS_OWN_DIM + ID_LENGTH + N_ACTIONS_NO_ATTACK + 1
N_TOKENS = 1 + N_ENEMIES + N_ALLIES
T_PAD = 8                      # tokens padded to a sublane-aligned count
E = ENTITY_EMBED_DIM
HE = HEADS * E

# packed feature slab layout (with per-token-type bias indicator columns)
F_OWN_OFF = 0
F_OWN_BIAS = F_OWN_OFF + WRAPPED_OWN_DIM                     # col 21
F_EN_OFF = F_OWN_BIAS + 1                                    # col 22
F_EN_BIAS = F_EN_OFF + OBS_EN_DIM                            # col 29
F_AL_OFF = F_EN_BIAS + 1                                     # col 30
F_AL_BIAS = F_AL_OFF + OBS_NF_AL                             # col 35
F_TOTAL = F_AL_BIAS + 1                                      # 36

MAX_BATCH_BLOCK = 128          # rows per grid step (amortizes grid overhead)


def _layer_norm(v, gamma, beta, eps=1e-5):
    mu = jnp.mean(v, axis=-1, keepdims=True)
    var = jnp.mean((v - mu) ** 2, axis=-1, keepdims=True)
    return (v - mu) * jax.lax.rsqrt(var + eps) * gamma + beta


def _const_spec(arr):
    """Whole-array block, resident across the whole grid."""
    nd = arr.ndim
    return pl.BlockSpec(arr.shape, lambda b, _nd=nd: (0,) * _nd)


# ------------------------------ fused kernel ---------------------------------
def _disc_fused_kernel(feat_ref,
                       w_embed,
                       tok_w, tok_b,
                       wqkv, wu, bu,
                       n1g, n1b, n2g, n2b,
                       ff_w1, ff_b1, ff_w2, ff_b2,
                       top_w, top_b,
                       head_w1, head_b1, head_w2, head_b2,
                       act_ln_g, act_ln_b,
                       out_ref):
    rows = feat_ref.shape[0]                 # Bblk * T_PAD (static)
    bblk = rows // T_PAD
    scale = 1.0 / (E ** 0.25)

    # ---- entity embedding: single block-diagonal matmul (biases folded via
    #      the indicator columns of the feature slab) ----
    x = jnp.dot(feat_ref[...], w_embed[...],
                preferred_element_type=jnp.float32)                     # [rows, E]

    # ---- transformer token embedding ----
    x = jnp.dot(x, tok_w[...], preferred_element_type=jnp.float32) + tok_b[...]

    # attention key mask: padded tokens must not act as keys
    key_ids = jax.lax.broadcasted_iota(jnp.int32, (1, 1, T_PAD), 2)
    key_mask = jnp.where(key_ids < N_TOKENS, 0.0, -1e9).astype(jnp.float32)

    for l in range(DEPTH):                   # static unroll over depth
        # fused q/k/v projection: [rows, E] x [E, 3*H*E]
        qkv = jnp.dot(x, wqkv[l], preferred_element_type=jnp.float32)   # [rows, 192]
        qkv3 = qkv.reshape(bblk, T_PAD, 3 * HE)

        heads_out = []
        for h in range(HEADS):               # static unroll; tiny per-head attn
            q = qkv3[:, :, h * E:(h + 1) * E] * scale
            k = qkv3[:, :, HE + h * E:HE + (h + 1) * E] * scale
            v = qkv3[:, :, 2 * HE + h * E:2 * HE + (h + 1) * E]
            s = jnp.einsum('bqe,bke->bqk', q, k,
                           preferred_element_type=jnp.float32)          # [b, T, T]
            s = s + key_mask
            s = s - jnp.max(s, axis=-1, keepdims=True)
            p = jnp.exp(s)
            p = p * pl.reciprocal(jnp.sum(p, axis=-1, keepdims=True), approx=True)
            heads_out.append(jnp.einsum('bqk,bke->bqe', p, v,
                                        preferred_element_type=jnp.float32))
        o = jnp.concatenate(heads_out, axis=-1).reshape(rows, HE)       # [rows, H*E]

        # unify (bias applied once across heads, matching nn.Linear unify)
        attended = jnp.dot(o, wu[l], preferred_element_type=jnp.float32) + bu[l]
        x = _layer_norm(attended + x, n1g[l], n1b[l])

        ff = jnp.dot(x, ff_w1[l], preferred_element_type=jnp.float32) + ff_b1[l]
        ff = jnp.maximum(ff, 0.0)
        ff = jnp.dot(ff, ff_w2[l], preferred_element_type=jnp.float32) + ff_b2[l]
        x = _layer_norm(ff + x, n2g[l], n2b[l])

    x = jnp.dot(x, top_w[...], preferred_element_type=jnp.float32) + top_b[...]

    # ---- heads on token 0 only (fused ssl + act projections) ----
    own = x.reshape(bblk, T_PAD, E)[:, 0, :]                            # [Bblk, E]
    h1 = jnp.maximum(
        jnp.dot(own, head_w1[...], preferred_element_type=jnp.float32)
        + head_b1[...], 0.0)                                            # [Bblk, 256]
    y = jnp.dot(h1, head_w2[...], preferred_element_type=jnp.float32) + head_b2[...]
    ssl_out = y[:, :E]                                                  # ssl_proj
    act_out = jnp.tanh(_layer_norm(y[:, E:], act_ln_g[...], act_ln_b[...]))
    out_ref[...] = jnp.concatenate([ssl_out, act_out], axis=-1)         # [Bblk, 2E]


def discriminator_fused_call(feat, fused_weights, b_pad, bblk):
    grid = (b_pad // bblk,)
    return pl.pallas_call(
        _disc_fused_kernel,
        grid=grid,
        in_specs=[pl.BlockSpec((bblk * T_PAD, F_TOTAL), lambda b: (b, 0))]
                 + [_const_spec(w) for w in fused_weights],
        out_specs=pl.BlockSpec((bblk, 2 * E), lambda b: (b, 0)),
        out_shape=jax.ShapeDtypeStruct((b_pad, 2 * E), jnp.float32),
        compiler_params=pltpu.CompilerParams(
            dimension_semantics=("parallel",)),
    )(feat, *fused_weights)


# ------------------------------ parameter handling ---------------------------
def init_params(key):
    keys = iter(jax.random.split(key, 64))

    def lin_w(d_in, d_out):
        return jax.random.uniform(next(keys), (d_in, d_out), jnp.float32,
                                  -1.0, 1.0) / np.sqrt(d_in)

    def lin_b(d_out):
        return jax.random.uniform(next(keys), (1, d_out), jnp.float32,
                                  -1.0, 1.0) * 0.05

    p = {}
    p["w_al"], p["b_al"] = lin_w(OBS_NF_AL, E), lin_b(E)
    p["w_en"], p["b_en"] = lin_w(OBS_EN_DIM, E), lin_b(E)
    p["w_own"], p["b_own"] = lin_w(WRAPPED_OWN_DIM, E), lin_b(E)

    p["tok_w"], p["tok_b"] = lin_w(E, E), lin_b(E)
    p["top_w"], p["top_b"] = lin_w(E, E), lin_b(E)
    p["wq"] = jnp.stack([lin_w(E, HE) for _ in range(DEPTH)])
    p["wk"] = jnp.stack([lin_w(E, HE) for _ in range(DEPTH)])
    p["wv"] = jnp.stack([lin_w(E, HE) for _ in range(DEPTH)])
    p["wu"] = jnp.stack([lin_w(HE, E) for _ in range(DEPTH)])
    p["bu"] = jnp.stack([lin_b(E) for _ in range(DEPTH)])
    p["n1g"] = jnp.ones((DEPTH, 1, E), jnp.float32)
    p["n1b"] = jnp.zeros((DEPTH, 1, E), jnp.float32)
    p["n2g"] = jnp.ones((DEPTH, 1, E), jnp.float32)
    p["n2b"] = jnp.zeros((DEPTH, 1, E), jnp.float32)
    p["ff_w1"] = jnp.stack([lin_w(E, FF_MULT * E) for _ in range(DEPTH)])
    p["ff_b1"] = jnp.stack([lin_b(FF_MULT * E) for _ in range(DEPTH)])
    p["ff_w2"] = jnp.stack([lin_w(FF_MULT * E, E) for _ in range(DEPTH)])
    p["ff_b2"] = jnp.stack([lin_b(E) for _ in range(DEPTH)])

    # moco heads
    p["ssl_w1"], p["ssl_b1"] = lin_w(E, SSL_HIDDEN), lin_b(SSL_HIDDEN)
    p["ssl_w2"], p["ssl_b2"] = lin_w(SSL_HIDDEN, E), lin_b(E)
    p["act_w1"], p["act_b1"] = lin_w(E, SSL_HIDDEN), lin_b(SSL_HIDDEN)
    p["act_w2"], p["act_b2"] = lin_w(SSL_HIDDEN, E), lin_b(E)
    p["act_ln_g"] = jnp.ones((1, E), jnp.float32)
    p["act_ln_b"] = jnp.zeros((1, E), jnp.float32)
    return p


def fuse_params(p):
    """Build the kernel-facing fused weights (cheap, runs inside jit)."""
    f = {}
    # block-diagonal entity embedding with bias rows (hit by indicator cols)
    f["w_embed"] = jnp.concatenate(
        [p["w_own"], p["b_own"], p["w_en"], p["b_en"], p["w_al"], p["b_al"]],
        axis=0)                                                    # [36, E]
    f["tok_w"], f["tok_b"] = p["tok_w"], p["tok_b"]
    f["wqkv"] = jnp.concatenate([p["wq"], p["wk"], p["wv"]], axis=-1)  # [D, E, 3HE]
    f["wu"], f["bu"] = p["wu"], p["bu"]
    f["n1g"], f["n1b"], f["n2g"], f["n2b"] = p["n1g"], p["n1b"], p["n2g"], p["n2b"]
    f["ff_w1"], f["ff_b1"] = p["ff_w1"], p["ff_b1"]
    f["ff_w2"], f["ff_b2"] = p["ff_w2"], p["ff_b2"]
    f["top_w"], f["top_b"] = p["top_w"], p["top_b"]
    # fused ssl/act heads: first layers -> [E, 256]; second -> block-diag [256, 64]
    f["head_w1"] = jnp.concatenate([p["ssl_w1"], p["act_w1"]], axis=-1)
    f["head_b1"] = jnp.concatenate([p["ssl_b1"], p["act_b1"]], axis=-1)
    z = jnp.zeros((SSL_HIDDEN, E), jnp.float32)
    f["head_w2"] = jnp.concatenate(
        [jnp.concatenate([p["ssl_w2"], z], axis=-1),
         jnp.concatenate([z, p["act_w2"]], axis=-1)], axis=0)      # [256, 2E]
    f["head_b2"] = jnp.concatenate([p["ssl_b2"], p["act_b2"]], axis=-1)
    f["act_ln_g"], f["act_ln_b"] = p["act_ln_g"], p["act_ln_b"]
    return f


_WEIGHT_KEYS = ("w_embed", "tok_w", "tok_b", "wqkv", "wu", "bu",
                "n1g", "n1b", "n2g", "n2b",
                "ff_w1", "ff_b1", "ff_w2", "ff_b2",
                "top_w", "top_b",
                "head_w1", "head_b1", "head_w2", "head_b2",
                "act_ln_g", "act_ln_b")


# ------------------------------ forward (glue + kernel) ----------------------
def binary_embed(idx, length):
    return np.array([(idx >> k) & 1 for k in range(length)], dtype=np.float32)


def _build_feature_slab(own_wrapped, enemy_feats, ally_feats):
    """Pack own / enemy / ally features into one contiguous [B*T_PAD, 36] slab
    with per-token-type '1' indicator columns (folds the embed biases)."""
    B = own_wrapped.shape[0]
    one_own = jnp.ones((B, 1), jnp.float32)
    own_row = jnp.concatenate(
        [own_wrapped, one_own,
         jnp.zeros((B, F_TOTAL - F_EN_OFF), jnp.float32)], axis=-1)      # [B, 36]

    one_en = jnp.ones((B, N_ENEMIES, 1), jnp.float32)
    en_rows = jnp.concatenate(
        [jnp.zeros((B, N_ENEMIES, F_EN_OFF), jnp.float32),
         enemy_feats, one_en,
         jnp.zeros((B, N_ENEMIES, F_TOTAL - F_AL_OFF), jnp.float32)], axis=-1)

    one_al = jnp.ones((B, N_ALLIES, 1), jnp.float32)
    al_rows = jnp.concatenate(
        [jnp.zeros((B, N_ALLIES, F_AL_OFF), jnp.float32),
         ally_feats, one_al], axis=-1)

    pad_rows = jnp.zeros((B, T_PAD - N_TOKENS, F_TOTAL), jnp.float32)
    feat = jnp.concatenate([own_row[:, None, :], en_rows, al_rows, pad_rows],
                           axis=1)                                        # [B, 8, 36]
    return feat.reshape(B * T_PAD, F_TOTAL)


def discriminator_forward(params, inputs, hidden_state):
    """Mirrors Discriminator.forward for ssl_type == 'moco'."""
    B = inputs.shape[0]
    bs = B // N_AGENTS

    # --- decomposer glue (plain JAX, like the PyTorch decomposer) ---
    obs = inputs[:, :OBS_DIM]
    last_action = inputs[:, OBS_DIM:OBS_DIM + LAST_ACTION_SHAPE]

    own_obs = obs[:, :OBS_OWN_DIM]
    enemy_feats = obs[:, OBS_OWN_DIM:OBS_OWN_DIM + N_ENEMIES * OBS_NF_EN]
    enemy_feats = enemy_feats.reshape(B, N_ENEMIES, OBS_NF_EN)
    ally_feats = obs[:, OBS_OWN_DIM + N_ENEMIES * OBS_NF_EN:OBS_DIM]
    ally_feats = ally_feats.reshape(B, N_ALLIES, OBS_NF_AL)

    agent_ids = jnp.asarray(
        np.stack([binary_embed(i + 1, ID_LENGTH) for i in range(N_AGENTS)]),
        jnp.float32)
    agent_ids = jnp.tile(agent_ids, (bs, 1))

    no_attack = last_action[:, :N_ACTIONS_NO_ATTACK]
    attack = last_action[:, N_ACTIONS_NO_ATTACK:]
    compact_action_states = jnp.concatenate(
        [no_attack, jnp.sum(attack, axis=-1, keepdims=True)], axis=-1)

    own_wrapped = jnp.concatenate([own_obs, agent_ids, compact_action_states],
                                  axis=-1)                     # [B, WRAPPED_OWN_DIM]
    enemy_feats = jnp.concatenate([enemy_feats, attack[:, :, None]],
                                  axis=-1)                     # [B, N_EN, OBS_EN_DIM]

    feat = _build_feature_slab(own_wrapped, enemy_feats, ally_feats)

    # --- batch blocking / padding ---
    bblk = B if B <= MAX_BATCH_BLOCK else MAX_BATCH_BLOCK
    n_blocks = -(-B // bblk)
    b_pad = n_blocks * bblk
    if b_pad != B:
        feat = jnp.pad(feat, ((0, (b_pad - B) * T_PAD), (0, 0)))

    # --- single fused Pallas kernel ---
    fused = fuse_params(params)
    weights = tuple(fused[k] for k in _WEIGHT_KEYS)
    packed = discriminator_fused_call(feat, weights, b_pad, bblk)   # [b_pad, 2E]

    own_out = packed[:B, :E]            # ssl_proj output
    own_out_h = packed[:B, E:]          # act_proj output (moco)
    return own_out, own_out_h, hidden_state


# ----------------------------------- main ------------------------------------
if __name__ == "__main__":
    key = jax.random.PRNGKey(0)
    pkey, ikey, hkey, akey = jax.random.split(key, 4)

    params = init_params(pkey)

    bs = 2
    B = bs * N_AGENTS
    input_dim = OBS_DIM + LAST_ACTION_SHAPE + N_AGENTS   # obs | last_action | id
    inputs = jax.random.normal(ikey, (B, input_dim), jnp.float32)
    # make the last-action slice a valid one-hot (as the environment would)
    acts = jax.random.randint(akey, (B,), 0, N_ACTIONS)
    one_hot = jax.nn.one_hot(acts, N_ACTIONS, dtype=jnp.float32)
    inputs = inputs.at[:, OBS_DIM:OBS_DIM + LAST_ACTION_SHAPE].set(one_hot)

    hidden_state = jax.random.normal(hkey, (B, ENTITY_EMBED_DIM), jnp.float32)

    fwd = jax.jit(discriminator_forward)
    own_out, own_out_h, h = fwd(params, inputs, hidden_state)
    jax.block_until_ready((own_out, own_out_h, h))

    assert own_out.shape == (B, ENTITY_EMBED_DIM)
    assert own_out_h.shape == (B, ENTITY_EMBED_DIM)
    assert h.shape == hidden_state.shape
    assert bool(jnp.all(jnp.isfinite(own_out))) and bool(jnp.all(jnp.isfinite(own_out_h)))
    print("KERNEL_OK")
</pallas_src>

<mosaic_0001>
module attributes {stable_mosaic.version = 11 : i64} {
  func.func @_disc_fused_kernel(%arg0: i32, %arg1: memref<32x36xf32, #tpu.memory_space<vmem>>, %arg2: memref<36x32xf32, #tpu.memory_space<vmem>>, %arg3: memref<32x32xf32, #tpu.memory_space<vmem>>, %arg4: memref<1x32xf32, #tpu.memory_space<vmem>>, %arg5: memref<2x32x192xf32, #tpu.memory_space<vmem>>, %arg6: memref<2x64x32xf32, #tpu.memory_space<vmem>>, %arg7: memref<2x1x32xf32, #tpu.memory_space<vmem>>, %arg8: memref<2x1x32xf32, #tpu.memory_space<vmem>>, %arg9: memref<2x1x32xf32, #tpu.memory_space<vmem>>, %arg10: memref<2x1x32xf32, #tpu.memory_space<vmem>>, %arg11: memref<2x1x32xf32, #tpu.memory_space<vmem>>, %arg12: memref<2x32x128xf32, #tpu.memory_space<vmem>>, %arg13: memref<2x1x128xf32, #tpu.memory_space<vmem>>, %arg14: memref<2x128x32xf32, #tpu.memory_space<vmem>>, %arg15: memref<2x1x32xf32, #tpu.memory_space<vmem>>, %arg16: memref<32x32xf32, #tpu.memory_space<vmem>>, %arg17: memref<1x32xf32, #tpu.memory_space<vmem>>, %arg18: memref<32x256xf32, #tpu.memory_space<vmem>>, %arg19: memref<1x256xf32, #tpu.memory_space<vmem>>, %arg20: memref<256x64xf32, #tpu.memory_space<vmem>>, %arg21: memref<1x64xf32, #tpu.memory_space<vmem>>, %arg22: memref<1x32xf32, #tpu.memory_space<vmem>>, %arg23: memref<1x32xf32, #tpu.memory_space<vmem>>, %arg24: memref<4x64xf32, #tpu.memory_space<vmem>>) attributes {dimension_semantics = [#tpu.dimension_semantics<parallel>], iteration_bounds = array<i64: 1>, scalar_prefetch = 0 : i64, scratch_operands = 0 : i64, tpu.core_type = #tpu.core_type<tc>, window_params = [{transform_indices = @transform_0, window_bounds = array<i64: 32, 36>}, {pipeline_mode = #tpu.pipeline_mode<synchronous>, transform_indices = @transform_1, window_bounds = array<i64: 36, 32>}, {pipeline_mode = #tpu.pipeline_mode<synchronous>, transform_indices = @transform_2, window_bounds = array<i64: 32, 32>}, {pipeline_mode = #tpu.pipeline_mode<synchronous>, transform_indices = @transform_3, window_bounds = array<i64: 1, 32>}, {pipeline_mode = #tpu.pipeline_mode<synchronous>, transform_indices = @transform_4, window_bounds = array<i64: 2, 32, 192>}, {pipeline_mode = #tpu.pipeline_mode<synchronous>, transform_indices = @transform_5, window_bounds = array<i64: 2, 64, 32>}, {pipeline_mode = #tpu.pipeline_mode<synchronous>, transform_indices = @transform_6, window_bounds = array<i64: 2, 1, 32>}, {pipeline_mode = #tpu.pipeline_mode<synchronous>, transform_indices = @transform_7, window_bounds = array<i64: 2, 1, 32>}, {pipeline_mode = #tpu.pipeline_mode<synchronous>, transform_indices = @transform_8, window_bounds = array<i64: 2, 1, 32>}, {pipeline_mode = #tpu.pipeline_mode<synchronous>, transform_indices = @transform_9, window_bounds = array<i64: 2, 1, 32>}, {pipeline_mode = #tpu.pipeline_mode<synchronous>, transform_indices = @transform_10, window_bounds = array<i64: 2, 1, 32>}, {pipeline_mode = #tpu.pipeline_mode<synchronous>, transform_indices = @transform_11, window_bounds = array<i64: 2, 32, 128>}, {pipeline_mode = #tpu.pipeline_mode<synchronous>, transform_indices = @transform_12, window_bounds = array<i64: 2, 1, 128>}, {pipeline_mode = #tpu.pipeline_mode<synchronous>, transform_indices = @transform_13, window_bounds = array<i64: 2, 128, 32>}, {pipeline_mode = #tpu.pipeline_mode<synchronous>, transform_indices = @transform_14, window_bounds = array<i64: 2, 1, 32>}, {pipeline_mode = #tpu.pipeline_mode<synchronous>, transform_indices = @transform_15, window_bounds = array<i64: 32, 32>}, {pipeline_mode = #tpu.pipeline_mode<synchronous>, transform_indices = @transform_16, window_bounds = array<i64: 1, 32>}, {pipeline_mode = #tpu.pipeline_mode<synchronous>, transform_indices = @transform_17, window_bounds = array<i64: 32, 256>}, {pipeline_mode = #tpu.pipeline_mode<synchronous>, transform_indices = @transform_18, window_bounds = array<i64: 1, 256>}, {pipeline_mode = #tpu.pipeline_mode<synchronous>, transform_indices = @transform_19, window_bounds = array<i64: 256, 64>}, {pipeline_mode = #tpu.pipeline_mode<synchronous>, transform_indices = @transform_20, window_bounds = array<i64: 1, 64>}, {pipeline_mode = #tpu.pipeline_mode<synchronous>, transform_indices = @transform_21, window_bounds = array<i64: 1, 32>}, {pipeline_mode = #tpu.pipeline_mode<synchronous>, transform_indices = @transform_22, window_bounds = array<i64: 1, 32>}, {transform_indices = @transform_23, window_bounds = array<i64: 4, 64>}]} {
    %c0 = arith.constant 0 : index
    %c0_0 = arith.constant 0 : index
    %0 = vector.load %arg1[%c0, %c0_0] : memref<32x36xf32, #tpu.memory_space<vmem>>, vector<32x36xf32>
    %c0_1 = arith.constant 0 : index
    %c0_2 = arith.constant 0 : index
    %1 = vector.load %arg2[%c0_1, %c0_2] : memref<36x32xf32, #tpu.memory_space<vmem>>, vector<36x32xf32>
    %cst = arith.constant dense<0.000000e+00> : vector<32x32xf32>
    %2 = tpu.matmul %0, %1, %cst {dimension_numbers = #tpu.dot_dimension_numbers<[1], [0], [0], [1], [0, 0, 1, 1], [], []>} : vector<32x36xf32>, vector<36x32xf32>, vector<32x32xf32> -> vector<32x32xf32>
    %c0_3 = arith.constant 0 : index
    %c0_4 = arith.constant 0 : index
    %3 = vector.load %arg3[%c0_3, %c0_4] : memref<32x32xf32, #tpu.memory_space<vmem>>, vector<32x32xf32>
    %cst_5 = arith.constant dense<0.000000e+00> : vector<32x32xf32>
    %4 = tpu.matmul %2, %3, %cst_5 {dimension_numbers = #tpu.dot_dimension_numbers<[1], [0], [0], [1], [0, 0, 1, 1], [], []>} : vector<32x32xf32>, vector<32x32xf32>, vector<32x32xf32> -> vector<32x32xf32>
    %c0_6 = arith.constant 0 : index
    %c0_7 = arith.constant 0 : index
    %5 = vector.load %arg4[%c0_6, %c0_7] : memref<1x32xf32, #tpu.memory_space<vmem>>, vector<1x32xf32>
    %6 = vector.broadcast %5 : vector<1x32xf32> to vector<32x32xf32>
    %7 = arith.addf %4, %6 : vector<32x32xf32>
    %8 = tpu.iota {dimensions = array<i32: 2>} : vector<1x1x8xi32>
    %c5_i32 = arith.constant 5 : i32
    %9 = vector.broadcast %c5_i32 : i32 to vector<1x1x8xi32>
    %10 = arith.cmpi slt, %8, %9 : vector<1x1x8xi32>
    %cst_8 = arith.constant 0.000000e+00 : f32
    %cst_9 = arith.constant -1.000000e+09 : f32
    %11 = vector.broadcast %cst_8 : f32 to vector<1x1x8xf32>
    %12 = vector.broadcast %cst_9 : f32 to vector<1x1x8xf32>
    %13 = arith.select %10, %11, %12 : vector<1x1x8xi1>, vector<1x1x8xf32>
    %c0_10 = arith.constant 0 : index
    %c0_11 = arith.constant 0 : index
    %c0_12 = arith.constant 0 : index
    %14 = vector.load %arg5[%c0_10, %c0_11, %c0_12] : memref<2x32x192xf32, #tpu.memory_space<vmem>>, vector<1x32x192xf32>
    %15 = vector.shape_cast %14 : vector<1x32x192xf32> to vector<32x192xf32>
    %cst_13 = arith.constant dense<0.000000e+00> : vector<32x192xf32>
    %16 = tpu.matmul %7, %15, %cst_13 {dimension_numbers = #tpu.dot_dimension_numbers<[1], [0], [0], [1], [0, 0, 1, 1], [], []>} : vector<32x32xf32>, vector<32x192xf32>, vector<32x192xf32> -> vector<32x192xf32>
    %17 = vector.shape_cast %16 : vector<32x192xf32> to vector<4x8x192xf32>
    %18 = vector.extract_strided_slice %17 {offsets = [0, 0, 0], sizes = [4, 8, 32], strides = [1, 1, 1]} : vector<4x8x192xf32> to vector<4x8x32xf32>
    %cst_14 = arith.constant 0.420448214 : f32
    %19 = vector.broadcast %cst_14 : f32 to vector<4x8x32xf32>
    %20 = arith.mulf %18, %19 : vector<4x8x32xf32>
    %21 = vector.extract_strided_slice %17 {offsets = [0, 0, 64], sizes = [4, 8, 32], strides = [1, 1, 1]} : vector<4x8x192xf32> to vector<4x8x32xf32>
    %cst_15 = arith.constant 0.420448214 : f32
    %22 = vector.broadcast %cst_15 : f32 to vector<4x8x32xf32>
    %23 = arith.mulf %21, %22 : vector<4x8x32xf32>
    %24 = vector.extract_strided_slice %17 {offsets = [0, 0, 128], sizes = [4, 8, 32], strides = [1, 1, 1]} : vector<4x8x192xf32> to vector<4x8x32xf32>
    "tpu.trace_start"() <{level = 10 : i32, message = "bqe,bke->bqk"}> : () -> ()
    %cst_16 = arith.constant dense<0.000000e+00> : vector<4x8x8xf32>
    %25 = tpu.matmul %20, %23, %cst_16 {dimension_numbers = #tpu.dot_dimension_numbers<[2], [2], [1], [1], [0, 0, 0, 1, 1, 1], [0], [0]>} : vector<4x8x32xf32>, vector<4x8x32xf32>, vector<4x8x8xf32> -> vector<4x8x8xf32>
    "tpu.trace_stop"() : () -> ()
    %26 = vector.broadcast %13 : vector<1x1x8xf32> to vector<4x8x8xf32>
    %27 = arith.addf %25, %26 : vector<4x8x8xf32>
    %cst_17 = arith.constant dense<0xFF800000> : vector<4x8xf32>
    %28 = vector.multi_reduction <maximumf>, %27, %cst_17 [2] : vector<4x8x8xf32> to vector<4x8xf32>
    %29 = vector.shape_cast %28 : vector<4x8xf32> to vector<4x8x1xf32>
    %30 = vector.broadcast %29 : vector<4x8x1xf32> to vector<4x8x8xf32>
    %31 = arith.subf %27, %30 : vector<4x8x8xf32>
    %32 = math.exp %31 : vector<4x8x8xf32>
    %cst_18 = arith.constant dense<0.000000e+00> : vector<4x8xf32>
    %33 = vector.multi_reduction <add>, %32, %cst_18 [2] : vector<4x8x8xf32> to vector<4x8xf32>
    %34 = vector.shape_cast %33 : vector<4x8xf32> to vector<4x8x1xf32>
    %35 = tpu.reciprocal %34 {approx = true} : vector<4x8x1xf32> -> vector<4x8x1xf32>
    %36 = vector.broadcast %35 : vector<4x8x1xf32> to vector<4x8x8xf32>
    %37 = arith.mulf %32, %36 : vector<4x8x8xf32>
    "tpu.trace_start"() <{level = 10 : i32, message = "bqk,bke->bqe"}> : () -> ()
    %cst_19 = arith.constant dense<0.000000e+00> : vector<4x8x32xf32>
    %38 = tpu.matmul %37, %24, %cst_19 {dimension_numbers = #tpu.dot_dimension_numbers<[2], [1], [1], [2], [0, 0, 0, 1, 1, 2], [0], [0]>} : vector<4x8x8xf32>, vector<4x8x32xf32>, vector<4x8x32xf32> -> vector<4x8x32xf32>
    "tpu.trace_stop"() : () -> ()
    %39 = vector.extract_strided_slice %17 {offsets = [0, 0, 32], sizes = [4, 8, 32], strides = [1, 1, 1]} : vector<4x8x192xf32> to vector<4x8x32xf32>
    %cst_20 = arith.constant 0.420448214 : f32
    %40 = vector.broadcast %cst_20 : f32 to vector<4x8x32xf32>
    %41 = arith.mulf %39, %40 : vector<4x8x32xf32>
    %42 = vector.extract_strided_slice %17 {offsets = [0, 0, 96], sizes = [4, 8, 32], strides = [1, 1, 1]} : vector<4x8x192xf32> to vector<4x8x32xf32>
    %cst_21 = arith.constant 0.420448214 : f32
    %43 = vector.broadcast %cst_21 : f32 to vector<4x8x32xf32>
    %44 = arith.mulf %42, %43 : vector<4x8x32xf32>
    %45 = vector.extract_strided_slice %17 {offsets = [0, 0, 160], sizes = [4, 8, 32], strides = [1, 1, 1]} : vector<4x8x192xf32> to vector<4x8x32xf32>
    "tpu.trace_start"() <{level = 10 : i32, message = "bqe,bke->bqk"}> : () -> ()
    %cst_22 = arith.constant dense<0.000000e+00> : vector<4x8x8xf32>
    %46 = tpu.matmul %41, %44, %cst_22 {dimension_numbers = #tpu.dot_dimension_numbers<[2], [2], [1], [1], [0, 0, 0, 1, 1, 1], [0], [0]>} : vector<4x8x32xf32>, vector<4x8x32xf32>, vector<4x8x8xf32> -> vector<4x8x8xf32>
    "tpu.trace_stop"() : () -> ()
    %47 = vector.broadcast %13 : vector<1x1x8xf32> to vector<4x8x8xf32>
    %48 = arith.addf %46, %47 : vector<4x8x8xf32>
    %cst_23 = arith.constant dense<0xFF800000> : vector<4x8xf32>
    %49 = vector.multi_reduction <maximumf>, %48, %cst_23 [2] : vector<4x8x8xf32> to vector<4x8xf32>
    %50 = vector.shape_cast %49 : vector<4x8xf32> to vector<4x8x1xf32>
    %51 = vector.broadcast %50 : vector<4x8x1xf32> to vector<4x8x8xf32>
    %52 = arith.subf %48, %51 : vector<4x8x8xf32>
    %53 = math.exp %52 : vector<4x8x8xf32>
    %cst_24 = arith.constant dense<0.000000e+00> : vector<4x8xf32>
    %54 = vector.multi_reduction <add>, %53, %cst_24 [2] : vector<4x8x8xf32> to vector<4x8xf32>
    %55 = vector.shape_cast %54 : vector<4x8xf32> to vector<4x8x1xf32>
    %56 = tpu.reciprocal %55 {approx = true} : vector<4x8x1xf32> -> vector<4x8x1xf32>
    %57 = vector.broadcast %56 : vector<4x8x1xf32> to vector<4x8x8xf32>
    %58 = arith.mulf %53, %57 : vector<4x8x8xf32>
    "tpu.trace_start"() <{level = 10 : i32, message = "bqk,bke->bqe"}> : () -> ()
    %cst_25 = arith.constant dense<0.000000e+00> : vector<4x8x32xf32>
    %59 = tpu.matmul %58, %45, %cst_25 {dimension_numbers = #tpu.dot_dimension_numbers<[2], [1], [1], [2], [0, 0, 0, 1, 1, 2], [0], [0]>} : vector<4x8x8xf32>, vector<4x8x32xf32>, vector<4x8x32xf32> -> vector<4x8x32xf32>
    "tpu.trace_stop"() : () -> ()
    %60 = tpu.concatenate %38, %59 in 2 : vector<4x8x32xf32>, vector<4x8x32xf32> -> vector<4x8x64xf32>
    %61 = vector.shape_cast %60 : vector<4x8x64xf32> to vector<32x64xf32>
    %c0_26 = arith.constant 0 : index
    %c0_27 = arith.constant 0 : index
    %c0_28 = arith.constant 0 : index
    %62 = vector.load %arg6[%c0_26, %c0_27, %c0_28] : memref<2x64x32xf32, #tpu.memory_space<vmem>>, vector<1x64x32xf32>
    %63 = vector.shape_cast %62 : vector<1x64x32xf32> to vector<64x32xf32>
    %cst_29 = arith.constant dense<0.000000e+00> : vector<32x32xf32>
    %64 = tpu.matmul %61, %63, %cst_29 {dimension_numbers = #tpu.dot_dimension_numbers<[1], [0], [0], [1], [0, 0, 1, 1], [], []>} : vector<32x64xf32>, vector<64x32xf32>, vector<32x32xf32> -> vector<32x32xf32>
    %c0_30 = arith.constant 0 : index
    %c0_31 = arith.constant 0 : index
    %c0_32 = arith.constant 0 : index
    %65 = vector.load %arg7[%c0_30, %c0_31, %c0_32] : memref<2x1x32xf32, #tpu.memory_space<vmem>>, vector<1x1x32xf32>
    %66 = vector.shape_cast %65 : vector<1x1x32xf32> to vector<1x32xf32>
    %67 = vector.broadcast %66 : vector<1x32xf32> to vector<32x32xf32>
    %68 = arith.addf %64, %67 : vector<32x32xf32>
    %69 = arith.addf %68, %7 : vector<32x32xf32>
    %c0_33 = arith.constant 0 : index
    %c0_34 = arith.constant 0 : index
    %c0_35 = arith.constant 0 : index
    %70 = vector.load %arg8[%c0_33, %c0_34, %c0_35] : memref<2x1x32xf32, #tpu.memory_space<vmem>>, vector<1x1x32xf32>
    %71 = vector.shape_cast %70 : vector<1x1x32xf32> to vector<1x32xf32>
    %c0_36 = arith.constant 0 : index
    %c0_37 = arith.constant 0 : index
    %c0_38 = arith.constant 0 : index
    %72 = vector.load %arg9[%c0_36, %c0_37, %c0_38] : memref<2x1x32xf32, #tpu.memory_space<vmem>>, vector<1x1x32xf32>
    %73 = vector.shape_cast %72 : vector<1x1x32xf32> to vector<1x32xf32>
    %cst_39 = arith.constant dense<0.000000e+00> : vector<32xf32>
    %74 = vector.multi_reduction <add>, %69, %cst_39 [1] : vector<32x32xf32> to vector<32xf32>
    %75 = vector.shape_cast %74 : vector<32xf32> to vector<32x1xf32>
    %cst_40 = arith.constant 3.200000e+01 : f32
    %76 = vector.broadcast %cst_40 : f32 to vector<32x1xf32>
    %77 = arith.divf %75, %76 : vector<32x1xf32>
    %78 = vector.broadcast %77 : vector<32x1xf32> to vector<32x32xf32>
    %79 = arith.subf %69, %78 : vector<32x32xf32>
    %80 = arith.mulf %79, %79 : vector<32x32xf32>
    %cst_41 = arith.constant dense<0.000000e+00> : vector<32xf32>
    %81 = vector.multi_reduction <add>, %80, %cst_41 [1] : vector<32x32xf32> to vector<32xf32>
    %82 = vector.shape_cast %81 : vector<32xf32> to vector<32x1xf32>
    %cst_42 = arith.constant 3.200000e+01 : f32
    %83 = vector.broadcast %cst_42 : f32 to vector<32x1xf32>
    %84 = arith.divf %82, %83 : vector<32x1xf32>
    %85 = vector.broadcast %77 : vector<32x1xf32> to vector<32x32xf32>
    %86 = arith.subf %69, %85 : vector<32x32xf32>
    %cst_43 = arith.constant 9.99999974E-6 : f32
    %87 = vector.broadcast %cst_43 : f32 to vector<32x1xf32>
    %88 = arith.addf %84, %87 : vector<32x1xf32>
    %89 = math.rsqrt %88 : vector<32x1xf32>
    %90 = vector.broadcast %89 : vector<32x1xf32> to vector<32x32xf32>
    %91 = arith.mulf %86, %90 : vector<32x32xf32>
    %92 = vector.broadcast %71 : vector<1x32xf32> to vector<32x32xf32>
    %93 = arith.mulf %91, %92 : vector<32x32xf32>
    %94 = vector.broadcast %73 : vector<1x32xf32> to vector<32x32xf32>
    %95 = arith.addf %93, %94 : vector<32x32xf32>
    %c0_44 = arith.constant 0 : index
    %c0_45 = arith.constant 0 : index
    %c0_46 = arith.constant 0 : index
    %96 = vector.load %arg12[%c0_44, %c0_45, %c0_46] : memref<2x32x128xf32, #tpu.memory_space<vmem>>, vector<1x32x128xf32>
    %97 = vector.shape_cast %96 : vector<1x32x128xf32> to vector<32x128xf32>
    %cst_47 = arith.constant dense<0.000000e+00> : vector<32x128xf32>
    %98 = tpu.matmul %95, %97, %cst_47 {dimension_numbers = #tpu.dot_dimension_numbers<[1], [0], [0], [1], [0, 0, 1, 1], [], []>} : vector<32x32xf32>, vector<32x128xf32>, vector<32x128xf32> -> vector<32x128xf32>
    %c0_48 = arith.constant 0 : index
    %c0_49 = arith.constant 0 : index
    %c0_50 = arith.constant 0 : index
    %99 = vector.load %arg13[%c0_48, %c0_49, %c0_50] : memref<2x1x128xf32, #tpu.memory_space<vmem>>, vector<1x1x128xf32>
    %100 = vector.shape_cast %99 : vector<1x1x128xf32> to vector<1x128xf32>
    %101 = vector.broadcast %100 : vector<1x128xf32> to vector<32x128xf32>
    %102 = arith.addf %98, %101 : vector<32x128xf32>
    %cst_51 = arith.constant 0.000000e+00 : f32
    %103 = vector.broadcast %cst_51 : f32 to vector<32x128xf32>
    %104 = arith.maximumf %102, %103 : vector<32x128xf32>
    %c0_52 = arith.constant 0 : index
    %c0_53 = arith.constant 0 : index
    %c0_54 = arith.constant 0 : index
    %105 = vector.load %arg14[%c0_52, %c0_53, %c0_54] : memref<2x128x32xf32, #tpu.memory_space<vmem>>, vector<1x128x32xf32>
    %106 = vector.shape_cast %105 : vector<1x128x32xf32> to vector<128x32xf32>
    %cst_55 = arith.constant dense<0.000000e+00> : vector<32x32xf32>
    %107 = tpu.matmul %104, %106, %cst_55 {dimension_numbers = #tpu.dot_dimension_numbers<[1], [0], [0], [1], [0, 0, 1, 1], [], []>} : vector<32x128xf32>, vector<128x32xf32>, vector<32x32xf32> -> vector<32x32xf32>
    %c0_56 = arith.constant 0 : index
    %c0_57 = arith.constant 0 : index
    %c0_58 = arith.constant 0 : index
    %108 = vector.load %arg15[%c0_56, %c0_57, %c0_58] : memref<2x1x32xf32, #tpu.memory_space<vmem>>, vector<1x1x32xf32>
    %109 = vector.shape_cast %108 : vector<1x1x32xf32> to vector<1x32xf32>
    %110 = vector.broadcast %109 : vector<1x32xf32> to vector<32x32xf32>
    %111 = arith.addf %107, %110 : vector<32x32xf32>
    %112 = arith.addf %111, %95 : vector<32x32xf32>
    %c0_59 = arith.constant 0 : index
    %c0_60 = arith.constant 0 : index
    %c0_61 = arith.constant 0 : index
    %113 = vector.load %arg10[%c0_59, %c0_60, %c0_61] : memref<2x1x32xf32, #tpu.memory_space<vmem>>, vector<1x1x32xf32>
    %114 = vector.shape_cast %113 : vector<1x1x32xf32> to vector<1x32xf32>
    %c0_62 = arith.constant 0 : index
    %c0_63 = arith.constant 0 : index
    %c0_64 = arith.constant 0 : index
    %115 = vector.load %arg11[%c0_62, %c0_63, %c0_64] : memref<2x1x32xf32, #tpu.memory_space<vmem>>, vector<1x1x32xf32>
    %116 = vector.shape_cast %115 : vector<1x1x32xf32> to vector<1x32xf32>
    %cst_65 = arith.constant dense<0.000000e+00> : vector<32xf32>
    %117 = vector.multi_reduction <add>, %112, %cst_65 [1] : vector<32x32xf32> to vector<32xf32>
    %118 = vector.shape_cast %117 : vector<32xf32> to vector<32x1xf32>
    %cst_66 = arith.constant 3.200000e+01 : f32
    %119 = vector.broadcast %cst_66 : f32 to vector<32x1xf32>
    %120 = arith.divf %118, %119 : vector<32x1xf32>
    %121 = vector.broadcast %120 : vector<32x1xf32> to vector<32x32xf32>
    %122 = arith.subf %112, %121 : vector<32x32xf32>
    %123 = arith.mulf %122, %122 : vector<32x32xf32>
    %cst_67 = arith.constant dense<0.000000e+00> : vector<32xf32>
    %124 = vector.multi_reduction <add>, %123, %cst_67 [1] : vector<32x32xf32> to vector<32xf32>
    %125 = vector.shape_cast %124 : vector<32xf32> to vector<32x1xf32>
    %cst_68 = arith.constant 3.200000e+01 : f32
    %126 = vector.broadcast %cst_68 : f32 to vector<32x1xf32>
    %127 = arith.divf %125, %126 : vector<32x1xf32>
    %128 = vector.broadcast %120 : vector<32x1xf32> to vector<32x32xf32>
    %129 = arith.subf %112, %128 : vector<32x32xf32>
    %cst_69 = arith.constant 9.99999974E-6 : f32
    %130 = vector.broadcast %cst_69 : f32 to vector<32x1xf32>
    %131 = arith.addf %127, %130 : vector<32x1xf32>
    %132 = math.rsqrt %131 : vector<32x1xf32>
    %133 = vector.broadcast %132 : vector<32x1xf32> to vector<32x32xf32>
    %134 = arith.mulf %129, %133 : vector<32x32xf32>
    %135 = vector.broadcast %114 : vector<1x32xf32> to vector<32x32xf32>
    %136 = arith.mulf %134, %135 : vector<32x32xf32>
    %137 = vector.broadcast %116 : vector<1x32xf32> to vector<32x32xf32>
    %138 = arith.addf %136, %137 : vector<32x32xf32>
    %c1 = arith.constant 1 : index
    %c0_70 = arith.constant 0 : index
    %c0_71 = arith.constant 0 : index
    %139 = vector.load %arg5[%c1, %c0_70, %c0_71] : memref<2x32x192xf32, #tpu.memory_space<vmem>>, vector<1x32x192xf32>
    %140 = vector.shape_cast %139 : vector<1x32x192xf32> to vector<32x192xf32>
    %cst_72 = arith.constant dense<0.000000e+00> : vector<32x192xf32>
    %141 = tpu.matmul %138, %140, %cst_72 {dimension_numbers = #tpu.dot_dimension_numbers<[1], [0], [0], [1], [0, 0, 1, 1], [], []>} : vector<32x32xf32>, vector<32x192xf32>, vector<32x192xf32> -> vector<32x192xf32>
    %142 = vector.shape_cast %141 : vector<32x192xf32> to vector<4x8x192xf32>
    %143 = vector.extract_strided_slice %142 {offsets = [0, 0, 0], sizes = [4, 8, 32], strides = [1, 1, 1]} : vector<4x8x192xf32> to vector<4x8x32xf32>
    %cst_73 = arith.constant 0.420448214 : f32
    %144 = vector.broadcast %cst_73 : f32 to vector<4x8x32xf32>
    %145 = arith.mulf %143, %144 : vector<4x8x32xf32>
    %146 = vector.extract_strided_slice %142 {offsets = [0, 0, 64], sizes = [4, 8, 32], strides = [1, 1, 1]} : vector<4x8x192xf32> to vector<4x8x32xf32>
    %cst_74 = arith.constant 0.420448214 : f32
    %147 = vector.broadcast %cst_74 : f32 to vector<4x8x32xf32>
    %148 = arith.mulf %146, %147 : vector<4x8x32xf32>
    %149 = vector.extract_strided_slice %142 {offsets = [0, 0, 128], sizes = [4, 8, 32], strides = [1, 1, 1]} : vector<4x8x192xf32> to vector<4x8x32xf32>
    "tpu.trace_start"() <{level = 10 : i32, message = "bqe,bke->bqk"}> : () -> ()
    %cst_75 = arith.constant dense<0.000000e+00> : vector<4x8x8xf32>
    %150 = tpu.matmul %145, %148, %cst_75 {dimension_numbers = #tpu.dot_dimension_numbers<[2], [2], [1], [1], [0, 0, 0, 1, 1, 1], [0], [0]>} : vector<4x8x32xf32>, vector<4x8x32xf32>, vector<4x8x8xf32> -> vector<4x8x8xf32>
    "tpu.trace_stop"() : () -> ()
    %151 = vector.broadcast %13 : vector<1x1x8xf32> to vector<4x8x8xf32>
    %152 = arith.addf %150, %151 : vector<4x8x8xf32>
    %cst_76 = arith.constant dense<0xFF800000> : vector<4x8xf32>
    %153 = vector.multi_reduction <maximumf>, %152, %cst_76 [2] : vector<4x8x8xf32> to vector<4x8xf32>
    %154 = vector.shape_cast %153 : vector<4x8xf32> to vector<4x8x1xf32>
    %155 = vector.broadcast %154 : vector<4x8x1xf32> to vector<4x8x8xf32>
    %156 = arith.subf %152, %155 : vector<4x8x8xf32>
    %157 = math.exp %156 : vector<4x8x8xf32>
    %cst_77 = arith.constant dense<0.000000e+00> : vector<4x8xf32>
    %158 = vector.multi_reduction <add>, %157, %cst_77 [2] : vector<4x8x8xf32> to vector<4x8xf32>
    %159 = vector.shape_cast %158 : vector<4x8xf32> to vector<4x8x1xf32>
    %160 = tpu.reciprocal %159 {approx = true} : vector<4x8x1xf32> -> vector<4x8x1xf32>
    %161 = vector.broadcast %160 : vector<4x8x1xf32> to vector<4x8x8xf32>
    %162 = arith.mulf %157, %161 : vector<4x8x8xf32>
    "tpu.trace_start"() <{level = 10 : i32, message = "bqk,bke->bqe"}> : () -> ()
    %cst_78 = arith.constant dense<0.000000e+00> : vector<4x8x32xf32>
    %163 = tpu.matmul %162, %149, %cst_78 {dimension_numbers = #tpu.dot_dimension_numbers<[2], [1], [1], [2], [0, 0, 0, 1, 1, 2], [0], [0]>} : vector<4x8x8xf32>, vector<4x8x32xf32>, vector<4x8x32xf32> -> vector<4x8x32xf32>
    "tpu.trace_stop"() : () -> ()
    %164 = vector.extract_strided_slice %142 {offsets = [0, 0, 32], sizes = [4, 8, 32], strides = [1, 1, 1]} : vector<4x8x192xf32> to vector<4x8x32xf32>
    %cst_79 = arith.constant 0.420448214 : f32
    %165 = vector.broadcast %cst_79 : f32 to vector<4x8x32xf32>
    %166 = arith.mulf %164, %165 : vector<4x8x32xf32>
    %167 = vector.extract_strided_slice %142 {offsets = [0, 0, 96], sizes = [4, 8, 32], strides = [1, 1, 1]} : vector<4x8x192xf32> to vector<4x8x32xf32>
    %cst_80 = arith.constant 0.420448214 : f32
    %168 = vector.broadcast %cst_80 : f32 to vector<4x8x32xf32>
    %169 = arith.mulf %167, %168 : vector<4x8x32xf32>
    %170 = vector.extract_strided_slice %142 {offsets = [0, 0, 160], sizes = [4, 8, 32], strides = [1, 1, 1]} : vector<4x8x192xf32> to vector<4x8x32xf32>
    "tpu.trace_start"() <{level = 10 : i32, message = "bqe,bke->bqk"}> : () -> ()
    %cst_81 = arith.constant dense<0.000000e+00> : vector<4x8x8xf32>
    %171 = tpu.matmul %166, %169, %cst_81 {dimension_numbers = #tpu.dot_dimension_numbers<[2], [2], [1], [1], [0, 0, 0, 1, 1, 1], [0], [0]>} : vector<4x8x32xf32>, vector<4x8x32xf32>, vector<4x8x8xf32> -> vector<4x8x8xf32>
    "tpu.trace_stop"() : () -> ()
    %172 = vector.broadcast %13 : vector<1x1x8xf32> to vector<4x8x8xf32>
    %173 = arith.addf %171, %172 : vector<4x8x8xf32>
    %cst_82 = arith.constant dense<0xFF800000> : vector<4x8xf32>
    %174 = vector.multi_reduction <maximumf>, %173, %cst_82 [2] : vector<4x8x8xf32> to vector<4x8xf32>
    %175 = vector.shape_cast %174 : vector<4x8xf32> to vector<4x8x1xf32>
    %176 = vector.broadcast %175 : vector<4x8x1xf32> to vector<4x8x8xf32>
    %177 = arith.subf %173, %176 : vector<4x8x8xf32>
    %178 = math.exp %177 : vector<4x8x8xf32>
    %cst_83 = arith.constant dense<0.000000e+00> : vector<4x8xf32>
    %179 = vector.multi_reduction <add>, %178, %cst_83 [2] : vector<4x8x8xf32> to vector<4x8xf32>
    %180 = vector.shape_cast %179 : vector<4x8xf32> to vector<4x8x1xf32>
    %181 = tpu.reciprocal %180 {approx = true} : vector<4x8x1xf32> -> vector<4x8x1xf32>
    %182 = vector.broadcast %181 : vector<4x8x1xf32> to vector<4x8x8xf32>
    %183 = arith.mulf %178, %182 : vector<4x8x8xf32>
    "tpu.trace_start"() <{level = 10 : i32, message = "bqk,bke->bqe"}> : () -> ()
    %cst_84 = arith.constant dense<0.000000e+00> : vector<4x8x32xf32>
    %184 = tpu.matmul %183, %170, %cst_84 {dimension_numbers = #tpu.dot_dimension_numbers<[2], [1], [1], [2], [0, 0, 0, 1, 1, 2], [0], [0]>} : vector<4x8x8xf32>, vector<4x8x32xf32>, vector<4x8x32xf32> -> vector<4x8x32xf32>
    "tpu.trace_stop"() : () -> ()
    %185 = tpu.concatenate %163, %184 in 2 : vector<4x8x32xf32>, vector<4x8x32xf32> -> vector<4x8x64xf32>
    %186 = vector.shape_cast %185 : vector<4x8x64xf32> to vector<32x64xf32>
    %c1_85 = arith.constant 1 : index
    %c0_86 = arith.constant 0 : index
    %c0_87 = arith.constant 0 : index
    %187 = vector.load %arg6[%c1_85, %c0_86, %c0_87] : memref<2x64x32xf32, #tpu.memory_space<vmem>>, vector<1x64x32xf32>
    %188 = vector.shape_cast %187 : vector<1x64x32xf32> to vector<64x32xf32>
    %cst_88 = arith.constant dense<0.000000e+00> : vector<32x32xf32>
    %189 = tpu.matmul %186, %188, %cst_88 {dimension_numbers = #tpu.dot_dimension_numbers<[1], [0], [0], [1], [0, 0, 1, 1], [], []>} : vector<32x64xf32>, vector<64x32xf32>, vector<32x32xf32> -> vector<32x32xf32>
    %c1_89 = arith.constant 1 : index
    %c0_90 = arith.constant 0 : index
    %c0_91 = arith.constant 0 : index
    %190 = vector.load %arg7[%c1_89, %c0_90, %c0_91] : memref<2x1x32xf32, #tpu.memory_space<vmem>>, vector<1x1x32xf32>
    %191 = vector.shape_cast %190 : vector<1x1x32xf32> to vector<1x32xf32>
    %192 = vector.broadcast %191 : vector<1x32xf32> to vector<32x32xf32>
    %193 = arith.addf %189, %192 : vector<32x32xf32>
    %194 = arith.addf %193, %138 : vector<32x32xf32>
    %c1_92 = arith.constant 1 : index
    %c0_93 = arith.constant 0 : index
    %c0_94 = arith.constant 0 : index
    %195 = vector.load %arg8[%c1_92, %c0_93, %c0_94] : memref<2x1x32xf32, #tpu.memory_space<vmem>>, vector<1x1x32xf32>
    %196 = vector.shape_cast %195 : vector<1x1x32xf32> to vector<1x32xf32>
    %c1_95 = arith.constant 1 : index
    %c0_96 = arith.constant 0 : index
    %c0_97 = arith.constant 0 : index
    %197 = vector.load %arg9[%c1_95, %c0_96, %c0_97] : memref<2x1x32xf32, #tpu.memory_space<vmem>>, vector<1x1x32xf32>
    %198 = vector.shape_cast %197 : vector<1x1x32xf32> to vector<1x32xf32>
    %cst_98 = arith.constant dense<0.000000e+00> : vector<32xf32>
    %199 = vector.multi_reduction <add>, %194, %cst_98 [1] : vector<32x32xf32> to vector<32xf32>
    %200 = vector.shape_cast %199 : vector<32xf32> to vector<32x1xf32>
    %cst_99 = arith.constant 3.200000e+01 : f32
    %201 = vector.broadcast %cst_99 : f32 to vector<32x1xf32>
    %202 = arith.divf %200, %201 : vector<32x1xf32>
    %203 = vector.broadcast %202 : vector<32x1xf32> to vector<32x32xf32>
    %204 = arith.subf %194, %203 : vector<32x32xf32>
    %205 = arith.mulf %204, %204 : vector<32x32xf32>
    %cst_100 = arith.constant dense<0.000000e+00> : vector<32xf32>
    %206 = vector.multi_reduction <add>, %205, %cst_100 [1] : vector<32x32xf32> to vector<32xf32>
    %207 = vector.shape_cast %206 : vector<32xf32> to vector<32x1xf32>
    %cst_101 = arith.constant 3.200000e+01 : f32
    %208 = vector.broadcast %cst_101 : f32 to vector<32x1xf32>
    %209 = arith.divf %207, %208 : vector<32x1xf32>
    %210 = vector.broadcast %202 : vector<32x1xf32> to vector<32x32xf32>
    %211 = arith.subf %194, %210 : vector<32x32xf32>
    %cst_102 = arith.constant 9.99999974E-6 : f32
    %212 = vector.broadcast %cst_102 : f32 to vector<32x1xf32>
    %213 = arith.addf %209, %212 : vector<32x1xf32>
    %214 = math.rsqrt %213 : vector<32x1xf32>
    %215 = vector.broadcast %214 : vector<32x1xf32> to vector<32x32xf32>
    %216 = arith.mulf %211, %215 : vector<32x32xf32>
    %217 = vector.broadcast %196 : vector<1x32xf32> to vector<32x32xf32>
    %218 = arith.mulf %216, %217 : vector<32x32xf32>
    %219 = vector.broadcast %198 : vector<1x32xf32> to vector<32x32xf32>
    %220 = arith.addf %218, %219 : vector<32x32xf32>
    %c1_103 = arith.constant 1 : index
    %c0_104 = arith.constant 0 : index
    %c0_105 = arith.constant 0 : index
    %221 = vector.load %arg12[%c1_103, %c0_104, %c0_105] : memref<2x32x128xf32, #tpu.memory_space<vmem>>, vector<1x32x128xf32>
    %222 = vector.shape_cast %221 : vector<1x32x128xf32> to vector<32x128xf32>
    %cst_106 = arith.constant dense<0.000000e+00> : vector<32x128xf32>
    %223 = tpu.matmul %220, %222, %cst_106 {dimension_numbers = #tpu.dot_dimension_numbers<[1], [0], [0], [1], [0, 0, 1, 1], [], []>} : vector<32x32xf32>, vector<32x128xf32>, vector<32x128xf32> -> vector<32x128xf32>
    %c1_107 = arith.constant 1 : index
    %c0_108 = arith.constant 0 : index
    %c0_109 = arith.constant 0 : index
    %224 = vector.load %arg13[%c1_107, %c0_108, %c0_109] : memref<2x1x128xf32, #tpu.memory_space<vmem>>, vector<1x1x128xf32>
    %225 = vector.shape_cast %224 : vector<1x1x128xf32> to vector<1x128xf32>
    %226 = vector.broadcast %225 : vector<1x128xf32> to vector<32x128xf32>
    %227 = arith.addf %223, %226 : vector<32x128xf32>
    %cst_110 = arith.constant 0.000000e+00 : f32
    %228 = vector.broadcast %cst_110 : f32 to vector<32x128xf32>
    %229 = arith.maximumf %227, %228 : vector<32x128xf32>
    %c1_111 = arith.constant 1 : index
    %c0_112 = arith.constant 0 : index
    %c0_113 = arith.constant 0 : index
    %230 = vector.load %arg14[%c1_111, %c0_112, %c0_113] : memref<2x128x32xf32, #tpu.memory_space<vmem>>, vector<1x128x32xf32>
    %231 = vector.shape_cast %230 : vector<1x128x32xf32> to vector<128x32xf32>
    %cst_114 = arith.constant dense<0.000000e+00> : vector<32x32xf32>
    %232 = tpu.matmul %229, %231, %cst_114 {dimension_numbers = #tpu.dot_dimension_numbers<[1], [0], [0], [1], [0, 0, 1, 1], [], []>} : vector<32x128xf32>, vector<128x32xf32>, vector<32x32xf32> -> vector<32x32xf32>
    %c1_115 = arith.constant 1 : index
    %c0_116 = arith.constant 0 : index
    %c0_117 = arith.constant 0 : index
    %233 = vector.load %arg15[%c1_115, %c0_116, %c0_117] : memref<2x1x32xf32, #tpu.memory_space<vmem>>, vector<1x1x32xf32>
    %234 = vector.shape_cast %233 : vector<1x1x32xf32> to vector<1x32xf32>
    %235 = vector.broadcast %234 : vector<1x32xf32> to vector<32x32xf32>
    %236 = arith.addf %232, %235 : vector<32x32xf32>
    %237 = arith.addf %236, %220 : vector<32x32xf32>
    %c1_118 = arith.constant 1 : index
    %c0_119 = arith.constant 0 : index
    %c0_120 = arith.constant 0 : index
    %238 = vector.load %arg10[%c1_118, %c0_119, %c0_120] : memref<2x1x32xf32, #tpu.memory_space<vmem>>, vector<1x1x32xf32>
    %239 = vector.shape_cast %238 : vector<1x1x32xf32> to vector<1x32xf32>
    %c1_121 = arith.constant 1 : index
    %c0_122 = arith.constant 0 : index
    %c0_123 = arith.constant 0 : index
    %240 = vector.load %arg11[%c1_121, %c0_122, %c0_123] : memref<2x1x32xf32, #tpu.memory_space<vmem>>, vector<1x1x32xf32>
    %241 = vector.shape_cast %240 : vector<1x1x32xf32> to vector<1x32xf32>
    %cst_124 = arith.constant dense<0.000000e+00> : vector<32xf32>
    %242 = vector.multi_reduction <add>, %237, %cst_124 [1] : vector<32x32xf32> to vector<32xf32>
    %243 = vector.shape_cast %242 : vector<32xf32> to vector<32x1xf32>
    %cst_125 = arith.constant 3.200000e+01 : f32
    %244 = vector.broadcast %cst_125 : f32 to vector<32x1xf32>
    %245 = arith.divf %243, %244 : vector<32x1xf32>
    %246 = vector.broadcast %245 : vector<32x1xf32> to vector<32x32xf32>
    %247 = arith.subf %237, %246 : vector<32x32xf32>
    %248 = arith.mulf %247, %247 : vector<32x32xf32>
    %cst_126 = arith.constant dense<0.000000e+00> : vector<32xf32>
    %249 = vector.multi_reduction <add>, %248, %cst_126 [1] : vector<32x32xf32> to vector<32xf32>
    %250 = vector.shape_cast %249 : vector<32xf32> to vector<32x1xf32>
    %cst_127 = arith.constant 3.200000e+01 : f32
    %251 = vector.broadcast %cst_127 : f32 to vector<32x1xf32>
    %252 = arith.divf %250, %251 : vector<32x1xf32>
    %253 = vector.broadcast %245 : vector<32x1xf32> to vector<32x32xf32>
    %254 = arith.subf %237, %253 : vector<32x32xf32>
    %cst_128 = arith.constant 9.99999974E-6 : f32
    %255 = vector.broadcast %cst_128 : f32 to vector<32x1xf32>
    %256 = arith.addf %252, %255 : vector<32x1xf32>
    %257 = math.rsqrt %256 : vector<32x1xf32>
    %258 = vector.broadcast %257 : vector<32x1xf32> to vector<32x32xf32>
    %259 = arith.mulf %254, %258 : vector<32x32xf32>
    %260 = vector.broadcast %239 : vector<1x32xf32> to vector<32x32xf32>
    %261 = arith.mulf %259, %260 : vector<32x32xf32>
    %262 = vector.broadcast %241 : vector<1x32xf32> to vector<32x32xf32>
    %263 = arith.addf %261, %262 : vector<32x32xf32>
    %c0_129 = arith.constant 0 : index
    %c0_130 = arith.constant 0 : index
    %264 = vector.load %arg16[%c0_129, %c0_130] : memref<32x32xf32, #tpu.memory_space<vmem>>, vector<32x32xf32>
    %cst_131 = arith.constant dense<0.000000e+00> : vector<32x32xf32>
    %265 = tpu.matmul %263, %264, %cst_131 {dimension_numbers = #tpu.dot_dimension_numbers<[1], [0], [0], [1], [0, 0, 1, 1], [], []>} : vector<32x32xf32>, vector<32x32xf32>, vector<32x32xf32> -> vector<32x32xf32>
    %c0_132 = arith.constant 0 : index
    %c0_133 = arith.constant 0 : index
    %266 = vector.load %arg17[%c0_132, %c0_133] : memref<1x32xf32, #tpu.memory_space<vmem>>, vector<1x32xf32>
    %267 = vector.broadcast %266 : vector<1x32xf32> to vector<32x32xf32>
    %268 = arith.addf %265, %267 : vector<32x32xf32>
    %269 = vector.shape_cast %268 : vector<32x32xf32> to vector<4x8x32xf32>
    %270 = vector.extract_strided_slice %269 {offsets = [0, 0, 0], sizes = [4, 1, 32], strides = [1, 1, 1]} : vector<4x8x32xf32> to vector<4x1x32xf32>
    %271 = vector.shape_cast %270 : vector<4x1x32xf32> to vector<4x32xf32>
    %c0_134 = arith.constant 0 : index
    %c0_135 = arith.constant 0 : index
    %272 = vector.load %arg18[%c0_134, %c0_135] : memref<32x256xf32, #tpu.memory_space<vmem>>, vector<32x256xf32>
    %cst_136 = arith.constant dense<0.000000e+00> : vector<4x256xf32>
    %273 = tpu.matmul %271, %272, %cst_136 {dimension_numbers = #tpu.dot_dimension_numbers<[1], [0], [0], [1], [0, 0, 1, 1], [], []>} : vector<4x32xf32>, vector<32x256xf32>, vector<4x256xf32> -> vector<4x256xf32>
    %c0_137 = arith.constant 0 : index
    %c0_138 = arith.constant 0 : index
    %274 = vector.load %arg19[%c0_137, %c0_138] : memref<1x256xf32, #tpu.memory_space<vmem>>, vector<1x256xf32>
    %275 = vector.broadcast %274 : vector<1x256xf32> to vector<4x256xf32>
    %276 = arith.addf %273, %275 : vector<4x256xf32>
    %cst_139 = arith.constant 0.000000e+00 : f32
    %277 = vector.broadcast %cst_139 : f32 to vector<4x256xf32>
    %278 = arith.maximumf %276, %277 : vector<4x256xf32>
    %c0_140 = arith.constant 0 : index
    %c0_141 = arith.constant 0 : index
    %279 = vector.load %arg20[%c0_140, %c0_141] : memref<256x64xf32, #tpu.memory_space<vmem>>, vector<256x64xf32>
    %cst_142 = arith.constant dense<0.000000e+00> : vector<4x64xf32>
    %280 = tpu.matmul %278, %279, %cst_142 {dimension_numbers = #tpu.dot_dimension_numbers<[1], [0], [0], [1], [0, 0, 1, 1], [], []>} : vector<4x256xf32>, vector<256x64xf32>, vector<4x64xf32> -> vector<4x64xf32>
    %c0_143 = arith.constant 0 : index
    %c0_144 = arith.constant 0 : index
    %281 = vector.load %arg21[%c0_143, %c0_144] : memref<1x64xf32, #tpu.memory_space<vmem>>, vector<1x64xf32>
    %282 = vector.broadcast %281 : vector<1x64xf32> to vector<4x64xf32>
    %283 = arith.addf %280, %282 : vector<4x64xf32>
    %284 = vector.extract_strided_slice %283 {offsets = [0, 0], sizes = [4, 32], strides = [1, 1]} : vector<4x64xf32> to vector<4x32xf32>
    %285 = vector.extract_strided_slice %283 {offsets = [0, 32], sizes = [4, 32], strides = [1, 1]} : vector<4x64xf32> to vector<4x32xf32>
    %c0_145 = arith.constant 0 : index
    %c0_146 = arith.constant 0 : index
    %286 = vector.load %arg22[%c0_145, %c0_146] : memref<1x32xf32, #tpu.memory_space<vmem>>, vector<1x32xf32>
    %c0_147 = arith.constant 0 : index
    %c0_148 = arith.constant 0 : index
    %287 = vector.load %arg23[%c0_147, %c0_148] : memref<1x32xf32, #tpu.memory_space<vmem>>, vector<1x32xf32>
    %cst_149 = arith.constant dense<0.000000e+00> : vector<4xf32>
    %288 = vector.multi_reduction <add>, %285, %cst_149 [1] : vector<4x32xf32> to vector<4xf32>
    %289 = vector.shape_cast %288 : vector<4xf32> to vector<4x1xf32>
    %cst_150 = arith.constant 3.200000e+01 : f32
    %290 = vector.broadcast %cst_150 : f32 to vector<4x1xf32>
    %291 = arith.divf %289, %290 : vector<4x1xf32>
    %292 = vector.broadcast %291 : vector<4x1xf32> to vector<4x32xf32>
    %293 = arith.subf %285, %292 : vector<4x32xf32>
    %294 = arith.mulf %293, %293 : vector<4x32xf32>
    %cst_151 = arith.constant dense<0.000000e+00> : vector<4xf32>
    %295 = vector.multi_reduction <add>, %294, %cst_151 [1] : vector<4x32xf32> to vector<4xf32>
    %296 = vector.shape_cast %295 : vector<4xf32> to vector<4x1xf32>
    %cst_152 = arith.constant 3.200000e+01 : f32
    %297 = vector.broadcast %cst_152 : f32 to vector<4x1xf32>
    %298 = arith.divf %296, %297 : vector<4x1xf32>
    %299 = vector.broadcast %291 : vector<4x1xf32> to vector<4x32xf32>
    %300 = arith.subf %285, %299 : vector<4x32xf32>
    %cst_153 = arith.constant 9.99999974E-6 : f32
    %301 = vector.broadcast %cst_153 : f32 to vector<4x1xf32>
    %302 = arith.addf %298, %301 : vector<4x1xf32>
    %303 = math.rsqrt %302 : vector<4x1xf32>
    %304 = vector.broadcast %303 : vector<4x1xf32> to vector<4x32xf32>
    %305 = arith.mulf %300, %304 : vector<4x32xf32>
    %306 = vector.broadcast %286 : vector<1x32xf32> to vector<4x32xf32>
    %307 = arith.mulf %305, %306 : vector<4x32xf32>
    %308 = vector.broadcast %287 : vector<1x32xf32> to vector<4x32xf32>
    %309 = arith.addf %307, %308 : vector<4x32xf32>
    %310 = math.tanh %309 : vector<4x32xf32>
    %311 = tpu.concatenate %284, %310 in 1 : vector<4x32xf32>, vector<4x32xf32> -> vector<4x64xf32>
    %c0_154 = arith.constant 0 : index
    %c0_155 = arith.constant 0 : index
    %312 = vector.load %arg24[%c0_154, %c0_155] : memref<4x64xf32, #tpu.memory_space<vmem>>, vector<4x64xf32>
    tpu.vector_store %arg24[%c0_154, %c0_155], %311 {strides = array<i32>} : memref<4x64xf32, #tpu.memory_space<vmem>>, vector<4x64xf32>,
    return
  }
  func.func @transform_0(%arg0: i32) -> (i32, i32) {
    %c0_i32 = arith.constant 0 : i32
    %c0_i32_0 = arith.constant 0 : i32
    return %arg0, %c0_i32 : i32, i32
  }
  func.func @transform_1(%arg0: i32) -> (i32, i32) {
    %c0_i32 = arith.constant 0 : i32
    %c0_i32_0 = arith.constant 0 : i32
    %c0_i32_1 = arith.constant 0 : i32
    return %c0_i32, %c0_i32_0 : i32, i32
  }
  func.func @transform_2(%arg0: i32) -> (i32, i32) {
    %c0_i32 = arith.constant 0 : i32
    %c0_i32_0 = arith.constant 0 : i32
    %c0_i32_1 = arith.constant 0 : i32
    return %c0_i32, %c0_i32_0 : i32, i32
  }
  func.func @transform_3(%arg0: i32) -> (i32, i32) {
    %c0_i32 = arith.constant 0 : i32
    %c0_i32_0 = arith.constant 0 : i32
    %c0_i32_1 = arith.constant 0 : i32
    return %c0_i32, %c0_i32_0 : i32, i32
  }
  func.func @transform_4(%arg0: i32) -> (i32, i32, i32) {
    %c0_i32 = arith.constant 0 : i32
    %c0_i32_0 = arith.constant 0 : i32
    %c0_i32_1 = arith.constant 0 : i32
    %c0_i32_2 = arith.constant 0 : i32
    return %c0_i32, %c0_i32_0, %c0_i32_1 : i32, i32, i32
  }
  func.func @transform_5(%arg0: i32) -> (i32, i32, i32) {
    %c0_i32 = arith.constant 0 : i32
    %c0_i32_0 = arith.constant 0 : i32
    %c0_i32_1 = arith.constant 0 : i32
    %c0_i32_2 = arith.constant 0 : i32
    return %c0_i32, %c0_i32_0, %c0_i32_1 : i32, i32, i32
  }
  func.func @transform_6(%arg0: i32) -> (i32, i32, i32) {
    %c0_i32 = arith.constant 0 : i32
    %c0_i32_0 = arith.constant 0 : i32
    %c0_i32_1 = arith.constant 0 : i32
    %c0_i32_2 = arith.constant 0 : i32
    return %c0_i32, %c0_i32_0, %c0_i32_1 : i32, i32, i32
  }
  func.func @transform_7(%arg0: i32) -> (i32, i32, i32) {
    %c0_i32 = arith.constant 0 : i32
    %c0_i32_0 = arith.constant 0 : i32
    %c0_i32_1 = arith.constant 0 : i32
    %c0_i32_2 = arith.constant 0 : i32
    return %c0_i32, %c0_i32_0, %c0_i32_1 : i32, i32, i32
  }
  func.func @transform_8(%arg0: i32) -> (i32, i32, i32) {
    %c0_i32 = arith.constant 0 : i32
    %c0_i32_0 = arith.constant 0 : i32
    %c0_i32_1 = arith.constant 0 : i32
    %c0_i32_2 = arith.constant 0 : i32
    return %c0_i32, %c0_i32_0, %c0_i32_1 : i32, i32, i32
  }
  func.func @transform_9(%arg0: i32) -> (i32, i32, i32) {
    %c0_i32 = arith.constant 0 : i32
    %c0_i32_0 = arith.constant 0 : i32
    %c0_i32_1 = arith.constant 0 : i32
    %c0_i32_2 = arith.constant 0 : i32
    return %c0_i32, %c0_i32_0, %c0_i32_1 : i32, i32, i32
  }
  func.func @transform_10(%arg0: i32) -> (i32, i32, i32) {
    %c0_i32 = arith.constant 0 : i32
    %c0_i32_0 = arith.constant 0 : i32
    %c0_i32_1 = arith.constant 0 : i32
    %c0_i32_2 = arith.constant 0 : i32
    return %c0_i32, %c0_i32_0, %c0_i32_1 : i32, i32, i32
  }
  func.func @transform_11(%arg0: i32) -> (i32, i32, i32) {
    %c0_i32 = arith.constant 0 : i32
    %c0_i32_0 = arith.constant 0 : i32
    %c0_i32_1 = arith.constant 0 : i32
    %c0_i32_2 = arith.constant 0 : i32
    return %c0_i32, %c0_i32_0, %c0_i32_1 : i32, i32, i32
  }
  func.func @transform_12(%arg0: i32) -> (i32, i32, i32) {
    %c0_i32 = arith.constant 0 : i32
    %c0_i32_0 = arith.constant 0 : i32
    %c0_i32_1 = arith.constant 0 : i32
    %c0_i32_2 = arith.constant 0 : i32
    return %c0_i32, %c0_i32_0, %c0_i32_1 : i32, i32, i32
  }
  func.func @transform_13(%arg0: i32) -> (i32, i32, i32) {
    %c0_i32 = arith.constant 0 : i32
    %c0_i32_0 = arith.constant 0 : i32
    %c0_i32_1 = arith.constant 0 : i32
    %c0_i32_2 = arith.constant 0 : i32
    return %c0_i32, %c0_i32_0, %c0_i32_1 : i32, i32, i32
  }
  func.func @transform_14(%arg0: i32) -> (i32, i32, i32) {
    %c0_i32 = arith.constant 0 : i32
    %c0_i32_0 = arith.constant 0 : i32
    %c0_i32_1 = arith.constant 0 : i32
    %c0_i32_2 = arith.constant 0 : i32
    return %c0_i32, %c0_i32_0, %c0_i32_1 : i32, i32, i32
  }
  func.func @transform_15(%arg0: i32) -> (i32, i32) {
    %c0_i32 = arith.constant 0 : i32
    %c0_i32_0 = arith.constant 0 : i32
    %c0_i32_1 = arith.constant 0 : i32
    return %c0_i32, %c0_i32_0 : i32, i32
  }
  func.func @transform_16(%arg0: i32) -> (i32, i32) {
    %c0_i32 = arith.constant 0 : i32
    %c0_i32_0 = arith.constant 0 : i32
    %c0_i32_1 = arith.constant 0 : i32
    return %c0_i32, %c0_i32_0 : i32, i32
  }
  func.func @transform_17(%arg0: i32) -> (i32, i32) {
    %c0_i32 = arith.constant 0 : i32
    %c0_i32_0 = arith.constant 0 : i32
    %c0_i32_1 = arith.constant 0 : i32
    return %c0_i32, %c0_i32_0 : i32, i32
  }
  func.func @transform_18(%arg0: i32) -> (i32, i32) {
    %c0_i32 = arith.constant 0 : i32
    %c0_i32_0 = arith.constant 0 : i32
    %c0_i32_1 = arith.constant 0 : i32
    return %c0_i32, %c0_i32_0 : i32, i32
  }
  func.func @transform_19(%arg0: i32) -> (i32, i32) {
    %c0_i32 = arith.constant 0 : i32
    %c0_i32_0 = arith.constant 0 : i32
    %c0_i32_1 = arith.constant 0 : i32
    return %c0_i32, %c0_i32_0 : i32, i32
  }
  func.func @transform_20(%arg0: i32) -> (i32, i32) {
    %c0_i32 = arith.constant 0 : i32
    %c0_i32_0 = arith.constant 0 : i32
    %c0_i32_1 = arith.constant 0 : i32
    return %c0_i32, %c0_i32_0 : i32, i32
  }
  func.func @transform_21(%arg0: i32) -> (i32, i32) {
    %c0_i32 = arith.constant 0 : i32
    %c0_i32_0 = arith.constant 0 : i32
    %c0_i32_1 = arith.constant 0 : i32
    return %c0_i32, %c0_i32_0 : i32, i32
  }
  func.func @transform_22(%arg0: i32) -> (i32, i32) {
    %c0_i32 = arith.constant 0 : i32
    %c0_i32_0 = arith.constant 0 : i32
    %c0_i32_1 = arith.constant 0 : i32
    return %c0_i32, %c0_i32_0 : i32, i32
  }
  func.func @transform_23(%arg0: i32) -> (i32, i32) {
    %c0_i32 = arith.constant 0 : i32
    %c0_i32_0 = arith.constant 0 : i32
    return %arg0, %c0_i32 : i32, i32
  }
}

</mosaic_0001>

<bundles_post_ra>
// kernel: discriminator_forward.1
= control target key start
LH: loop header
LB: loop body
LE: loop exit
PB: predicated region body
PF: predicated region fallthrough
CT: control target
= control target key end

     0   :  { %vm83_vm0 = vcmask 293888   ;;  %vm96_vm1 = vcmask 1043456   ;;  %vm196_vm2 = vcmask 261120   ;;  %v5547_v33 = vmov 0.0   ;;  %s6621_s1 = inlined_call_operand.vmem [shape: f32[36,32], index: 1, kind: input, shape index: {}]   ;;  %s6622_s0 = inlined_call_operand.vmem [shape: f32[32,36], index: 0, kind: input, shape index: {}]   ;;  %s6623_s2 = inlined_call_operand.vmem [shape: f32[32,32], index: 2, kind: input, shape index: {}]   ;;  %s6624_s4 = inlined_call_operand.vmem [shape: f32[2,32,192], index: 4, kind: input, shape index: {}]   ;;  %s6625_s3 = inlined_call_operand.vmem [shape: f32[1,32], index: 3, kind: input, shape index: {}]   ;;  %s6626_s5 = inlined_call_operand.vmem [shape: f32[2,64,32], index: 5, kind: input, shape index: {}]   ;;  %s6627_s6 = inlined_call_operand.vmem [shape: f32[2,1,32], index: 6, kind: input, shape index: {}]   ;;  %s6628_s11 = inlined_call_operand.vmem [shape: f32[2,32,128], index: 11, kind: input, shape index: {}]   ;;  %s6629_s13 = inlined_call_operand.vmem [shape: f32[2,128,32], index: 13, kind: input, shape index: {}]   ;;  %s6630_s7 = inlined_call_operand.vmem [shape: f32[2,1,32], index: 7, kind: input, shape index: {}]   ;;  %s6631_s8 = inlined_call_operand.vmem [shape: f32[2,1,32], index: 8, kind: input, shape index: {}]   ;;  %s6632_s12 = inlined_call_operand.vmem [shape: f32[2,1,128], index: 12, kind: input, shape index: {}]   ;;  %s6633_s14 = inlined_call_operand.vmem [shape: f32[2,1,32], index: 14, kind: input, shape index: {}]   ;;  %s6634_s9 = inlined_call_operand.vmem [shape: f32[2,1,32], index: 9, kind: input, shape index: {}]   ;;  %s6635_s10 = inlined_call_operand.vmem [shape: f32[2,1,32], index: 10, kind: input, shape index: {}]   ;;  %s6636_s15 = inlined_call_operand.vmem [shape: f32[32,32], index: 15, kind: input, shape index: {}]   ;;  %s6637_s17 = inlined_call_operand.vmem [shape: f32[32,256], index: 17, kind: input, shape index: {}]   ;;  %s6638_s19 = inlined_call_operand.vmem [shape: f32[256,64], index: 19, kind: input, shape index: {}]   ;;  %s6639_s16 = inlined_call_operand.vmem [shape: f32[1,32], index: 16, kind: input, shape index: {}]   ;;  %s6640_s18 = inlined_call_operand.vmem [shape: f32[1,256], index: 18, kind: input, shape index: {}]   ;;  %s6641_s20 = inlined_call_operand.vmem [shape: f32[1,64], index: 20, kind: input, shape index: {}]   ;;  %s6642_s21 = inlined_call_operand.vmem [shape: f32[1,32], index: 21, kind: input, shape index: {}]   ;;  %s6643_s22 = inlined_call_operand.vmem [shape: f32[1,32], index: 22, kind: input, shape index: {}]   ;;  %s6644_s23 = inlined_call_operand.vmem [shape: f32[4,64], index: 23, kind: output, shape index: {}]  }
   0x1   :  { %6656 = sst [smem:[#allocation2_spill]] %s6621_s1  ;;  %382 = vmatprep.mubr.f32.mxu1 %v5547_v33  ;;  %vm5548_vm3 = vmmov 0   ;;  %v294_v59 = vlaneseq  ;;  %v5550_v61 = vmov -1e+09   ;;  %vm719_vm5 = vcmask 64512  }
   0x2   :  { %6657 = sst [smem:[#allocation3_spill]] %s6622_s0  ;;  %s6664_s24 = sld [smem:[#allocation2_spill]]  ;;  %vm1755_vm6 = vcmask 523264   ;;  %vm4303_vm7 = vcmask 1041409   ;;  %vm4306_vm8 = vcmask 1042434   ;;  %vm4309_vm9 = vcmask 1043459  }
   0x3   :  { %6658 = sst [smem:[#allocation4_spill]] %s6623_s2  ;;  %s6665_s28 = sld [smem:[#allocation3_spill]]  ;;  %v295_v60 = vand.u32 127, %v294_v59  ;;  %vm4501_vm10 = vcmask 257024   ;;  %vm4539_vm11 = vcmask 519168  }
   0x4   :  { %6659 = sst [smem:[#allocation5_spill]] %s6624_s4  ;;  %s6666_s30 = sld [smem:[#allocation4_spill]] }
   0x5   :  { %6660 = sst [smem:[#allocation6_spill]] %s6625_s3  ;;  %s6667_s25 = sld [smem:[#allocation5_spill]]  ;;  %vm296_vm4 = vcmp.lt.s32.totalorder %v295_v60, 5 }
   0x6   :  { %6661 = sst [smem:[#allocation7_spill]] %s6626_s5  ;;  %s6668_s26 = sld [smem:[#allocation6_spill]]  ;;  %v5826_v62 = vsel %vm296_vm4, 0.0, %v5550_v61 }
   0x7   :  { %6662 = sst [smem:[#allocation8_spill]] %s6627_s6  ;;  %s5549_s2 = smov 64  }
   0x8   :  { %6663 = sst [smem:[#allocation9_spill]] %s6628_s11  ;;  %v78_v0 = vld [vmem:[%s6664_s24] sm:$0xff]  ;;  %v79_v1 = vld [vmem:[%s6664_s24 + $0x8] sm:$0xff]  ;;  %v80_v2 = vld [vmem:[%s6664_s24 + $0x10] sm:$0xff]  ;;  %s6654_s6 = smov 32  }
   0x9   :  { %v5249_v3 = vpack.c.bf16 %v79_v1, %v78_v0  ;;  %v81_v4 = vld [vmem:[%s6664_s24 + $0x18] sm:$0xff]  ;;  %v74_v5 = vld [vmem:[%s6665_s28] sm:$0xff]  ;;  %v75_v13 = vld [vmem:[%s6665_s28 + $0x8] sm:$0xff]  ;;  %s6669_s11 = sld [smem:[#allocation7_spill]]  ;;  %s6670_s0 = sld [smem:[#allocation8_spill]] }
   0xa   :  { %v5253_v6 = vpack.c.bf16 %v81_v4, %v80_v2  ;;  %4907 = vmatprep.mubr.msk.f32.mxu0 %vm83_vm0, %v74_v5  ;;  %v82_v7 = vld [vmem:[%s6664_s24 + $0x20] sm:$0xf]  ;;  %v186_v9 = vld [vmem:[%s6666_s30 + $0x8] sm:$0xff]  ;;  %v187_v10 = vld [vmem:[%s6666_s30 + $0x10] sm:$0xff]  ;;  %s6671_s27 = sld [smem:[#allocation9_spill]]  ;;  %s6673_s5 = smov 96  }
   0xb   :  { %5250 = vmatprep.subr.bf16.mxu0 %v5249_v3  ;;  %v185_v8 = vld [vmem:[%s6666_s30] sm:$0xff]  ;;  %v188_v11 = vld [vmem:[%s6666_s30 + $0x18] sm:$0xff]  ;;  %v76_v14 = vld [vmem:[%s6665_s28 + $0x10] sm:$0xff] }
   0xc   :  { %5252 = vmatpush3.bf16.msra.mxu0 %v5249_v3  ;;  %v5257_v12 = vpack.c.bf16 %v186_v9, %v185_v8  ;;  %v5261_v15 = vpack.c.bf16 %v188_v11, %v187_v10  ;;  %v77_v16 = vld [vmem:[%s6665_s28 + $0x18] sm:$0xff]  ;;  %v299_v17 = vld [vmem:[%s6667_s25 + $0x8] sm:$0xff]  ;;  %v298_v19 = vld [vmem:[%s6667_s25] sm:$0xff]  ;;  %s6652_s28 = smov 96  }
   0xd   :  { %5254 = vmatprep.subr.bf16.mxu0 %v5253_v6  ;;  %v301_v18 = vld [vmem:[%s6667_s25 + $0x18] sm:$0xff]  ;;  %v300_v21 = vld [vmem:[%s6667_s25 + $0x10] sm:$0xff]  ;;  %v303_v27 = vld [vmem:[%s6667_s25 + $0x28] sm:$0xff] }
   0xe   :  { %v5265_v20 = vpack.c.bf16 %v301_v18, %v299_v17  ;;  %v5267_v22 = vpack.c.bf16 %v300_v21, %v298_v19  ;;  %v305_v28 = vld [vmem:[%s6667_s25 + $0x38] sm:$0xff]  ;;  %v302_v30 = vld [vmem:[%s6667_s25 + $0x20] sm:$0xff]  ;;  %v304_v31 = vld [vmem:[%s6667_s25 + $0x30] sm:$0xff] }
   0xf   :  { %v5269_v29 = vpack.c.bf16 %v305_v28, %v303_v27  ;;  %v5271_v32 = vpack.c.bf16 %v304_v31, %v302_v30  ;;  %v4550_v34 = vld [vmem:[%s6668_s26] ss:$0 sm:$0xff] }
  0x10   :  { %5256 = vmatpush3.bf16.msra.mxu0 %v5253_v6  ;;  %5266 = vmatprep.subr.bf16.mxu1 %v5265_v20 }
  0x11   :  { %4905 = vmatprep.subr.msk.mxu0 %vm96_vm1, %v82_v7  ;;  %5268 = vmatpush1.bf16.msra.mxu1 %v5267_v22 }
  0x12   :  { %5270 = vmatprep.subr.bf16.mxu1 %v5269_v29 }
  0x14   :  { %4906 = vmatpush3.msk.msra.mxu0 %vm96_vm1, %v82_v7 }
  0x15   :  { %4908 = vmatmul.mubr.msk.f32.vlgmr.msra.gmra.mrb[0].mxu0 %vm83_vm0, %v75_v13  ;;  %5258 = vmatprep.subr.bf16.mxu0 %v5257_v12 }
  0x16   :  { %4910 = vmatprep.mubr.msk.f32.mxu0 %vm83_vm0, %v76_v14  ;;  %5260 = vmatpush3.bf16.msra.mxu0 %v5257_v12 }
  0x17   :  { %5262 = vmatprep.subr.bf16.mxu0 %v5261_v15  ;;  %5272 = vmatpush1.bf16.msra.mxu1 %v5271_v32 }
  0x18   :  { %4947 = vmatprep.subr.mxu1 %v5547_v33 }
  0x19   :  { %4911 = vmatmul.mubr.msk.f32.gmra.mrb[2].mxu0 %vm83_vm0, %v77_v16 }
  0x1a   :  { %5264 = vmatpush3.bf16.msra.mxu0 %v5261_v15 }
  0x1b   :  { %4927 = vmatprep.subr.mxu0 %v5547_v33 }
  0xe8   :  { %v4909_v23 = vpop.f32.mrb[0].mxu0 }
  0xe9   :  { %v166_v24 = vpop.f32.mrb[1].mxu0 }
  0xea   :  { %4921 = vmatprep.mubr.msk.f32.mxu0 %vm196_vm2, %v166_v24 }
  0xeb   :  { %4922 = vmatmul.mubr.msk.f32.vlgmr.msra.gmra.mrb[4].mxu0 %vm196_vm2, %v4909_v23 }
  0xec   :  { %v4912_v25 = vpop.f32.mrb[2].mxu0 }
  0xed   :  { %v176_v26 = vpop.f32.mrb[3].mxu0 }
  0xee   :  { %4924 = vmatprep.mubr.msk.f32.mxu0 %vm196_vm2, %v176_v26 }
  0xef   :  { %4925 = vmatmul.mubr.msk.f32.gmra.mrb[6].mxu0 %vm196_vm2, %v4912_v25 }
  0xf0   :  { %4929 = vmatprep.mubr.msk.f32.mxu0 %vm5548_vm3, %v5547_v33 }
 0x1be   :  { %v4923_v35 = vpop.f32.mrb[4].mxu0 }
 0x1bf   :  { %v275_v36 = vpop.f32.mrb[5].mxu0  ;;  %v5755_v40 = vadd.f32 %v4923_v35, %v4550_v34 }
 0x1c0   :  { %v5750_v37 = vadd.f32 %v4550_v34, %v275_v36 }
 0x1c2   :  { %4555 = vmatmul.mubr.msk.f32.vlgmr.msra.gmra.mrb[0].mxu1 %vm196_vm2, %v5750_v37  ;;  %v4926_v38 = vpop.f32.mrb[6].mxu0 }
 0x1c3   :  { %v285_v39 = vpop.f32.mrb[7].mxu0  ;;  %388 = vmatprep.mubr.f32.mxu1 %v5547_v33  ;;  %v5765_v42 = vadd.f32 %v4926_v38, %v4550_v34 }
 0x1c4   :  { %v5760_v41 = vadd.f32 %v4550_v34, %v285_v39 }
 0x1c6   :  { %4556 = vmatmul.mubr.msk.f32.gmra.mrb[2].mxu1 %vm196_vm2, %v5755_v40 }
 0x1c7   :  { %394 = vmatprep.mubr.f32.mxu1 %v5547_v33 }
 0x1ca   :  { %4557 = vmatmul.mubr.msk.f32.gmra.mrb[4].mxu1 %vm196_vm2, %v5760_v41 }
 0x1cb   :  { %400 = vmatprep.mubr.f32.mxu1 %v5547_v33 }
 0x1ce   :  { %4558 = vmatmul.mubr.msk.f32.gmra.mrb[6].mxu1 %vm196_vm2, %v5765_v42 }
 0x1cf   :  { %4949 = vmatprep.mubr.msk.f32.mxu1 %vm5548_vm3, %v5547_v33 }
 0x295   :  { %v384_v43 = vpop.f32.mrb[0].mxu1 }
 0x296   :  { %v5773_v44 = vmul.f32 0.4204482, %v384_v43  ;;  %v5775_v45 = vpop.f32.mrb[1].mxu1 }
 0x297   :  { %4948 = vmatpush3.msra.mxu1 %v5775_v45 }
 0x298   :  { %412 = vrot.lane.b32.xlu0 %v5773_v44, %s5549_s2  ;;  %4957 = vmatprep.subr.mxu1 %v5547_v33 }
 0x299   :  { %v390_v46 = vpop.f32.mrb[2].mxu1 }
 0x29a   :  { %v5781_v47 = vmul.f32 0.4204482, %v390_v46  ;;  %v5783_v48 = vpop.f32.mrb[3].mxu1 }
 0x29c   :  { %489 = vrot.lane.b32.xlu0 %v5781_v47, %s5549_s2 }
 0x29d   :  { %v396_v49 = vpop.f32.mrb[4].mxu1 }
 0x29e   :  { %v5787_v50 = vmul.f32 0.4204482, %v396_v49  ;;  %v5789_v51 = vpop.f32.mrb[5].mxu1 }
 0x2a0   :  { %566 = vrot.lane.b32.xlu1 %v5787_v50, %s5549_s2 }
 0x2a1   :  { %v402_v52 = vpop.f32.mrb[6].mxu1 }
 0x2a2   :  { %v5793_v53 = vmul.f32 0.4204482, %v402_v52  ;;  %v5795_v54 = vpop.f32.mrb[7].mxu1 }
 0x2a4   :  { %643 = vrot.lane.b32.xlu1 %v5793_v53, %s5549_s2 }
 0x30a   :  { %v413_v55 = vpop.permute.xlu0 %412 }
 0x30b   :  { %4928 = vmatpush3.xpose.msk.msra.mxu0 %vm196_vm2, %v413_v55 }
 0x30c   :  { %4932 = vmatprep.subr.mxu0 %v5547_v33 }
 0x30e   :  { %4930 = vmatmul.mubr.msk.f32.vlgmr.msra.gmra.mrb[8].mxu0 %vm196_vm2, %v5773_v44  ;;  %v490_v56 = vpop.permute.xlu0 %489 }
 0x30f   :  { %4933 = vmatpush3.xpose.msk.msra.mxu0 %vm196_vm2, %v490_v56  ;;  %4934 = vmatprep.mubr.msk.f32.mxu0 %vm5548_vm3, %v5547_v33 }
 0x310   :  { %4937 = vmatprep.subr.mxu0 %v5547_v33 }
 0x312   :  { %4935 = vmatmul.mubr.msk.f32.vlgmr.msra.gmra.mrb[10].mxu0 %vm196_vm2, %v5781_v47  ;;  %v567_v57 = vpop.permute.xlu1 %566 }
 0x313   :  { %4938 = vmatpush3.xpose.msk.msra.mxu0 %vm196_vm2, %v567_v57  ;;  %4939 = vmatprep.mubr.msk.f32.mxu0 %vm5548_vm3, %v5547_v33 }
 0x314   :  { %4942 = vmatprep.subr.mxu0 %v5547_v33 }
 0x316   :  { %4940 = vmatmul.mubr.msk.f32.vlgmr.msra.gmra.mrb[12].mxu0 %vm196_vm2, %v5787_v50  ;;  %v644_v58 = vpop.permute.xlu1 %643 }
 0x317   :  { %4943 = vmatpush3.xpose.msk.msra.mxu0 %vm196_vm2, %v644_v58  ;;  %4944 = vmatprep.mubr.msk.f32.mxu0 %vm5548_vm3, %v5547_v33 }
 0x318   :  { %4952 = vmatprep.subr.mxu0 %v5547_v33 }
 0x31a   :  { %4945 = vmatmul.mubr.msk.f32.vlgmr.msra.gmra.mrb[14].mxu0 %vm196_vm2, %v5793_v53 }
 0x31b   :  { %4953 = vmatpush3.msra.mxu0 %v5783_v48  ;;  %4954 = vmatprep.mubr.msk.f32.mxu0 %vm5548_vm3, %v5547_v33 }
 0x31c   :  { %4962 = vmatprep.subr.mxu0 %v5547_v33 }
 0x3e1   :  { %v484_v63 = vpop.f32.mrb[8].mxu0 }
 0x3e2   :  { %v485_v0 = vadd.f32 %v484_v63, %v5826_v62  ;;  %v4931_v1 = vpop.f32.mrb[9].mxu0 }
 0x3e4   :  { %v720_v2 = vsel %vm719_vm5, %v485_v0, -inf }
 0x3e5   :  { %721 = vmax.xlane.f32.xlu0 %v720_v2  ;;  %v561_v3 = vpop.f32.mrb[10].mxu0 }
 0x3e6   :  { %v562_v4 = vadd.f32 %v561_v3, %v5826_v62  ;;  %v4936_v5 = vpop.f32.mrb[11].mxu0 }
 0x3e8   :  { %v723_v6 = vsel %vm719_vm5, %v562_v4, -inf }
 0x3e9   :  { %v638_v7 = vpop.f32.mrb[12].mxu0  ;;  %724 = vmax.xlane.f32.xlu1 %v723_v6 }
 0x3ea   :  { %v639_v8 = vadd.f32 %v638_v7, %v5826_v62  ;;  %v4941_v9 = vpop.f32.mrb[13].mxu0 }
 0x3ec   :  { %v726_v10 = vsel %vm719_vm5, %v639_v8, -inf }
 0x3ed   :  { %727 = vmax.xlane.f32.xlu0 %v726_v10  ;;  %v715_v11 = vpop.f32.mrb[14].mxu0 }
 0x3ee   :  { %v716_v12 = vadd.f32 %v715_v11, %v5826_v62  ;;  %v4946_v13 = vpop.f32.mrb[15].mxu0 }
 0x3f0   :  { %v729_v14 = vsel %vm719_vm5, %v716_v12, -inf }
 0x3f1   :  { %730 = vmax.xlane.f32.xlu0 %v729_v14 }
 0x3fa   :  { %1058 = vrot.lane.b32.xlu1 %v5773_v44, %s6654_s6 }
 0x472   :  { %v722_v15 = vpop.xlane.xlu0 %721 }
 0x473   :  { %v732_v16 = vsub.f32 %v485_v0, %v722_v15 }
 0x475   :  { %v736_v17 = vmul.f32 1.442695, %v732_v16 }
 0x476   :  { %v725_v18 = vpop.xlane.xlu1 %724 }
 0x477   :  { %5447 = vpow2.f32 %v736_v17  ;;  %v733_v19 = vsub.f32 %v562_v4, %v725_v18 }
 0x479   :  { %v738_v20 = vmul.f32 1.442695, %v733_v19 }
 0x47a   :  { %v728_v21 = vpop.xlane.xlu0 %727  ;;  %v1059_v36 = vpop.permute.xlu1 %1058 }
 0x47b   :  { %5449 = vpow2.f32 %v738_v20  ;;  %v734_v22 = vsub.f32 %v639_v8, %v728_v21 }
 0x47d   :  { %v740_v23 = vmul.f32 1.442695, %v734_v22 }
 0x47e   :  { %v731_v24 = vpop.xlane.xlu0 %730 }
 0x47f   :  { %5451 = vpow2.f32 %v740_v23  ;;  %v735_v25 = vsub.f32 %v716_v12, %v731_v24 }
 0x481   :  { %v5448_v26 = vpop.eup %5447  ;;  %v742_v27 = vmul.f32 1.442695, %v735_v25 }
 0x482   :  { %v744_v28 = vsel %vm719_vm5, %v5448_v26, 0.0 }
 0x483   :  { %5453 = vpow2.f32 %v742_v27  ;;  %745 = vadd.xlane.f32.xlu1 %v744_v28 }
 0x485   :  { %v5450_v29 = vpop.eup %5449 }
 0x486   :  { %v747_v30 = vsel %vm719_vm5, %v5450_v29, 0.0 }
 0x487   :  { %748 = vadd.xlane.f32.xlu0 %v747_v30 }
 0x489   :  { %v5452_v31 = vpop.eup %5451 }
 0x48a   :  { %v750_v32 = vsel %vm719_vm5, %v5452_v31, 0.0 }
 0x48b   :  { %751 = vadd.xlane.f32.xlu1 %v750_v32 }
 0x48d   :  { %v5454_v34 = vpop.eup %5453 }
 0x48e   :  { %v753_v35 = vsel %vm719_vm5, %v5454_v34, 0.0 }
 0x48f   :  { %754 = vadd.xlane.f32.xlu0 %v753_v35 }
 0x49c   :  { %1056 = vrot.lane.b32.xlu1 %v5773_v44, %s6652_s28 }
 0x4a0   :  { %1134 = vrot.lane.b32.xlu1 %v5781_v47, %s6652_s28 }
 0x4a4   :  { %1292 = vrot.lane.b32.xlu1 %v5793_v53, %s6654_s6 }
 0x4a5   :  { %1136 = vrot.lane.b32.xlu0 %v5781_v47, %s6654_s6 }
 0x4a8   :  { %1290 = vrot.lane.b32.xlu1 %v5793_v53, %s6652_s28 }
 0x4a9   :  { %1214 = vrot.lane.b32.xlu0 %v5787_v50, %s6654_s6 }
 0x4ad   :  { %1212 = vrot.lane.b32.xlu0 %v5787_v50, %s6652_s28 }
 0x510   :  { %v746_v38 = vpop.xlane.xlu1 %745 }
 0x511   :  { %5455 = vrcp.f32 %v746_v38 }
 0x514   :  { %v749_v39 = vpop.xlane.xlu0 %748 }
 0x515   :  { %5457 = vrcp.f32 %v749_v39 }
 0x518   :  { %v752_v43 = vpop.xlane.xlu1 %751 }
 0x519   :  { %5459 = vrcp.f32 %v752_v43 }
 0x51b   :  { %v5456_v44 = vpop.eup %5455 }
 0x51c   :  { %v760_v46 = vmul.f32 %v5456_v44, %v5448_v26  ;;  %v755_v49 = vpop.xlane.xlu0 %754  ;;  %v1057_v52 = vpop.permute.xlu1 %1056 }
 0x51d   :  { %5461 = vrcp.f32 %v755_v49 }
 0x51e   :  { %4950 = vmatmul.mubr.msk.f32.vlgmr.msra.gmra.mrb[8].mxu1 %vm719_vm5, %v760_v46 }
 0x51f   :  { %v5458_v47 = vpop.eup %5457  ;;  %4958 = vmatpush3.msra.mxu1 %v5789_v51  ;;  %4959 = vmatprep.mubr.msk.f32.mxu1 %vm5548_vm3, %v5547_v33 }
 0x520   :  { %v761_v50 = vmul.f32 %v5458_v47, %v5450_v29  ;;  %4967 = vmatprep.subr.mxu1 %v5547_v33  ;;  %v1137_v53 = vpop.permute.xlu0 %1136  ;;  %v1135_v57 = vpop.permute.xlu1 %1134 }
 0x522   :  { %4955 = vmatmul.mubr.msk.f32.vlgmr.msra.gmra.mrb[16].mxu0 %vm719_vm5, %v761_v50 }
 0x523   :  { %v5460_v55 = vpop.eup %5459  ;;  %4963 = vmatpush3.msra.mxu0 %v5795_v54  ;;  %4964 = vmatprep.mubr.msk.f32.mxu0 %vm5548_vm3, %v5547_v33 }
 0x524   :  { %v762_v56 = vmul.f32 %v5460_v55, %v5452_v31  ;;  %4972 = vmatprep.subr.mxu0 %v5547_v33  ;;  %v1215_v60 = vpop.permute.xlu0 %1214  ;;  %v1293_v63 = vpop.permute.xlu1 %1292 }
 0x526   :  { %4960 = vmatmul.mubr.msk.f32.vlgmr.msra.gmra.mrb[10].mxu1 %vm719_vm5, %v762_v56 }
 0x527   :  { %v5462_v58 = vpop.eup %5461  ;;  %4968 = vmatpush3.xpose.msk.msra.mxu1 %vm196_vm2, %v1059_v36  ;;  %4969 = vmatprep.mubr.msk.f32.mxu1 %vm5548_vm3, %v5547_v33 }
 0x528   :  { %4977 = vmatprep.subr.mxu1 %v5547_v33  ;;  %v763_v61 = vmul.f32 %v5462_v58, %v5454_v34  ;;  %v1213_v0 = vpop.permute.xlu0 %1212  ;;  %v1291_v1 = vpop.permute.xlu1 %1290 }
 0x52a   :  { %4965 = vmatmul.mubr.msk.f32.vlgmr.msra.gmra.mrb[18].mxu0 %vm719_vm5, %v763_v61  ;;  %4970 = vmatmul.mubr.msk.f32.vlgmr.msra.gmra.mrb[12].mxu1 %vm196_vm2, %v1057_v52 }
 0x52b   :  { %4973 = vmatpush3.xpose.msk.msra.mxu0 %vm196_vm2, %v1137_v53  ;;  %4978 = vmatpush3.xpose.msk.msra.mxu1 %vm196_vm2, %v1215_v60 }
 0x52c   :  { %4974 = vmatprep.mubr.msk.f32.mxu0 %vm5548_vm3, %v5547_v33  ;;  %4979 = vmatprep.mubr.msk.f32.mxu1 %vm5548_vm3, %v5547_v33 }
 0x52d   :  { %4982 = vmatprep.subr.mxu0 %v5547_v33  ;;  %4987 = vmatprep.subr.mxu1 %v5547_v33 }
 0x52e   :  { %4975 = vmatmul.mubr.msk.f32.vlgmr.msra.gmra.mrb[20].mxu0 %vm196_vm2, %v1135_v57  ;;  %4980 = vmatmul.mubr.msk.f32.vlgmr.msra.gmra.mrb[14].mxu1 %vm196_vm2, %v1213_v0 }
 0x52f   :  { %4983 = vmatpush3.xpose.msk.msra.mxu0 %vm196_vm2, %v1293_v63  ;;  %4984 = vmatprep.mubr.msk.f32.mxu0 %vm5548_vm3, %v5547_v33 }
 0x530   :  { %4992 = vmatprep.subr.mxu0 %v5547_v33  ;;  %4989 = vmatprep.mubr.msk.f32.mxu1 %vm5548_vm3, %v5547_v33 }
 0x532   :  { %4985 = vmatmul.mubr.msk.f32.vlgmr.msra.gmra.mrb[22].mxu0 %vm196_vm2, %v1291_v1 }
 0x533   :  { %4994 = vmatprep.mubr.msk.f32.mxu0 %vm5548_vm3, %v5547_v33 }
 0x5f1   :  { %v5892_v2 = vpop.f32.mrb[8].mxu1 }
 0x5f2   :  { %v4951_v3 = vpop.f32.mrb[9].mxu1 }
 0x5f5   :  { %v5894_v4 = vpop.f32.mrb[16].mxu0 }
 0x5f6   :  { %v4956_v5 = vpop.f32.mrb[17].mxu0 }
 0x5f9   :  { %v5896_v6 = vpop.f32.mrb[10].mxu1 }
 0x5fa   :  { %v4961_v7 = vpop.f32.mrb[11].mxu1 }
 0x5fd   :  { %v5898_v8 = vpop.f32.mrb[18].mxu0  ;;  %v1130_v9 = vpop.f32.mrb[12].mxu1 }
 0x5fe   :  { %v1131_v10 = vadd.f32 %v1130_v9, %v5826_v62  ;;  %v4966_v11 = vpop.f32.mrb[19].mxu0  ;;  %v4971_v12 = vpop.f32.mrb[13].mxu1  ;;  %v1740_v9 = vld [vmem:[%s6669_s11] sm:$0xff] }
 0x5ff   :  { %v1742_v11 = vld [vmem:[%s6669_s11 + $0x10] sm:$0xff] }
 0x600   :  { %v1368_v13 = vsel %vm719_vm5, %v1131_v10, -inf }
 0x601   :  { %v1208_v14 = vpop.f32.mrb[20].mxu0  ;;  %1369 = vmax.xlane.f32.xlu0 %v1368_v13  ;;  %v1286_v15 = vpop.f32.mrb[14].mxu1  ;;  %v1743_v13 = vld [vmem:[%s6669_s11 + $0x18] sm:$0xff] }
 0x602   :  { %v1209_v16 = vadd.f32 %v1208_v14, %v5826_v62  ;;  %v1287_v17 = vadd.f32 %v1286_v15, %v5826_v62  ;;  %v4976_v18 = vpop.f32.mrb[21].mxu0  ;;  %v4981_v19 = vpop.f32.mrb[15].mxu1  ;;  %v5277_v14 = vpack.c.bf16 %v1743_v13, %v1742_v11  ;;  %v1744_v15 = vld [vmem:[%s6669_s11 + $0x20] sm:$0xff] }
 0x603   :  { %v1746_v18 = vld [vmem:[%s6669_s11 + $0x30] sm:$0xff]  ;;  %v1747_v19 = vld [vmem:[%s6669_s11 + $0x38] sm:$0xff]  ;;  %v1932_v13 = vld [vmem:[%s6671_s27] sm:$0xff] }
 0x604   :  { %v1371_v20 = vsel %vm719_vm5, %v1209_v16, -inf  ;;  %v1374_v21 = vsel %vm719_vm5, %v1287_v17, -inf }
 0x605   :  { %1372 = vmax.xlane.f32.xlu1 %v1371_v20  ;;  %v1364_v22 = vpop.f32.mrb[22].mxu0  ;;  %1375 = vmax.xlane.f32.xlu0 %v1374_v21  ;;  %v5285_v20 = vpack.c.bf16 %v1747_v19, %v1746_v18  ;;  %v2044_v19 = vld [vmem:[%s6629_s13] sm:$0xff] }
 0x606   :  { %v1365_v23 = vadd.f32 %v1364_v22, %v5826_v62  ;;  %v4986_v24 = vpop.f32.mrb[23].mxu0 }
 0x608   :  { %v1377_v25 = vsel %vm719_vm5, %v1365_v23, -inf }
 0x609   :  { %1378 = vmax.xlane.f32.xlu0 %v1377_v25 }
 0x616   :  { %1413 = vrot.lane.b32.xlu1 %v5775_v45, %s6652_s28 }
 0x68e   :  { %v1370_v26 = vpop.xlane.xlu0 %1369 }
 0x68f   :  { %v1380_v27 = vsub.f32 %v1131_v10, %v1370_v26  ;;  %v1741_v10 = vld [vmem:[%s6669_s11 + $0x8] sm:$0xff] }
 0x690   :  { %v5273_v12 = vpack.c.bf16 %v1741_v10, %v1740_v9 }
 0x691   :  { %v1384_v28 = vmul.f32 1.442695, %v1380_v27 }
 0x692   :  { %v1373_v29 = vpop.xlane.xlu1 %1372  ;;  %v1376_v30 = vpop.xlane.xlu0 %1375 }
 0x693   :  { %5463 = vpow2.f32 %v1384_v28  ;;  %v1381_v31 = vsub.f32 %v1209_v16, %v1373_v29  ;;  %v1382_v32 = vsub.f32 %v1287_v17, %v1376_v30  ;;  %v1745_v16 = vld [vmem:[%s6669_s11 + $0x28] sm:$0xff] }
 0x694   :  { %v5281_v17 = vpack.c.bf16 %v1745_v16, %v1744_v15  ;;  %v1934_v16 = vld [vmem:[%s6671_s27 + $0x10] sm:$0xff] }
 0x695   :  { %v1386_v34 = vmul.f32 1.442695, %v1381_v31  ;;  %v1388_v35 = vmul.f32 1.442695, %v1382_v32 }
 0x696   :  { %v1414_v36 = vpop.permute.xlu1 %1413  ;;  %v1379_v38 = vpop.xlane.xlu0 %1378 }
 0x697   :  { %5465 = vpow2.f32 %v1386_v34  ;;  %v1383_v39 = vsub.f32 %v1365_v23, %v1379_v38  ;;  %4988 = vmatpush3.msra.mxu1 %v1414_v36 }
 0x698   :  { %5467 = vpow2.f32 %v1388_v35  ;;  %4997 = vmatprep.subr.mxu1 %v5547_v33 }
 0x699   :  { %v1390_v43 = vmul.f32 1.442695, %v1383_v39 }
 0x69b   :  { %5469 = vpow2.f32 %v1390_v43 }
 0x69d   :  { %v5464_v45 = vpop.eup %5463 }
 0x69e   :  { %v1392_v44 = vsel %vm719_vm5, %v5464_v45, 0.0 }
 0x69f   :  { %1393 = vadd.xlane.f32.xlu1 %v1392_v44 }
 0x6a1   :  { %v5466_v46 = vpop.eup %5465 }
 0x6a2   :  { %v5468_v49 = vpop.eup %5467  ;;  %v1395_v47 = vsel %vm719_vm5, %v5466_v46, 0.0 }
 0x6a3   :  { %1396 = vadd.xlane.f32.xlu0 %v1395_v47  ;;  %v1398_v52 = vsel %vm719_vm5, %v5468_v49, 0.0 }
 0x6a4   :  { %1399 = vadd.xlane.f32.xlu1 %v1398_v52 }
 0x6a5   :  { %v5470_v50 = vpop.eup %5469 }
 0x6a6   :  { %v1401_v53 = vsel %vm719_vm5, %v5470_v50, 0.0 }
 0x6a7   :  { %1402 = vadd.xlane.f32.xlu0 %v1401_v53 }
 0x6b5   :  { %1567 = vrot.lane.b32.xlu1 %v5789_v51, %s6652_s28 }
 0x6b9   :  { %1644 = vrot.lane.b32.xlu1 %v5795_v54, %s6652_s28 }
 0x6bd   :  { %1490 = vrot.lane.b32.xlu0 %v5783_v48, %s6652_s28 }
 0x72c   :  { %v1394_v55 = vpop.xlane.xlu1 %1393 }
 0x72d   :  { %5471 = vrcp.f32 %v1394_v55 }
 0x730   :  { %v1397_v56 = vpop.xlane.xlu0 %1396 }
 0x731   :  { %v1400_v57 = vpop.xlane.xlu1 %1399  ;;  %5473 = vrcp.f32 %v1397_v56 }
 0x732   :  { %5475 = vrcp.f32 %v1400_v57 }
 0x734   :  { %v1403_v58 = vpop.xlane.xlu0 %1402 }
 0x735   :  { %5477 = vrcp.f32 %v1403_v58  ;;  %v1568_v63 = vpop.permute.xlu1 %1567 }
 0x737   :  { %v5472_v60 = vpop.eup %5471 }
 0x738   :  { %v1408_v61 = vmul.f32 %v5472_v60, %v5464_v45  ;;  %v1491_v0 = vpop.permute.xlu0 %1490 }
 0x739   :  { %4993 = vmatpush3.msra.mxu0 %v1491_v0  ;;  %v1645_v3 = vpop.permute.xlu1 %1644 }
 0x73a   :  { %4990 = vmatmul.mubr.msk.f32.vlgmr.msra.gmra.mrb[16].mxu1 %vm719_vm5, %v1408_v61  ;;  %5002 = vmatprep.subr.mxu0 %v5547_v33 }
 0x73b   :  { %v5474_v51 = vpop.eup %5473  ;;  %4998 = vmatpush3.msra.mxu1 %v1568_v63  ;;  %4999 = vmatprep.mubr.msk.f32.mxu1 %vm5548_vm3, %v5547_v33 }
 0x73c   :  { %v5476_v48 = vpop.eup %5475  ;;  %v1409_v54 = vmul.f32 %v5474_v51, %v5466_v46  ;;  %5274 = vmatprep.subr.bf16.mxu1 %v5273_v12 }
 0x73d   :  { %v1410_v1 = vmul.f32 %v5476_v48, %v5468_v49 }
 0x73e   :  { %4995 = vmatmul.mubr.msk.f32.vlgmr.msra.gmra.mrb[24].mxu0 %vm719_vm5, %v1409_v54 }
 0x73f   :  { %v5478_v5 = vpop.eup %5477  ;;  %5000 = vmatmul.mubr.msk.f32.vlgmr.msra.gmra.mrb[18].mxu1 %vm719_vm5, %v1410_v1  ;;  %5003 = vmatpush3.msra.mxu0 %v1645_v3 }
 0x740   :  { %v1411_v7 = vmul.f32 %v5478_v5, %v5470_v50  ;;  %5004 = vmatprep.mubr.msk.f32.mxu0 %vm5548_vm3, %v5547_v33  ;;  %5276 = vmatpush3.bf16.msra.mxu1 %v5273_v12 }
 0x741   :  { %5278 = vmatprep.subr.bf16.mxu1 %v5277_v14 }
 0x742   :  { %5005 = vmatmul.mubr.msk.f32.vlgmr.msra.gmra.mrb[26].mxu0 %vm719_vm5, %v1411_v7 }
 0x744   :  { %5280 = vmatpush3.bf16.msra.mxu1 %v5277_v14  ;;  %v1933_v14 = vld [vmem:[%s6671_s27 + $0x8] sm:$0xff] }
 0x745   :  { %5282 = vmatprep.subr.bf16.mxu1 %v5281_v17  ;;  %v5289_v15 = vpack.c.bf16 %v1933_v14, %v1932_v13 }
 0x747   :  { %5290 = vmatprep.subr.bf16.mxu0 %v5289_v15 }
 0x748   :  { %5284 = vmatpush3.bf16.msra.mxu1 %v5281_v17  ;;  %v1935_v17 = vld [vmem:[%s6671_s27 + $0x18] sm:$0xff]  ;;  %5292 = vmatpush3.bf16.msra.mxu0 %v5289_v15 }
 0x749   :  { %5286 = vmatprep.subr.bf16.mxu1 %v5285_v20  ;;  %v5293_v18 = vpack.c.bf16 %v1935_v17, %v1934_v16 }
 0x74b   :  { %5294 = vmatprep.subr.bf16.mxu0 %v5293_v18 }
 0x74c   :  { %5288 = vmatpush3.bf16.msra.mxu1 %v5285_v20  ;;  %5296 = vmatpush3.bf16.msra.mxu0 %v5293_v18  ;;  %v2045_v20 = vld [vmem:[%s6629_s13 + $0x8] sm:$0xff] }
 0x80d   :  { %v1485_v21 = vpop.f32.mrb[16].mxu1 }
 0x80e   :  { %1724 = vrot.lane.b32.xlu0 %v1485_v21, %s6654_s6  ;;  %v4991_v22 = vpop.f32.mrb[17].mxu1  ;;  %v5297_v21 = vpack.c.bf16 %v2045_v20, %v2044_v19 }
 0x810   :  { %5298 = vmatprep.subr.bf16.mxu0 %v5297_v21 }
 0x811   :  { %v1562_v23 = vpop.f32.mrb[24].mxu0 }
 0x812   :  { %v1639_v24 = vpop.f32.mrb[18].mxu1  ;;  %1726 = vrot.lane.b32.xlu1 %v1562_v23, %s6654_s6  ;;  %v4996_v25 = vpop.f32.mrb[25].mxu0 }
 0x813   :  { %1728 = vrot.lane.b32.xlu0 %v1639_v24, %s6654_s6  ;;  %v5001_v26 = vpop.f32.mrb[19].mxu1 }
 0x815   :  { %v1716_v27 = vpop.f32.mrb[26].mxu0 }
 0x816   :  { %1730 = vrot.lane.b32.xlu1 %v1716_v27, %s6654_s6  ;;  %v5006_v28 = vpop.f32.mrb[27].mxu0 }
 0x880   :  { %v1725_v29 = vpop.permute.xlu0 %1724 }
 0x881   :  { %v1736_v30 = vsel %vm196_vm2, %v5892_v2, %v1725_v29  ;;  %v4583_v2 = vld [vmem:[%s6670_s0] ss:$0 sm:$0xff] }
 0x882   :  { %5023 = vmatprep.mubr.msk.f32.mxu1 %vm1755_vm6, %v1736_v30 }
 0x884   :  { %v1727_v31 = vpop.permute.xlu1 %1726 }
 0x885   :  { %v1737_v32 = vsel %vm196_vm2, %v5894_v4, %v1727_v31  ;;  %v1729_v34 = vpop.permute.xlu0 %1728 }
 0x886   :  { %v1738_v35 = vsel %vm196_vm2, %v5896_v6, %v1729_v34  ;;  %5024 = vmatmul.mubr.msk.f32.vlgmr.msra.gmra.mrb[20].mxu1 %vm1755_vm6, %v1737_v32 }
 0x887   :  { %5026 = vmatprep.mubr.msk.f32.mxu1 %vm1755_vm6, %v1738_v35 }
 0x888   :  { %v1731_v36 = vpop.permute.xlu1 %1730 }
 0x889   :  { %v1739_v38 = vsel %vm196_vm2, %v5898_v8, %v1731_v36  ;;  %v4588_v36 = vld [vmem:[%s6630_s7] ss:$0 sm:$0xff] }
 0x88a   :  { %5027 = vmatmul.mubr.msk.f32.gmra.mrb[22].mxu1 %vm1755_vm6, %v1739_v38 }
 0x88b   :  { %2315 = vmatprep.mubr.f32.mxu1 %v5547_v33 }
 0x959   :  { %v5025_v4 = vpop.f32.mrb[20].mxu1 }
 0x95a   :  { %v1840_v39 = vadd.f32 %v5025_v4, %v4583_v2  ;;  %v1834_v43 = vpop.f32.mrb[21].mxu1 }
 0x95b   :  { %v1835_v6 = vadd.f32 %v4583_v2, %v1834_v43 }
 0x95c   :  { %v1854_v45 = vadd.f32 %v1840_v39, %v5755_v40  ;;  %v4589_v39 = vld [vmem:[%s6631_s8] ss:$0 sm:$0xff] }
 0x95d   :  { %v5028_v44 = vpop.f32.mrb[22].mxu1  ;;  %v1853_v46 = vadd.f32 %v1835_v6, %v5750_v37 }
 0x95e   :  { %v1844_v49 = vpop.f32.mrb[23].mxu1  ;;  %v1862_v8 = vsel %vm196_vm2, %v1854_v45, 0.0  ;;  %v1850_v47 = vadd.f32 %v5028_v44, %v4583_v2  ;;  %v2047_v44 = vld [vmem:[%s6629_s13 + $0x18] sm:$0xff] }
 0x95f   :  { %v1845_v52 = vadd.f32 %v4583_v2, %v1844_v49  ;;  %1863 = vadd.xlane.f32.xlu1 %v1862_v8  ;;  %v1859_v50 = vsel %vm196_vm2, %v1853_v46, 0.0 }
 0x960   :  { %1860 = vadd.xlane.f32.xlu0 %v1859_v50  ;;  %v1856_v56 = vadd.f32 %v1850_v47, %v5765_v42 }
 0x961   :  { %v1855_v53 = vadd.f32 %v1845_v52, %v5760_v41 }
 0x962   :  { %v1868_v40 = vsel %vm196_vm2, %v1856_v56, 0.0 }
 0x963   :  { %v1865_v55 = vsel %vm196_vm2, %v1855_v53, 0.0 }
 0x964   :  { %1866 = vadd.xlane.f32.xlu0 %v1865_v55  ;;  %v2049_v55 = vld [vmem:[%s6629_s13 + $0x28] sm:$0xff] }
 0x968   :  { %1869 = vadd.xlane.f32.xlu0 %v1868_v40 }
 0x9ec   :  { %v1864_v37 = vpop.xlane.xlu1 %1863 }
 0x9ed   :  { %v1873_v57 = vmul.f32 0.03125, %v1864_v37  ;;  %v1861_v58 = vpop.xlane.xlu0 %1860 }
 0x9ee   :  { %v1872_v60 = vmul.f32 0.03125, %v1861_v58 }
 0x9ef   :  { %v1877_v61 = vsub.f32 %v1854_v45, %v1873_v57  ;;  %v2046_v45 = vld [vmem:[%s6629_s13 + $0x10] sm:$0xff] }
 0x9f0   :  { %v1876_v63 = vsub.f32 %v1853_v46, %v1872_v60  ;;  %v5301_v52 = vpack.c.bf16 %v2047_v44, %v2046_v45  ;;  %v2050_v60 = vld [vmem:[%s6629_s13 + $0x30] sm:$0xff] }
 0x9f1   :  { %v1867_v0 = vpop.xlane.xlu0 %1866  ;;  %v1881_v51 = vmul.f32 %v1877_v61, %v1877_v61 }
 0x9f2   :  { %v1874_v48 = vmul.f32 0.03125, %v1867_v0  ;;  %v1880_v54 = vmul.f32 %v1876_v63, %v1876_v63 }
 0x9f3   :  { %v1887_v41 = vsel %vm196_vm2, %v1881_v51, 0.0  ;;  %v2052_v51 = vld [vmem:[%s6629_s13 + $0x40] sm:$0xff] }
 0x9f4   :  { %v1878_v1 = vsub.f32 %v1855_v53, %v1874_v48  ;;  %1888 = vadd.xlane.f32.xlu0 %v1887_v41  ;;  %v1884_v42 = vsel %vm196_vm2, %v1880_v54, 0.0  ;;  %v2048_v53 = vld [vmem:[%s6629_s13 + $0x20] sm:$0xff]  ;;  %v2053_v48 = vld [vmem:[%s6629_s13 + $0x48] sm:$0xff]  ;;  %v2054_v41 = vld [vmem:[%s6629_s13 + $0x50] sm:$0xff] }
 0x9f5   :  { %1885 = vadd.xlane.f32.xlu1 %v1884_v42  ;;  %v1870_v3 = vpop.xlane.xlu0 %1869  ;;  %v5305_v57 = vpack.c.bf16 %v2049_v55, %v2048_v53  ;;  %v5313_v54 = vpack.c.bf16 %v2053_v48, %v2052_v51  ;;  %v4599_v48 = vld [vmem:[%s6667_s25 + $0x48] sm:$0xff] }
 0x9f6   :  { %v1875_v5 = vmul.f32 0.03125, %v1870_v3  ;;  %v1882_v7 = vmul.f32 %v1878_v1, %v1878_v1  ;;  %v2056_v3 = vld [vmem:[%s6629_s13 + $0x60] sm:$0xff] }
 0x9f8   :  { %v1879_v9 = vsub.f32 %v1856_v56, %v1875_v5  ;;  %v1890_v10 = vsel %vm196_vm2, %v1882_v7, 0.0  ;;  %v2057_v5 = vld [vmem:[%s6629_s13 + $0x68] sm:$0xff] }
 0x9f9   :  { %1891 = vadd.xlane.f32.xlu1 %v1890_v10  ;;  %v5321_v7 = vpack.c.bf16 %v2057_v5, %v2056_v3  ;;  %v2059_v10 = vld [vmem:[%s6629_s13 + $0x78] sm:$0xff]  ;;  %v4603_v5 = vld [vmem:[%s6667_s25 + $0x68] sm:$0xff] }
 0x9fa   :  { %v1883_v11 = vmul.f32 %v1879_v9, %v1879_v9 }
 0x9fc   :  { %v1893_v12 = vsel %vm196_vm2, %v1883_v11, 0.0 }
 0x9fd   :  { %1894 = vadd.xlane.f32.xlu0 %v1893_v12  ;;  %v4590_v12 = vld [vmem:[%s6632_s12] ss:$0 sm:$0xff] }
 0xa81   :  { %v1889_v22 = vpop.xlane.xlu0 %1888 }
 0xa82   :  { %v1897_v23 = vmul.f32 0.03125, %v1889_v22  ;;  %v1886_v24 = vpop.xlane.xlu1 %1885 }
 0xa83   :  { %v1896_v25 = vmul.f32 0.03125, %v1886_v24 }
 0xa84   :  { %v1901_v26 = vadd.f32 1e-05, %v1897_v23 }
 0xa85   :  { %v1900_v27 = vadd.f32 1e-05, %v1896_v25  ;;  %v4595_v25 = vld [vmem:[%s6633_s14] ss:$0 sm:$0xff] }
 0xa86   :  { %5479 = vrsqrt.f32 %v1901_v26  ;;  %v1892_v28 = vpop.xlane.xlu1 %1891 }
 0xa87   :  { %5481 = vrsqrt.f32 %v1900_v27  ;;  %v1898_v29 = vmul.f32 0.03125, %v1892_v28 }
 0xa89   :  { %v1902_v30 = vadd.f32 1e-05, %v1898_v29 }
 0xa8a   :  { %v1895_v31 = vpop.xlane.xlu0 %1894 }
 0xa8b   :  { %5483 = vrsqrt.f32 %v1902_v30  ;;  %v1899_v32 = vmul.f32 0.03125, %v1895_v31 }
 0xa8d   :  { %v1903_v34 = vadd.f32 1e-05, %v1899_v32 }
 0xa8f   :  { %5485 = vrsqrt.f32 %v1903_v34 }
 0xa90   :  { %v5480_v35 = vpop.eup %5479 }
 0xa91   :  { %v5482_v38 = vpop.eup %5481  ;;  %v1909_v2 = vmul.f32 %v5480_v35, %v1877_v61  ;;  %v2051_v61 = vld [vmem:[%s6629_s13 + $0x38] sm:$0xff] }
 0xa92   :  { %v1908_v4 = vmul.f32 %v5482_v38, %v1876_v63  ;;  %v5309_v0 = vpack.c.bf16 %v2051_v61, %v2050_v60 }
 0xa93   :  { %v1919_v43 = vmul.f32 %v4588_v36, %v1909_v2 }
 0xa94   :  { %v1918_v6 = vmul.f32 %v4588_v36, %v1908_v4 }
 0xa95   :  { %v5484_v46 = vpop.eup %5483  ;;  %v6018_v47 = vadd.f32 %v4589_v39, %v1919_v43 }
 0xa96   :  { %v6016_v49 = vadd.f32 %v4589_v39, %v1918_v6  ;;  %v1910_v8 = vmul.f32 %v5484_v46, %v1878_v1  ;;  %v2055_v1 = vld [vmem:[%s6629_s13 + $0x58] sm:$0xff] }
 0xa97   :  { %v5317_v42 = vpack.c.bf16 %v2055_v1, %v2054_v41  ;;  %v4598_v1 = vld [vmem:[%s6667_s25 + $0x40] sm:$0xff] }
 0xa98   :  { %5037 = vmatprep.mubr.msk.f32.mxu0 %vm196_vm2, %v6016_v49  ;;  %v1920_v50 = vmul.f32 %v4588_v36, %v1910_v8 }
 0xa99   :  { %v5486_v56 = vpop.eup %5485  ;;  %5038 = vmatmul.mubr.msk.f32.vlgmr.msra.gmra.mrb[28].mxu0 %vm196_vm2, %v6018_v47 }
 0xa9a   :  { %v6030_v40 = vadd.f32 %v4589_v39, %v1920_v50  ;;  %v1911_v37 = vmul.f32 %v5486_v56, %v1879_v9  ;;  %5300 = vmatpush3.bf16.msra.mxu0 %v5297_v21  ;;  %v2058_v9 = vld [vmem:[%s6629_s13 + $0x70] sm:$0xff] }
 0xa9b   :  { %5302 = vmatprep.subr.bf16.mxu0 %v5301_v52  ;;  %v5325_v11 = vpack.c.bf16 %v2059_v10, %v2058_v9  ;;  %v4602_v10 = vld [vmem:[%s6667_s25 + $0x60] sm:$0xff] }
 0xa9c   :  { %5040 = vmatprep.mubr.msk.f32.mxu0 %vm196_vm2, %v6030_v40  ;;  %v1921_v58 = vmul.f32 %v4588_v36, %v1911_v37 }
 0xa9e   :  { %v6040_v63 = vadd.f32 %v4589_v39, %v1921_v58  ;;  %5304 = vmatpush3.bf16.msra.mxu0 %v5301_v52 }
 0xa9f   :  { %5306 = vmatprep.subr.bf16.mxu0 %v5305_v57 }
 0xaa0   :  { %5041 = vmatmul.mubr.msk.f32.gmra.mrb[30].mxu0 %vm196_vm2, %v6040_v63 }
 0xaa2   :  { %5308 = vmatpush3.bf16.msra.mxu0 %v5305_v57 }
 0xaa3   :  { %5310 = vmatprep.subr.bf16.mxu0 %v5309_v0 }
 0xaa6   :  { %5312 = vmatpush3.bf16.msra.mxu0 %v5309_v0 }
 0xaa7   :  { %5314 = vmatprep.subr.bf16.mxu0 %v5313_v54 }
 0xaaa   :  { %5316 = vmatpush3.bf16.msra.mxu0 %v5313_v54  ;;  %v4601_v54 = vld [vmem:[%s6667_s25 + $0x58] sm:$0xff] }
 0xaab   :  { %5318 = vmatprep.subr.bf16.mxu0 %v5317_v42  ;;  %v5329_v41 = vpack.c.bf16 %v4601_v54, %v4599_v48 }
 0xaad   :  { %5330 = vmatprep.subr.bf16.mxu1 %v5329_v41 }
 0xaae   :  { %5320 = vmatpush3.bf16.msra.mxu0 %v5317_v42  ;;  %v4600_v42 = vld [vmem:[%s6667_s25 + $0x50] sm:$0xff] }
 0xaaf   :  { %5322 = vmatprep.subr.bf16.mxu0 %v5321_v7  ;;  %v5331_v3 = vpack.c.bf16 %v4600_v42, %v4598_v1 }
 0xab1   :  { %5332 = vmatpush1.bf16.msra.mxu1 %v5331_v3 }
 0xab2   :  { %5324 = vmatpush3.bf16.msra.mxu0 %v5321_v7  ;;  %v4605_v7 = vld [vmem:[%s6667_s25 + $0x78] sm:$0xff] }
 0xab3   :  { %5326 = vmatprep.subr.bf16.mxu0 %v5325_v11  ;;  %v5333_v9 = vpack.c.bf16 %v4605_v7, %v4603_v5 }
 0xab5   :  { %5334 = vmatprep.subr.bf16.mxu1 %v5333_v9 }
 0xab6   :  { %5328 = vmatpush3.bf16.msra.mxu0 %v5325_v11  ;;  %v4604_v11 = vld [vmem:[%s6667_s25 + $0x70] sm:$0xff] }
 0xab7   :  { %5096 = vmatprep.subr.mxu0 %v5547_v33 }
 0xb6c   :  { %v5039_v13 = vpop.f32.mrb[28].mxu0 }
 0xb6d   :  { %v2027_v14 = vadd.f32 %v5039_v13, %v4590_v12  ;;  %v2021_v15 = vpop.f32.mrb[29].mxu0 }
 0xb6e   :  { %v2022_v16 = vadd.f32 %v4590_v12, %v2021_v15 }
 0xb6f   :  { %v2041_v18 = vmax.f32 %v2027_v14, 0.0 }
 0xb70   :  { %v2040_v17 = vmax.f32 %v2022_v16, 0.0 }
 0xb72   :  { %5075 = vmatprep.mubr.f32.mxu0 %v2040_v17 }
 0xb73   :  { %v5042_v19 = vpop.f32.mrb[30].mxu0  ;;  %5076 = vmatmul.mubr.f32.vlgmr.msra.gmra.mrb[32].mxu0 %v2041_v18 }
 0xb74   :  { %v2037_v20 = vadd.f32 %v5042_v19, %v4590_v12  ;;  %v2031_v21 = vpop.f32.mrb[31].mxu0 }
 0xb75   :  { %v2032_v22 = vadd.f32 %v4590_v12, %v2031_v21  ;;  %v5335_v12 = vpack.c.bf16 %v4604_v11, %v4602_v10 }
 0xb76   :  { %v2043_v24 = vmax.f32 %v2037_v20, 0.0 }
 0xb77   :  { %v2042_v23 = vmax.f32 %v2032_v22, 0.0  ;;  %5336 = vmatpush1.bf16.msra.mxu1 %v5335_v12 }
 0xb78   :  { %5081 = vmatprep.subr.mxu1 %v5547_v33 }
 0xb79   :  { %5078 = vmatprep.mubr.f32.mxu0 %v2042_v23 }
 0xb7a   :  { %5079 = vmatmul.mubr.f32.gmra.mrb[34].mxu0 %v2043_v24 }
 0xb7b   :  { %5098 = vmatprep.mubr.msk.f32.mxu0 %vm5548_vm3, %v5547_v33 }
 0xc46   :  { %v5077_v26 = vpop.f32.mrb[32].mxu0 }
 0xc47   :  { %v2139_v27 = vadd.f32 %v5077_v26, %v4595_v25  ;;  %v2133_v28 = vpop.f32.mrb[33].mxu0 }
 0xc48   :  { %v2134_v29 = vadd.f32 %v4595_v25, %v2133_v28 }
 0xc49   :  { %v2153_v30 = vadd.f32 %v2139_v27, %v6018_v47  ;;  %v4596_v27 = vld [vmem:[%s6634_s9] ss:$0 sm:$0xff] }
 0xc4a   :  { %v2152_v31 = vadd.f32 %v2134_v29, %v6016_v49 }
 0xc4b   :  { %v2161_v32 = vsel %vm196_vm2, %v2153_v30, 0.0 }
 0xc4c   :  { %2162 = vadd.xlane.f32.xlu0 %v2161_v32  ;;  %v2158_v34 = vsel %vm196_vm2, %v2152_v31, 0.0 }
 0xc4d   :  { %2159 = vadd.xlane.f32.xlu1 %v2158_v34  ;;  %v5080_v35 = vpop.f32.mrb[34].mxu0 }
 0xc4e   :  { %v2149_v36 = vadd.f32 %v5080_v35, %v4595_v25  ;;  %v2143_v38 = vpop.f32.mrb[35].mxu0 }
 0xc4f   :  { %v2144_v2 = vadd.f32 %v4595_v25, %v2143_v38 }
 0xc50   :  { %v2155_v4 = vadd.f32 %v2149_v36, %v6040_v63 }
 0xc51   :  { %v2154_v39 = vadd.f32 %v2144_v2, %v6030_v40 }
 0xc52   :  { %v2167_v43 = vsel %vm196_vm2, %v2155_v4, 0.0 }
 0xc53   :  { %2168 = vadd.xlane.f32.xlu0 %v2167_v43  ;;  %v2164_v6 = vsel %vm196_vm2, %v2154_v39, 0.0 }
 0xc54   :  { %2165 = vadd.xlane.f32.xlu1 %v2164_v6 }
 0xcd9   :  { %v2163_v45 = vpop.xlane.xlu0 %2162 }
 0xcda   :  { %v2171_v44 = vmul.f32 0.03125, %v2163_v45  ;;  %v2160_v46 = vpop.xlane.xlu1 %2159 }
 0xcdb   :  { %v2170_v49 = vmul.f32 0.03125, %v2160_v46 }
 0xcdc   :  { %v2175_v8 = vsub.f32 %v2153_v30, %v2171_v44  ;;  %v4597_v30 = vld [vmem:[%s6635_s10] ss:$0 sm:$0xff] }
 0xcdd   :  { %v2174_v47 = vsub.f32 %v2152_v31, %v2170_v49 }
 0xcde   :  { %v2179_v52 = vmul.f32 %v2175_v8, %v2175_v8 }
 0xcdf   :  { %v2178_v50 = vmul.f32 %v2174_v47, %v2174_v47 }
 0xce0   :  { %v2169_v53 = vpop.xlane.xlu0 %2168  ;;  %v2185_v55 = vsel %vm196_vm2, %v2179_v52, 0.0 }
 0xce1   :  { %v2173_v56 = vmul.f32 0.03125, %v2169_v53  ;;  %2186 = vadd.xlane.f32.xlu0 %v2185_v55  ;;  %v2166_v40 = vpop.xlane.xlu1 %2165  ;;  %v2182_v37 = vsel %vm196_vm2, %v2178_v50, 0.0 }
 0xce2   :  { %v2172_v57 = vmul.f32 0.03125, %v2166_v40  ;;  %2183 = vadd.xlane.f32.xlu1 %v2182_v37 }
 0xce3   :  { %v2177_v58 = vsub.f32 %v2155_v4, %v2173_v56 }
 0xce4   :  { %v2176_v60 = vsub.f32 %v2154_v39, %v2172_v57 }
 0xce5   :  { %v2181_v61 = vmul.f32 %v2177_v58, %v2177_v58 }
 0xce6   :  { %v2180_v63 = vmul.f32 %v2176_v60, %v2176_v60 }
 0xce7   :  { %v2191_v0 = vsel %vm196_vm2, %v2181_v61, 0.0 }
 0xce8   :  { %2192 = vadd.xlane.f32.xlu0 %v2191_v0  ;;  %v2188_v51 = vsel %vm196_vm2, %v2180_v63, 0.0 }
 0xce9   :  { %2189 = vadd.xlane.f32.xlu1 %v2188_v51 }
 0xd6e   :  { %v2187_v13 = vpop.xlane.xlu0 %2186 }
 0xd6f   :  { %v2195_v14 = vmul.f32 0.03125, %v2187_v13  ;;  %v2184_v15 = vpop.xlane.xlu1 %2183 }
 0xd70   :  { %v2194_v16 = vmul.f32 0.03125, %v2184_v15 }
 0xd71   :  { %v2199_v17 = vadd.f32 1e-05, %v2195_v14 }
 0xd72   :  { %v2198_v18 = vadd.f32 1e-05, %v2194_v16 }
 0xd73   :  { %5487 = vrsqrt.f32 %v2199_v17 }
 0xd74   :  { %5489 = vrsqrt.f32 %v2198_v18 }
 0xd75   :  { %v2193_v19 = vpop.xlane.xlu0 %2192 }
 0xd76   :  { %v2197_v20 = vmul.f32 0.03125, %v2193_v19  ;;  %v2190_v21 = vpop.xlane.xlu1 %2189 }
 0xd77   :  { %v2196_v22 = vmul.f32 0.03125, %v2190_v21 }
 0xd78   :  { %v2201_v23 = vadd.f32 1e-05, %v2197_v20 }
 0xd79   :  { %v2200_v24 = vadd.f32 1e-05, %v2196_v22 }
 0xd7a   :  { %5491 = vrsqrt.f32 %v2201_v23 }
 0xd7b   :  { %5493 = vrsqrt.f32 %v2200_v24 }
 0xd7d   :  { %v5488_v25 = vpop.eup %5487 }
 0xd7e   :  { %v5490_v26 = vpop.eup %5489  ;;  %v2207_v29 = vmul.f32 %v5488_v25, %v2175_v8 }
 0xd7f   :  { %v2206_v28 = vmul.f32 %v5490_v26, %v2174_v47 }
 0xd80   :  { %v2217_v34 = vmul.f32 %v4596_v27, %v2207_v29 }
 0xd81   :  { %v2216_v31 = vmul.f32 %v4596_v27, %v2206_v28 }
 0xd82   :  { %v6125_v2 = vadd.f32 %v4597_v30, %v2217_v34 }
 0xd83   :  { %v6120_v32 = vadd.f32 %v4597_v30, %v2216_v31 }
 0xd84   :  { %v5492_v35 = vpop.eup %5491 }
 0xd85   :  { %v5494_v36 = vpop.eup %5493  ;;  %4606 = vmatmul.mubr.msk.f32.vlgmr.msra.gmra.mrb[24].mxu1 %vm196_vm2, %v6120_v32  ;;  %v2209_v4 = vmul.f32 %v5492_v35, %v2177_v58 }
 0xd86   :  { %2321 = vmatprep.mubr.f32.mxu1 %v5547_v33  ;;  %v2208_v38 = vmul.f32 %v5494_v36, %v2176_v60 }
 0xd87   :  { %v2219_v6 = vmul.f32 %v4596_v27, %v2209_v4 }
 0xd88   :  { %v2218_v39 = vmul.f32 %v4596_v27, %v2208_v38 }
 0xd89   :  { %4607 = vmatmul.mubr.msk.f32.gmra.mrb[26].mxu1 %vm196_vm2, %v6125_v2  ;;  %v6135_v45 = vadd.f32 %v4597_v30, %v2219_v6 }
 0xd8a   :  { %2327 = vmatprep.mubr.f32.mxu1 %v5547_v33  ;;  %v6130_v43 = vadd.f32 %v4597_v30, %v2218_v39 }
 0xd8d   :  { %4608 = vmatmul.mubr.msk.f32.gmra.mrb[28].mxu1 %vm196_vm2, %v6130_v43 }
 0xd8e   :  { %2333 = vmatprep.mubr.f32.mxu1 %v5547_v33 }
 0xd91   :  { %4609 = vmatmul.mubr.msk.f32.gmra.mrb[30].mxu1 %vm196_vm2, %v6135_v45 }
 0xd92   :  { %5083 = vmatprep.mubr.msk.f32.mxu1 %vm5548_vm3, %v5547_v33 }
 0xe58   :  { %v2317_v44 = vpop.f32.mrb[24].mxu1 }
 0xe59   :  { %v6141_v46 = vmul.f32 0.4204482, %v2317_v44  ;;  %v6143_v49 = vpop.f32.mrb[25].mxu1 }
 0xe5b   :  { %2345 = vrot.lane.b32.xlu1 %v6141_v46, %s5549_s2 }
 0xe5c   :  { %v2323_v8 = vpop.f32.mrb[26].mxu1 }
 0xe5d   :  { %v6147_v47 = vmul.f32 0.4204482, %v2323_v8  ;;  %v6149_v52 = vpop.f32.mrb[27].mxu1 }
 0xe5f   :  { %2422 = vrot.lane.b32.xlu0 %v6147_v47, %s5549_s2 }
 0xe60   :  { %v2329_v50 = vpop.f32.mrb[28].mxu1 }
 0xe61   :  { %v6153_v53 = vmul.f32 0.4204482, %v2329_v50  ;;  %v6155_v55 = vpop.f32.mrb[29].mxu1 }
 0xe63   :  { %2499 = vrot.lane.b32.xlu1 %v6153_v53, %s5549_s2 }
 0xe64   :  { %v2335_v56 = vpop.f32.mrb[30].mxu1 }
 0xe65   :  { %v6159_v40 = vmul.f32 0.4204482, %v2335_v56  ;;  %v6161_v37 = vpop.f32.mrb[31].mxu1 }
 0xe67   :  { %2576 = vrot.lane.b32.xlu1 %v6159_v40, %s5549_s2  ;;  %s6672_s2 = smov 32  }
 0xecd   :  { %v2346_v57 = vpop.permute.xlu1 %2345 }
 0xece   :  { %5082 = vmatpush3.xpose.msk.msra.mxu1 %vm196_vm2, %v2346_v57 }
 0xecf   :  { %5086 = vmatprep.subr.mxu1 %v5547_v33 }
 0xed1   :  { %v2423_v58 = vpop.permute.xlu0 %2422  ;;  %5084 = vmatmul.mubr.msk.f32.vlgmr.msra.gmra.mrb[32].mxu1 %vm196_vm2, %v6141_v46 }
 0xed2   :  { %5087 = vmatpush3.xpose.msk.msra.mxu1 %vm196_vm2, %v2423_v58  ;;  %5088 = vmatprep.mubr.msk.f32.mxu1 %vm5548_vm3, %v5547_v33 }
 0xed3   :  { %5091 = vmatprep.subr.mxu1 %v5547_v33 }
 0xed5   :  { %5089 = vmatmul.mubr.msk.f32.vlgmr.msra.gmra.mrb[34].mxu1 %vm196_vm2, %v6147_v47  ;;  %v2500_v60 = vpop.permute.xlu1 %2499 }
 0xed6   :  { %5092 = vmatpush3.xpose.msk.msra.mxu1 %vm196_vm2, %v2500_v60  ;;  %5093 = vmatprep.mubr.msk.f32.mxu1 %vm5548_vm3, %v5547_v33 }
 0xed7   :  { %5101 = vmatprep.subr.mxu1 %v5547_v33 }
 0xed9   :  { %5094 = vmatmul.mubr.msk.f32.vlgmr.msra.gmra.mrb[36].mxu1 %vm196_vm2, %v6153_v53  ;;  %v2577_v61 = vpop.permute.xlu1 %2576 }
 0xeda   :  { %5097 = vmatpush3.xpose.msk.msra.mxu0 %vm196_vm2, %v2577_v61  ;;  %5102 = vmatpush3.msra.mxu1 %v6143_v49 }
 0xedb   :  { %5106 = vmatprep.subr.mxu0 %v5547_v33  ;;  %5103 = vmatprep.mubr.msk.f32.mxu1 %vm5548_vm3, %v5547_v33 }
 0xedc   :  { %5111 = vmatprep.subr.mxu1 %v5547_v33 }
 0xedd   :  { %5099 = vmatmul.mubr.msk.f32.vlgmr.msra.gmra.mrb[36].mxu0 %vm196_vm2, %v6159_v40 }
 0xede   :  { %5107 = vmatpush3.msra.mxu0 %v6149_v52  ;;  %5108 = vmatprep.mubr.msk.f32.mxu0 %vm5548_vm3, %v5547_v33 }
 0xedf   :  { %5116 = vmatprep.subr.mxu0 %v5547_v33 }
 0xfa4   :  { %v2417_v63 = vpop.f32.mrb[32].mxu1 }
 0xfa5   :  { %v2418_v0 = vadd.f32 %v2417_v63, %v5826_v62  ;;  %v5085_v51 = vpop.f32.mrb[33].mxu1 }
 0xfa7   :  { %v2652_v48 = vsel %vm719_vm5, %v2418_v0, -inf }
 0xfa8   :  { %2653 = vmax.xlane.f32.xlu0 %v2652_v48  ;;  %v2494_v54 = vpop.f32.mrb[34].mxu1 }
 0xfa9   :  { %v2495_v41 = vadd.f32 %v2494_v54, %v5826_v62  ;;  %v5090_v1 = vpop.f32.mrb[35].mxu1 }
 0xfab   :  { %v2655_v42 = vsel %vm719_vm5, %v2495_v41, -inf }
 0xfac   :  { %2656 = vmax.xlane.f32.xlu1 %v2655_v42  ;;  %v2571_v3 = vpop.f32.mrb[36].mxu1 }
 0xfad   :  { %v2572_v5 = vadd.f32 %v2571_v3, %v5826_v62  ;;  %v5095_v7 = vpop.f32.mrb[37].mxu1 }
 0xfaf   :  { %v2658_v9 = vsel %vm719_vm5, %v2572_v5, -inf }
 0xfb0   :  { %2659 = vmax.xlane.f32.xlu0 %v2658_v9  ;;  %v2648_v10 = vpop.f32.mrb[36].mxu0 }
 0xfb1   :  { %v2649_v11 = vadd.f32 %v2648_v10, %v5826_v62  ;;  %v5100_v12 = vpop.f32.mrb[37].mxu0 }
 0xfb3   :  { %v2661_v13 = vsel %vm719_vm5, %v2649_v11, -inf }
 0xfb4   :  { %2662 = vmax.xlane.f32.xlu0 %v2661_v13 }
 0xfbd   :  { %2990 = vrot.lane.b32.xlu1 %v6141_v46, %s6672_s2 }
0x1035   :  { %v2654_v14 = vpop.xlane.xlu0 %2653 }
0x1036   :  { %v2664_v15 = vsub.f32 %v2418_v0, %v2654_v14 }
0x1038   :  { %v2668_v16 = vmul.f32 1.442695, %v2664_v15 }
0x1039   :  { %v2657_v17 = vpop.xlane.xlu1 %2656 }
0x103a   :  { %5495 = vpow2.f32 %v2668_v16  ;;  %v2665_v18 = vsub.f32 %v2495_v41, %v2657_v17 }
0x103c   :  { %v2670_v19 = vmul.f32 1.442695, %v2665_v18 }
0x103d   :  { %v2660_v24 = vpop.xlane.xlu0 %2659  ;;  %v2991_v36 = vpop.permute.xlu1 %2990 }
0x103e   :  { %5497 = vpow2.f32 %v2670_v19  ;;  %v2666_v26 = vsub.f32 %v2572_v5, %v2660_v24 }
0x1040   :  { %v2672_v28 = vmul.f32 1.442695, %v2666_v26 }
0x1041   :  { %v2663_v25 = vpop.xlane.xlu0 %2662 }
0x1042   :  { %v2667_v27 = vsub.f32 %v2649_v11, %v2663_v25  ;;  %5499 = vpow2.f32 %v2672_v28 }
0x1044   :  { %v5496_v20 = vpop.eup %5495  ;;  %v2674_v29 = vmul.f32 1.442695, %v2667_v27 }
0x1045   :  { %v2676_v21 = vsel %vm719_vm5, %v5496_v20, 0.0 }
0x1046   :  { %2677 = vadd.xlane.f32.xlu1 %v2676_v21  ;;  %5501 = vpow2.f32 %v2674_v29 }
0x1048   :  { %v5498_v22 = vpop.eup %5497 }
0x1049   :  { %v2679_v23 = vsel %vm719_vm5, %v5498_v22, 0.0 }
0x104a   :  { %2680 = vadd.xlane.f32.xlu0 %v2679_v23 }
0x104c   :  { %v5500_v30 = vpop.eup %5499 }
0x104d   :  { %v2682_v34 = vsel %vm719_vm5, %v5500_v30, 0.0 }
0x1050   :  { %v5502_v31 = vpop.eup %5501 }
0x1051   :  { %v2685_v35 = vsel %vm719_vm5, %v5502_v31, 0.0 }
0x1057   :  { %2988 = vrot.lane.b32.xlu1 %v6141_v46, %s6673_s5 }
0x105b   :  { %3066 = vrot.lane.b32.xlu1 %v6147_v47, %s6673_s5 }
0x1060   :  { %3068 = vrot.lane.b32.xlu0 %v6147_v47, %s6672_s2 }
0x107f   :  { %2683 = vadd.xlane.f32.xlu1 %v2682_v34  ;;  %2686 = vadd.xlane.f32.xlu0 %v2685_v35 }
0x1090   :  { %3224 = vrot.lane.b32.xlu1 %v6159_v40, %s6672_s2 }
0x1094   :  { %3222 = vrot.lane.b32.xlu1 %v6159_v40, %s6673_s5 }
0x1095   :  { %3146 = vrot.lane.b32.xlu0 %v6153_v53, %s6672_s2 }
0x1099   :  { %3144 = vrot.lane.b32.xlu0 %v6153_v53, %s6673_s5 }
0x10d3   :  { %v2678_v38 = vpop.xlane.xlu1 %2677 }
0x10d4   :  { %5503 = vrcp.f32 %v2678_v38 }
0x10d7   :  { %v2681_v4 = vpop.xlane.xlu0 %2680  ;;  %v2989_v8 = vpop.permute.xlu1 %2988 }
0x10d8   :  { %5505 = vrcp.f32 %v2681_v4 }
0x10db   :  { %v3069_v47 = vpop.permute.xlu0 %3068  ;;  %v3067_v50 = vpop.permute.xlu1 %3066 }
0x10de   :  { %v5504_v39 = vpop.eup %5503 }
0x10df   :  { %v2692_v6 = vmul.f32 %v5504_v39, %v5496_v20 }
0x10e1   :  { %5104 = vmatmul.mubr.msk.f32.vlgmr.msra.gmra.mrb[38].mxu1 %vm719_vm5, %v2692_v6 }
0x10e2   :  { %v5506_v44 = vpop.eup %5505  ;;  %5112 = vmatpush3.msra.mxu1 %v6155_v55  ;;  %5113 = vmatprep.mubr.msk.f32.mxu1 %vm5548_vm3, %v5547_v33 }
0x10e3   :  { %v2693_v46 = vmul.f32 %v5506_v44, %v5498_v22  ;;  %5121 = vmatprep.subr.mxu1 %v5547_v33 }
0x10e5   :  { %5109 = vmatmul.mubr.msk.f32.vlgmr.msra.gmra.mrb[38].mxu0 %vm719_vm5, %v2693_v46 }
0x10e6   :  { %5117 = vmatpush3.msra.mxu0 %v6161_v37  ;;  %5118 = vmatprep.mubr.msk.f32.mxu0 %vm5548_vm3, %v5547_v33 }
0x10e7   :  { %5126 = vmatprep.subr.mxu0 %v5547_v33 }
0x110c   :  { %v2687_v53 = vpop.xlane.xlu0 %2686  ;;  %v2684_v56 = vpop.xlane.xlu1 %2683 }
0x110d   :  { %5507 = vrcp.f32 %v2687_v53 }
0x110e   :  { %5509 = vrcp.f32 %v2684_v56 }
0x1110   :  { %v3225_v61 = vpop.permute.xlu1 %3224  ;;  %v3147_v63 = vpop.permute.xlu0 %3146 }
0x1114   :  { %v3223_v0 = vpop.permute.xlu1 %3222  ;;  %v3145_v51 = vpop.permute.xlu0 %3144 }
0x1117   :  { %v5508_v40 = vpop.eup %5507 }
0x1118   :  { %v5510_v57 = vpop.eup %5509  ;;  %v2695_v58 = vmul.f32 %v5508_v40, %v5502_v31 }
0x1119   :  { %v2694_v60 = vmul.f32 %v5510_v57, %v5500_v30 }
0x111a   :  { %5119 = vmatmul.mubr.msk.f32.vlgmr.msra.gmra.mrb[40].mxu0 %vm719_vm5, %v2695_v58 }
0x111b   :  { %5114 = vmatmul.mubr.msk.f32.vlgmr.msra.gmra.mrb[40].mxu1 %vm719_vm5, %v2694_v60  ;;  %5127 = vmatpush3.xpose.msk.msra.mxu0 %vm196_vm2, %v3069_v47 }
0x111c   :  { %5122 = vmatpush3.xpose.msk.msra.mxu1 %vm196_vm2, %v2991_v36  ;;  %5123 = vmatprep.mubr.msk.f32.mxu1 %vm5548_vm3, %v5547_v33 }
0x111d   :  { %5128 = vmatprep.mubr.msk.f32.mxu0 %vm5548_vm3, %v5547_v33  ;;  %5131 = vmatprep.subr.mxu1 %v5547_v33 }
0x111e   :  { %5136 = vmatprep.subr.mxu0 %v5547_v33  ;;  %5129 = vmatmul.mubr.msk.f32.vlgmr.msra.gmra.mrb[42].mxu0 %vm196_vm2, %v3067_v50 }
0x111f   :  { %5124 = vmatmul.mubr.msk.f32.vlgmr.msra.gmra.mrb[42].mxu1 %vm196_vm2, %v2989_v8  ;;  %5137 = vmatpush3.xpose.msk.msra.mxu0 %vm196_vm2, %v3225_v61 }
0x1120   :  { %5132 = vmatpush3.xpose.msk.msra.mxu1 %vm196_vm2, %v3147_v63  ;;  %5133 = vmatprep.mubr.msk.f32.mxu1 %vm5548_vm3, %v5547_v33 }
0x1121   :  { %5138 = vmatprep.mubr.msk.f32.mxu0 %vm5548_vm3, %v5547_v33  ;;  %5141 = vmatprep.subr.mxu1 %v5547_v33 }
0x1122   :  { %5139 = vmatmul.mubr.msk.f32.vlgmr.msra.gmra.mrb[44].mxu0 %vm196_vm2, %v3223_v0  ;;  %5146 = vmatprep.subr.mxu0 %v5547_v33 }
0x1123   :  { %5134 = vmatmul.mubr.msk.f32.vlgmr.msra.gmra.mrb[44].mxu1 %vm196_vm2, %v3145_v51  ;;  %5148 = vmatprep.mubr.msk.f32.mxu0 %vm5548_vm3, %v5547_v33 }
0x1124   :  { %5143 = vmatprep.mubr.msk.f32.mxu1 %vm5548_vm3, %v5547_v33 }
0x11b4   :  { %v6257_v48 = vpop.f32.mrb[38].mxu1 }
0x11b5   :  { %v5105_v54 = vpop.f32.mrb[39].mxu1 }
0x11b8   :  { %v6259_v41 = vpop.f32.mrb[38].mxu0 }
0x11b9   :  { %v5110_v1 = vpop.f32.mrb[39].mxu0 }
0x11ed   :  { %v6261_v42 = vpop.f32.mrb[40].mxu0 }
0x11ee   :  { %v6263_v3 = vpop.f32.mrb[40].mxu1  ;;  %v5120_v5 = vpop.f32.mrb[41].mxu0 }
0x11ef   :  { %v5115_v7 = vpop.f32.mrb[41].mxu1  ;;  %v4634_v5 = vld [vmem:[%s6669_s11 + $0x40] sm:$0xff] }
0x11f0   :  { %v4635_v7 = vld [vmem:[%s6669_s11 + $0x48] sm:$0xff] }
0x11f1   :  { %v3140_v9 = vpop.f32.mrb[42].mxu0 }
0x11f2   :  { %v3062_v10 = vpop.f32.mrb[42].mxu1  ;;  %v3141_v11 = vadd.f32 %v3140_v9, %v5826_v62  ;;  %v5130_v12 = vpop.f32.mrb[43].mxu0  ;;  %v4636_v9 = vld [vmem:[%s6669_s11 + $0x50] sm:$0xff] }
0x11f3   :  { %v3063_v13 = vadd.f32 %v3062_v10, %v5826_v62  ;;  %v5125_v14 = vpop.f32.mrb[43].mxu1  ;;  %v5337_v10 = vpack.c.bf16 %v4635_v7, %v4634_v5 }
0x11f4   :  { %v3303_v15 = vsel %vm719_vm5, %v3141_v11, -inf  ;;  %v4639_v14 = vld [vmem:[%s6669_s11 + $0x68] sm:$0xff] }
0x11f5   :  { %3304 = vmax.xlane.f32.xlu1 %v3303_v15  ;;  %v3300_v16 = vsel %vm719_vm5, %v3063_v13, -inf  ;;  %v3296_v17 = vpop.f32.mrb[44].mxu0 }
0x11f6   :  { %3301 = vmax.xlane.f32.xlu0 %v3300_v16  ;;  %v3218_v18 = vpop.f32.mrb[44].mxu1  ;;  %v5140_v19 = vpop.f32.mrb[45].mxu0  ;;  %v3297_v22 = vadd.f32 %v3296_v17, %v5826_v62  ;;  %v4640_v16 = vld [vmem:[%s6669_s11 + $0x70] sm:$0xff]  ;;  %v4641_v17 = vld [vmem:[%s6669_s11 + $0x78] sm:$0xff] }
0x11f7   :  { %v3219_v20 = vadd.f32 %v3218_v18, %v5826_v62  ;;  %v5135_v21 = vpop.f32.mrb[45].mxu1  ;;  %v5349_v18 = vpack.c.bf16 %v4641_v17, %v4640_v16  ;;  %v4662_v16 = vld [vmem:[%s6629_s13 + $0x80] sm:$0xff]  ;;  %v4663_v17 = vld [vmem:[%s6629_s13 + $0x88] sm:$0xff] }
0x11f8   :  { %v3309_v24 = vsel %vm719_vm5, %v3297_v22, -inf }
0x11f9   :  { %v3306_v23 = vsel %vm719_vm5, %v3219_v20, -inf }
0x11fa   :  { %3307 = vmax.xlane.f32.xlu0 %v3306_v23 }
0x11fe   :  { %3310 = vmax.xlane.f32.xlu0 %v3309_v24 }
0x1206   :  { %3345 = vrot.lane.b32.xlu1 %v6143_v49, %s6673_s5 }
0x1282   :  { %v3305_v25 = vpop.xlane.xlu1 %3304 }
0x1283   :  { %v3302_v26 = vpop.xlane.xlu0 %3301  ;;  %v3313_v27 = vsub.f32 %v3141_v11, %v3305_v25  ;;  %v4637_v11 = vld [vmem:[%s6669_s11 + $0x58] sm:$0xff] }
0x1284   :  { %v3312_v28 = vsub.f32 %v3063_v13, %v3302_v26  ;;  %v5341_v12 = vpack.c.bf16 %v4637_v11, %v4636_v9  ;;  %v4638_v13 = vld [vmem:[%s6669_s11 + $0x60] sm:$0xff]  ;;  %v4653_v11 = vld [vmem:[%s6671_s27 + $0x28] sm:$0xff] }
0x1285   :  { %v3318_v29 = vmul.f32 1.442695, %v3313_v27  ;;  %v5345_v15 = vpack.c.bf16 %v4639_v14, %v4638_v13  ;;  %v4654_v13 = vld [vmem:[%s6671_s27 + $0x30] sm:$0xff]  ;;  %v4655_v14 = vld [vmem:[%s6671_s27 + $0x38] sm:$0xff] }
0x1286   :  { %v3316_v30 = vmul.f32 1.442695, %v3312_v28  ;;  %v3346_v31 = vpop.permute.xlu1 %3345 }
0x1287   :  { %5511 = vpow2.f32 %v3318_v29  ;;  %v3308_v34 = vpop.xlane.xlu0 %3307  ;;  %5142 = vmatpush3.msra.mxu1 %v3346_v31 }
0x1288   :  { %5513 = vpow2.f32 %v3316_v30  ;;  %v3314_v62 = vsub.f32 %v3219_v20, %v3308_v34  ;;  %5151 = vmatprep.subr.mxu1 %v5547_v33 }
0x128a   :  { %v3320_v35 = vmul.f32 1.442695, %v3314_v62 }
0x128b   :  { %v3311_v36 = vpop.xlane.xlu0 %3310 }
0x128c   :  { %5515 = vpow2.f32 %v3320_v35  ;;  %v3315_v38 = vsub.f32 %v3297_v22, %v3311_v36 }
0x128e   :  { %v3322_v4 = vmul.f32 1.442695, %v3315_v38 }
0x1290   :  { %5517 = vpow2.f32 %v3322_v4 }
0x1291   :  { %v5512_v49 = vpop.eup %5511 }
0x1292   :  { %v5514_v39 = vpop.eup %5513  ;;  %v3327_v6 = vsel %vm719_vm5, %v5512_v49, 0.0 }
0x1293   :  { %v3324_v44 = vsel %vm719_vm5, %v5514_v39, 0.0  ;;  %3328 = vadd.xlane.f32.xlu0 %v3327_v6 }
0x1294   :  { %3325 = vadd.xlane.f32.xlu1 %v3324_v44 }
0x1296   :  { %v5516_v46 = vpop.eup %5515 }
0x1297   :  { %v3330_v8 = vsel %vm719_vm5, %v5516_v46, 0.0 }
0x1298   :  { %3331 = vadd.xlane.f32.xlu1 %v3330_v8 }
0x129a   :  { %v5518_v47 = vpop.eup %5517 }
0x129b   :  { %v3333_v50 = vsel %vm719_vm5, %v5518_v47, 0.0 }
0x129c   :  { %3334 = vadd.xlane.f32.xlu0 %v3333_v50 }
0x12a9   :  { %3499 = vrot.lane.b32.xlu1 %v6155_v55, %s6673_s5 }
0x12ad   :  { %3576 = vrot.lane.b32.xlu1 %v6161_v37, %s6673_s5 }
0x12b2   :  { %3422 = vrot.lane.b32.xlu0 %v6149_v52, %s6673_s5 }
0x1320   :  { %v3329_v53 = vpop.xlane.xlu0 %3328 }
0x1321   :  { %5519 = vrcp.f32 %v3329_v53  ;;  %v3326_v56 = vpop.xlane.xlu1 %3325 }
0x1322   :  { %5521 = vrcp.f32 %v3326_v56 }
0x1325   :  { %v3332_v40 = vpop.xlane.xlu1 %3331 }
0x1326   :  { %5523 = vrcp.f32 %v3332_v40 }
0x1329   :  { %v3335_v57 = vpop.xlane.xlu0 %3334  ;;  %v3500_v58 = vpop.permute.xlu1 %3499 }
0x132a   :  { %5525 = vrcp.f32 %v3335_v57 }
0x132b   :  { %v5520_v60 = vpop.eup %5519 }
0x132c   :  { %v5522_v61 = vpop.eup %5521  ;;  %v3341_v63 = vmul.f32 %v5520_v60, %v5512_v49 }
0x132d   :  { %v3340_v0 = vmul.f32 %v5522_v61, %v5514_v39  ;;  %v3423_v55 = vpop.permute.xlu0 %3422  ;;  %v3577_v37 = vpop.permute.xlu1 %3576 }
0x132e   :  { %5147 = vmatpush3.msra.mxu0 %v3423_v55 }
0x132f   :  { %5144 = vmatmul.mubr.msk.f32.vlgmr.msra.gmra.mrb[46].mxu1 %vm719_vm5, %v3340_v0  ;;  %5149 = vmatmul.mubr.msk.f32.vlgmr.msra.gmra.mrb[46].mxu0 %vm719_vm5, %v3341_v63 }
0x1330   :  { %v5524_v52 = vpop.eup %5523  ;;  %5152 = vmatpush3.msra.mxu1 %v3500_v58  ;;  %5156 = vmatprep.subr.mxu0 %v5547_v33 }
0x1331   :  { %v3342_v51 = vmul.f32 %v5524_v52, %v5516_v46  ;;  %5157 = vmatpush3.msra.mxu0 %v3577_v37  ;;  %5153 = vmatprep.mubr.msk.f32.mxu1 %vm5548_vm3, %v5547_v33 }
0x1332   :  { %5158 = vmatprep.mubr.msk.f32.mxu0 %vm5548_vm3, %v5547_v33  ;;  %5338 = vmatprep.subr.bf16.mxu1 %v5337_v10 }
0x1333   :  { %5154 = vmatmul.mubr.msk.f32.vlgmr.msra.gmra.mrb[48].mxu1 %vm719_vm5, %v3342_v51 }
0x1334   :  { %v5526_v54 = vpop.eup %5525  ;;  %5340 = vmatpush3.bf16.msra.mxu1 %v5337_v10  ;;  %v4652_v10 = vld [vmem:[%s6671_s27 + $0x20] sm:$0xff] }
0x1335   :  { %v3343_v1 = vmul.f32 %v5526_v54, %v5518_v47  ;;  %5342 = vmatprep.subr.bf16.mxu1 %v5341_v12 }
0x1337   :  { %5159 = vmatmul.mubr.msk.f32.vlgmr.msra.gmra.mrb[48].mxu0 %vm719_vm5, %v3343_v1 }
0x1338   :  { %5344 = vmatpush3.bf16.msra.mxu1 %v5341_v12  ;;  %v5353_v12 = vpack.c.bf16 %v4653_v11, %v4652_v10 }
0x1339   :  { %5346 = vmatprep.subr.bf16.mxu1 %v5345_v15 }
0x133a   :  { %5354 = vmatprep.subr.bf16.mxu0 %v5353_v12 }
0x133b   :  { %5356 = vmatpush3.bf16.msra.mxu0 %v5353_v12 }
0x133c   :  { %5348 = vmatpush3.bf16.msra.mxu1 %v5345_v15  ;;  %v5357_v15 = vpack.c.bf16 %v4655_v14, %v4654_v13 }
0x133d   :  { %5350 = vmatprep.subr.bf16.mxu1 %v5349_v18 }
0x133e   :  { %5358 = vmatprep.subr.bf16.mxu0 %v5357_v15 }
0x133f   :  { %5360 = vmatpush3.bf16.msra.mxu0 %v5357_v15 }
0x1340   :  { %5352 = vmatpush3.bf16.msra.mxu1 %v5349_v18  ;;  %v5361_v18 = vpack.c.bf16 %v4663_v17, %v4662_v16 }
0x1342   :  { %5362 = vmatprep.subr.bf16.mxu0 %v5361_v18 }
0x1402   :  { %v3417_v19 = vpop.f32.mrb[46].mxu1  ;;  %v3494_v20 = vpop.f32.mrb[46].mxu0 }
0x1403   :  { %3658 = vrot.lane.b32.xlu1 %v3494_v20, %s6672_s2  ;;  %v5150_v21 = vpop.f32.mrb[47].mxu0  ;;  %3656 = vrot.lane.b32.xlu0 %v3417_v19, %s6672_s2  ;;  %v5145_v22 = vpop.f32.mrb[47].mxu1 }
0x1406   :  { %v3571_v23 = vpop.f32.mrb[48].mxu1 }
0x1407   :  { %3660 = vrot.lane.b32.xlu0 %v3571_v23, %s6672_s2  ;;  %v5155_v24 = vpop.f32.mrb[49].mxu1 }
0x140a   :  { %v3648_v25 = vpop.f32.mrb[48].mxu0 }
0x140b   :  { %3662 = vrot.lane.b32.xlu1 %v3648_v25, %s6672_s2  ;;  %v5160_v26 = vpop.f32.mrb[49].mxu0 }
0x1475   :  { %v3657_v27 = vpop.permute.xlu0 %3656  ;;  %v3659_v28 = vpop.permute.xlu1 %3658 }
0x1476   :  { %v3668_v29 = vsel %vm196_vm2, %v6257_v48, %v3657_v27  ;;  %v3669_v30 = vsel %vm196_vm2, %v6259_v41, %v3659_v28  ;;  %v4643_v48 = vld [vmem:[%s6670_s0 + $0x1] ss:$0 sm:$0xff] }
0x1477   :  { %5177 = vmatprep.mubr.msk.f32.mxu1 %vm1755_vm6, %v3668_v29 }
0x1478   :  { %5178 = vmatmul.mubr.msk.f32.vlgmr.msra.gmra.mrb[50].mxu1 %vm1755_vm6, %v3669_v30 }
0x1479   :  { %v3661_v31 = vpop.permute.xlu0 %3660 }
0x147a   :  { %v3670_v34 = vsel %vm196_vm2, %v6263_v3, %v3661_v31 }
0x147b   :  { %5180 = vmatprep.mubr.msk.f32.mxu1 %vm1755_vm6, %v3670_v34  ;;  %v4650_v34 = vld [vmem:[%s6630_s7 + $0x1] ss:$0 sm:$0xff] }
0x147d   :  { %v3663_v62 = vpop.permute.xlu1 %3662 }
0x147e   :  { %v3671_v35 = vsel %vm196_vm2, %v6261_v42, %v3663_v62 }
0x147f   :  { %5181 = vmatmul.mubr.msk.f32.gmra.mrb[52].mxu1 %vm1755_vm6, %v3671_v35 }
0x154b   :  { %v5179_v41 = vpop.f32.mrb[50].mxu1 }
0x154c   :  { %v3773_v36 = vadd.f32 %v5179_v41, %v4643_v48  ;;  %v3767_v38 = vpop.f32.mrb[51].mxu1  ;;  %v4651_v41 = vld [vmem:[%s6631_s8 + $0x1] ss:$0 sm:$0xff] }
0x154d   :  { %v3768_v4 = vadd.f32 %v4643_v48, %v3767_v38 }
0x154e   :  { %v3787_v49 = vadd.f32 %v3773_v36, %v6125_v2 }
0x154f   :  { %v3786_v3 = vadd.f32 %v3768_v4, %v6120_v32  ;;  %v4664_v4 = vld [vmem:[%s6629_s13 + $0x90] sm:$0xff] }
0x1550   :  { %v3797_v39 = vsel %vm196_vm2, %v3787_v49, 0.0 }
0x1551   :  { %3798 = vadd.xlane.f32.xlu1 %v3797_v39  ;;  %v3794_v6 = vsel %vm196_vm2, %v3786_v3, 0.0 }
0x1552   :  { %3795 = vadd.xlane.f32.xlu0 %v3794_v6  ;;  %v5182_v42 = vpop.f32.mrb[52].mxu1 }
0x1553   :  { %v3777_v44 = vpop.f32.mrb[53].mxu1  ;;  %v3783_v46 = vadd.f32 %v5182_v42, %v4643_v48 }
0x1554   :  { %v3778_v8 = vadd.f32 %v4643_v48, %v3777_v44  ;;  %v4666_v44 = vld [vmem:[%s6629_s13 + $0xa0] sm:$0xff] }
0x1555   :  { %v3789_v53 = vadd.f32 %v3783_v46, %v6135_v45  ;;  %v4667_v46 = vld [vmem:[%s6629_s13 + $0xa8] sm:$0xff] }
0x1556   :  { %v3788_v47 = vadd.f32 %v3778_v8, %v6130_v43 }
0x1557   :  { %v3803_v2 = vsel %vm196_vm2, %v3789_v53, 0.0 }
0x1558   :  { %v3800_v50 = vsel %vm196_vm2, %v3788_v47, 0.0 }
0x1559   :  { %3801 = vadd.xlane.f32.xlu0 %v3800_v50  ;;  %v5369_v50 = vpack.c.bf16 %v4667_v46, %v4666_v44 }
0x155d   :  { %3804 = vadd.xlane.f32.xlu0 %v3803_v2  ;;  %v4668_v2 = vld [vmem:[%s6629_s13 + $0xb0] sm:$0xff] }
0x15de   :  { %v3799_v32 = vpop.xlane.xlu1 %3798 }
0x15df   :  { %v3807_v56 = vmul.f32 0.03125, %v3799_v32  ;;  %v3796_v40 = vpop.xlane.xlu0 %3795  ;;  %v4669_v32 = vld [vmem:[%s6629_s13 + $0xb8] sm:$0xff] }
0x15e0   :  { %v3806_v57 = vmul.f32 0.03125, %v3796_v40 }
0x15e1   :  { %v3811_v58 = vsub.f32 %v3787_v49, %v3807_v56  ;;  %v4665_v49 = vld [vmem:[%s6629_s13 + $0x98] sm:$0xff] }
0x15e2   :  { %v3810_v60 = vsub.f32 %v3786_v3, %v3806_v57  ;;  %v5365_v6 = vpack.c.bf16 %v4665_v49, %v4664_v4 }
0x15e3   :  { %v3815_v61 = vmul.f32 %v3811_v58, %v3811_v58 }
0x15e4   :  { %v3814_v63 = vmul.f32 %v3810_v60, %v3810_v60 }
0x15e5   :  { %v3821_v0 = vsel %vm196_vm2, %v3815_v61, 0.0  ;;  %v4671_v61 = vld [vmem:[%s6629_s13 + $0xc8] sm:$0xff] }
0x15e6   :  { %v3802_v55 = vpop.xlane.xlu0 %3801  ;;  %3822 = vadd.xlane.f32.xlu0 %v3821_v0  ;;  %v3818_v43 = vsel %vm196_vm2, %v3814_v63, 0.0 }
0x15e7   :  { %v3808_v52 = vmul.f32 0.03125, %v3802_v55  ;;  %3819 = vadd.xlane.f32.xlu1 %v3818_v43  ;;  %v4672_v55 = vld [vmem:[%s6629_s13 + $0xd0] sm:$0xff]  ;;  %v4673_v43 = vld [vmem:[%s6629_s13 + $0xd8] sm:$0xff] }
0x15e9   :  { %v3812_v45 = vsub.f32 %v3788_v47, %v3808_v52  ;;  %v5381_v52 = vpack.c.bf16 %v4673_v43, %v4672_v55  ;;  %v4172_v55 = vld [vmem:[%s6636_s15 + $0x10] sm:$0xff]  ;;  %v4173_v43 = vld [vmem:[%s6636_s15 + $0x18] sm:$0xff] }
0x15ea   :  { %v3805_v37 = vpop.xlane.xlu0 %3804 }
0x15eb   :  { %v3809_v51 = vmul.f32 0.03125, %v3805_v37  ;;  %v3816_v54 = vmul.f32 %v3812_v45, %v3812_v45  ;;  %v4675_v37 = vld [vmem:[%s6629_s13 + $0xe8] sm:$0xff] }
0x15ed   :  { %v6348_v1 = vsub.f32 %v3789_v53, %v3809_v51  ;;  %v3824_v5 = vsel %vm196_vm2, %v3816_v54, 0.0  ;;  %v4676_v54 = vld [vmem:[%s6629_s13 + $0xf0] sm:$0xff] }
0x15ee   :  { %3825 = vadd.xlane.f32.xlu1 %v3824_v5 }
0x15ef   :  { %v3817_v7 = vmul.f32 %v6348_v1, %v6348_v1 }
0x15f1   :  { %v3827_v9 = vsel %vm196_vm2, %v3817_v7, 0.0  ;;  %v4657_v7 = vld [vmem:[%s6632_s12 + $0x1] ss:$0 sm:$0xff] }
0x15f2   :  { %3828 = vadd.xlane.f32.xlu0 %v3827_v9 }
0x1673   :  { %v3823_v19 = vpop.xlane.xlu0 %3822 }
0x1674   :  { %v3831_v20 = vmul.f32 0.03125, %v3823_v19  ;;  %v3820_v21 = vpop.xlane.xlu1 %3819 }
0x1675   :  { %v3830_v22 = vmul.f32 0.03125, %v3820_v21  ;;  %v4679_v21 = vld [vmem:[%s6633_s14 + $0x1] ss:$0 sm:$0xff] }
0x1676   :  { %v3835_v23 = vadd.f32 1e-05, %v3831_v20 }
0x1677   :  { %v3834_v24 = vadd.f32 1e-05, %v3830_v22 }
0x1678   :  { %5527 = vrsqrt.f32 %v3835_v23 }
0x1679   :  { %5529 = vrsqrt.f32 %v3834_v24 }
0x167b   :  { %v3826_v25 = vpop.xlane.xlu1 %3825 }
0x167c   :  { %v3832_v26 = vmul.f32 0.03125, %v3826_v25 }
0x167e   :  { %v3836_v27 = vadd.f32 1e-05, %v3832_v26 }
0x167f   :  { %v3829_v28 = vpop.xlane.xlu0 %3828 }
0x1680   :  { %5531 = vrsqrt.f32 %v3836_v27  ;;  %v3833_v29 = vmul.f32 0.03125, %v3829_v28 }
0x1682   :  { %v5528_v30 = vpop.eup %5527  ;;  %v3837_v31 = vadd.f32 1e-05, %v3833_v29 }
0x1683   :  { %v5530_v62 = vpop.eup %5529  ;;  %v3843_v35 = vmul.f32 %v5528_v30, %v3811_v58  ;;  %v5373_v58 = vpack.c.bf16 %v4669_v32, %v4668_v2 }
0x1684   :  { %5533 = vrsqrt.f32 %v3837_v31  ;;  %v3842_v48 = vmul.f32 %v5530_v62, %v3810_v60  ;;  %v4670_v60 = vld [vmem:[%s6629_s13 + $0xc0] sm:$0xff] }
0x1685   :  { %v3853_v36 = vmul.f32 %v4650_v34, %v3843_v35  ;;  %v5377_v0 = vpack.c.bf16 %v4671_v61, %v4670_v60  ;;  %v4170_v61 = vld [vmem:[%s6636_s15] sm:$0xff] }
0x1686   :  { %v3852_v38 = vmul.f32 %v4650_v34, %v3842_v48 }
0x1687   :  { %v6386_v39 = vadd.f32 %v4651_v41, %v3853_v36 }
0x1688   :  { %v6384_v3 = vadd.f32 %v4651_v41, %v3852_v38 }
0x168a   :  { %v5532_v42 = vpop.eup %5531  ;;  %5191 = vmatprep.mubr.msk.f32.mxu0 %vm196_vm2, %v6384_v3 }
0x168b   :  { %5192 = vmatmul.mubr.msk.f32.vlgmr.msra.gmra.mrb[50].mxu0 %vm196_vm2, %v6386_v39  ;;  %v3844_v8 = vmul.f32 %v5532_v42, %v3812_v45  ;;  %v4674_v45 = vld [vmem:[%s6629_s13 + $0xe0] sm:$0xff] }
0x168c   :  { %5364 = vmatpush3.bf16.msra.mxu0 %v5361_v18  ;;  %v5385_v51 = vpack.c.bf16 %v4675_v37, %v4674_v45 }
0x168d   :  { %v3854_v47 = vmul.f32 %v4650_v34, %v3844_v8  ;;  %5366 = vmatprep.subr.bf16.mxu0 %v5365_v6 }
0x168e   :  { %v5534_v53 = vpop.eup %5533 }
0x168f   :  { %v6404_v56 = vadd.f32 %v4651_v41, %v3854_v47  ;;  %v3845_v40 = vmul.f32 %v5534_v53, %v6348_v1  ;;  %v4677_v1 = vld [vmem:[%s6629_s13 + $0xf8] sm:$0xff] }
0x1690   :  { %5368 = vmatpush3.bf16.msra.mxu0 %v5365_v6  ;;  %v5389_v5 = vpack.c.bf16 %v4677_v1, %v4676_v54 }
0x1691   :  { %5194 = vmatprep.mubr.msk.f32.mxu0 %vm196_vm2, %v6404_v56  ;;  %v3855_v57 = vmul.f32 %v4650_v34, %v3845_v40  ;;  %5370 = vmatprep.subr.bf16.mxu0 %v5369_v50 }
0x1693   :  { %v3865_v63 = vadd.f32 %v4651_v41, %v3855_v57 }
0x1694   :  { %5372 = vmatpush3.bf16.msra.mxu0 %v5369_v50 }
0x1695   :  { %5195 = vmatmul.mubr.msk.f32.gmra.mrb[52].mxu0 %vm196_vm2, %v3865_v63  ;;  %5374 = vmatprep.subr.bf16.mxu0 %v5373_v58 }
0x1698   :  { %5376 = vmatpush3.bf16.msra.mxu0 %v5373_v58 }
0x1699   :  { %5378 = vmatprep.subr.bf16.mxu0 %v5377_v0 }
0x169c   :  { %5380 = vmatpush3.bf16.msra.mxu0 %v5377_v0 }
0x169d   :  { %5382 = vmatprep.subr.bf16.mxu0 %v5381_v52 }
0x16a0   :  { %5384 = vmatpush3.bf16.msra.mxu0 %v5381_v52  ;;  %v5397_v52 = vpack.c.bf16 %v4173_v43, %v4172_v55 }
0x16a1   :  { %5386 = vmatprep.subr.bf16.mxu0 %v5385_v51 }
0x16a4   :  { %5388 = vmatpush3.bf16.msra.mxu0 %v5385_v51 }
0x16a5   :  { %5390 = vmatprep.subr.bf16.mxu0 %v5389_v5 }
0x16a8   :  { %5392 = vmatpush3.bf16.msra.mxu0 %v5389_v5 }
0x175e   :  { %v5193_v9 = vpop.f32.mrb[50].mxu0 }
0x175f   :  { %v3963_v10 = vadd.f32 %v5193_v9, %v4657_v7  ;;  %v3957_v11 = vpop.f32.mrb[51].mxu0 }
0x1760   :  { %v3958_v12 = vadd.f32 %v4657_v7, %v3957_v11 }
0x1761   :  { %v3977_v14 = vmax.f32 %v3963_v10, 0.0 }
0x1762   :  { %v3976_v13 = vmax.f32 %v3958_v12, 0.0 }
0x1764   :  { %5229 = vmatprep.mubr.f32.mxu0 %v3976_v13 }
0x1765   :  { %5230 = vmatmul.mubr.f32.vlgmr.msra.gmra.mrb[54].mxu0 %v3977_v14 }
0x1768   :  { %v5196_v15 = vpop.f32.mrb[52].mxu0 }
0x1769   :  { %v3973_v16 = vadd.f32 %v5196_v15, %v4657_v7  ;;  %v3967_v17 = vpop.f32.mrb[53].mxu0  ;;  %v4682_v15 = vld [vmem:[%s6634_s9 + $0x1] ss:$0 sm:$0xff] }
0x176a   :  { %v3968_v18 = vadd.f32 %v4657_v7, %v3967_v17 }
0x176b   :  { %v3979_v20 = vmax.f32 %v3973_v16, 0.0 }
0x176c   :  { %v3978_v19 = vmax.f32 %v3968_v18, 0.0 }
0x176e   :  { %5232 = vmatprep.mubr.f32.mxu0 %v3978_v19  ;;  %v4683_v19 = vld [vmem:[%s6635_s10 + $0x1] ss:$0 sm:$0xff] }
0x176f   :  { %5233 = vmatmul.mubr.f32.gmra.mrb[56].mxu0 %v3979_v20 }
0x1838   :  { %v5231_v22 = vpop.f32.mrb[54].mxu0 }
0x1839   :  { %v4077_v23 = vadd.f32 %v5231_v22, %v4679_v21  ;;  %v4071_v24 = vpop.f32.mrb[55].mxu0 }
0x183a   :  { %v4072_v25 = vadd.f32 %v4679_v21, %v4071_v24 }
0x183b   :  { %v4091_v26 = vadd.f32 %v4077_v23, %v6386_v39 }
0x183c   :  { %v4090_v27 = vadd.f32 %v4072_v25, %v6384_v3 }
0x183d   :  { %v4101_v28 = vsel %vm196_vm2, %v4091_v26, 0.0 }
0x183e   :  { %4102 = vadd.xlane.f32.xlu0 %v4101_v28  ;;  %v4098_v29 = vsel %vm196_vm2, %v4090_v27, 0.0 }
0x183f   :  { %4099 = vadd.xlane.f32.xlu1 %v4098_v29 }
0x1842   :  { %v5234_v30 = vpop.f32.mrb[56].mxu0 }
0x1843   :  { %v4087_v31 = vadd.f32 %v5234_v30, %v4679_v21  ;;  %v4081_v34 = vpop.f32.mrb[57].mxu0 }
0x1844   :  { %v4082_v62 = vadd.f32 %v4679_v21, %v4081_v34  ;;  %v4279_v34 = vld [vmem:[%s6637_s17 + $0x8] sm:$0xff] }
0x1845   :  { %v4093_v35 = vadd.f32 %v4087_v31, %v3865_v63  ;;  %v4171_v63 = vld [vmem:[%s6636_s15 + $0x8] sm:$0xff] }
0x1846   :  { %v4092_v48 = vadd.f32 %v4082_v62, %v6404_v56  ;;  %v5393_v0 = vpack.c.bf16 %v4171_v63, %v4170_v61  ;;  %v4281_v62 = vld [vmem:[%s6637_s17 + $0x18] sm:$0xff]  ;;  %v4387_v61 = vld [vmem:[%s6638_s19 + $0x8] sm:$0xff]  ;;  %v4404_v63 = vld [vmem:[%s6638_s19 + $0x90] sm:$0xff] }
0x1847   :  { %v4107_v41 = vsel %vm196_vm2, %v4093_v35, 0.0 }
0x1848   :  { %4108 = vadd.xlane.f32.xlu0 %v4107_v41  ;;  %v4104_v36 = vsel %vm196_vm2, %v4092_v48, 0.0  ;;  %5394 = vmatprep.subr.bf16.mxu1 %v5393_v0  ;;  %v4280_v41 = vld [vmem:[%s6637_s17 + $0x10] sm:$0xff] }
0x1849   :  { %4105 = vadd.xlane.f32.xlu1 %v4104_v36  ;;  %5396 = vmatpush3.bf16.msra.mxu1 %v5393_v0  ;;  %v4405_v0 = vld [vmem:[%s6638_s19 + $0x98] sm:$0xff] }
0x184a   :  { %5398 = vmatprep.subr.bf16.mxu1 %v5397_v52 }
0x184d   :  { %5400 = vmatpush3.bf16.msra.mxu1 %v5397_v52 }
0x18cb   :  { %v4103_v38 = vpop.xlane.xlu0 %4102 }
0x18cc   :  { %v4111_v4 = vmul.f32 0.03125, %v4103_v38  ;;  %v4100_v49 = vpop.xlane.xlu1 %4099  ;;  %v4285_v38 = vld [vmem:[%s6637_s17 + $0x38] sm:$0xff] }
0x18cd   :  { %v4110_v3 = vmul.f32 0.03125, %v4100_v49  ;;  %v4282_v49 = vld [vmem:[%s6637_s17 + $0x20] sm:$0xff] }
0x18ce   :  { %v4115_v39 = vsub.f32 %v4091_v26, %v4111_v4 }
0x18cf   :  { %v4114_v6 = vsub.f32 %v4090_v27, %v4110_v3  ;;  %v4284_v3 = vld [vmem:[%s6637_s17 + $0x30] sm:$0xff] }
0x18d0   :  { %v4119_v42 = vmul.f32 %v4115_v39, %v4115_v39 }
0x18d1   :  { %v4118_v44 = vmul.f32 %v4114_v6, %v4114_v6 }
0x18d2   :  { %v4125_v46 = vsel %vm196_vm2, %v4119_v42, 0.0  ;;  %v4403_v42 = vld [vmem:[%s6638_s19 + $0x88] sm:$0xff] }
0x18d3   :  { %4126 = vadd.xlane.f32.xlu0 %v4125_v46  ;;  %v4122_v8 = vsel %vm196_vm2, %v4118_v44, 0.0  ;;  %v4684_v46 = vld [vmem:[%s6639_s16] ss:$0 sm:$0xff] }
0x18d4   :  { %4123 = vadd.xlane.f32.xlu1 %v4122_v8 }
0x18d5   :  { %v4109_v47 = vpop.xlane.xlu0 %4108 }
0x18d6   :  { %v4113_v50 = vmul.f32 0.03125, %v4109_v47  ;;  %v4106_v53 = vpop.xlane.xlu1 %4105 }
0x18d7   :  { %v4112_v2 = vmul.f32 0.03125, %v4106_v53 }
0x18d8   :  { %v4117_v32 = vsub.f32 %v4093_v35, %v4113_v50  ;;  %v5401_v35 = vpack.c.bf16 %v4281_v62, %v4279_v34  ;;  %v4415_v34 = vld [vmem:[%s6638_s19 + $0xe8] sm:$0xff] }
0x18d9   :  { %v4116_v56 = vsub.f32 %v4092_v48, %v4112_v2  ;;  %v4278_v48 = vld [vmem:[%s6637_s17] sm:$0xff] }
0x18da   :  { %v4121_v40 = vmul.f32 %v4117_v32, %v4117_v32  ;;  %v5403_v36 = vpack.c.bf16 %v4280_v41, %v4278_v48  ;;  %5402 = vmatprep.subr.bf16.mxu1 %v5401_v35  ;;  %v4398_v48 = vld [vmem:[%s6638_s19 + $0x60] sm:$0xff]  ;;  %v4399_v41 = vld [vmem:[%s6638_s19 + $0x68] sm:$0xff] }
0x18db   :  { %v4120_v57 = vmul.f32 %v4116_v56, %v4116_v56 }
0x18dc   :  { %v4131_v58 = vsel %vm196_vm2, %v4121_v40, 0.0 }
0x18dd   :  { %4132 = vadd.xlane.f32.xlu0 %v4131_v58  ;;  %v4128_v60 = vsel %vm196_vm2, %v4120_v57, 0.0 }
0x18de   :  { %4129 = vadd.xlane.f32.xlu1 %v4128_v60  ;;  %v4386_v60 = vld [vmem:[%s6638_s19] sm:$0xff] }
0x18df   :  { %v5411_v52 = vpack.c.bf16 %v4387_v61, %v4386_v60 }
0x1960   :  { %v4127_v45 = vpop.xlane.xlu0 %4126 }
0x1961   :  { %v4135_v37 = vmul.f32 0.03125, %v4127_v45  ;;  %v4124_v51 = vpop.xlane.xlu1 %4123 }
0x1962   :  { %v4134_v54 = vmul.f32 0.03125, %v4124_v51  ;;  %v4388_v51 = vld [vmem:[%s6638_s19 + $0x10] sm:$0xff] }
0x1963   :  { %v4139_v1 = vadd.f32 1e-05, %v4135_v37  ;;  %v5413_v37 = vpack.c.bf16 %v4405_v0, %v4404_v63 }
0x1964   :  { %v4138_v5 = vadd.f32 1e-05, %v4134_v54  ;;  %v4389_v54 = vld [vmem:[%s6638_s19 + $0x18] sm:$0xff] }
0x1965   :  { %5535 = vrsqrt.f32 %v4139_v1 }
0x1966   :  { %5537 = vrsqrt.f32 %v4138_v5  ;;  %v4406_v5 = vld [vmem:[%s6638_s19 + $0xa0] sm:$0xff] }
0x196a   :  { %v4133_v7 = vpop.xlane.xlu0 %4132 }
0x196b   :  { %v4137_v9 = vmul.f32 0.03125, %v4133_v7  ;;  %v4130_v10 = vpop.xlane.xlu1 %4129  ;;  %v4407_v7 = vld [vmem:[%s6638_s19 + $0xa8] sm:$0xff] }
0x196c   :  { %v4136_v11 = vmul.f32 0.03125, %v4130_v10  ;;  %v5417_v10 = vpack.c.bf16 %v4407_v7, %v4406_v5 }
0x196d   :  { %v4141_v12 = vadd.f32 1e-05, %v4137_v9  ;;  %v5415_v9 = vpack.c.bf16 %v4389_v54, %v4388_v51  ;;  %v4692_v51 = vld [vmem:[%s6643_s22] ss:$0 sm:$0xff] }
0x196e   :  { %v4140_v13 = vadd.f32 1e-05, %v4136_v11  ;;  %v4390_v11 = vld [vmem:[%s6638_s19 + $0x20] sm:$0xff] }
0x196f   :  { %v5536_v14 = vpop.eup %5535  ;;  %5539 = vrsqrt.f32 %v4141_v12  ;;  %v4391_v12 = vld [vmem:[%s6638_s19 + $0x28] sm:$0xff] }
0x1970   :  { %v5538_v16 = vpop.eup %5537  ;;  %v4147_v17 = vmul.f32 %v5536_v14, %v4115_v39  ;;  %5541 = vrsqrt.f32 %v4140_v13  ;;  %v5407_v39 = vpack.c.bf16 %v4284_v3, %v4282_v49  ;;  %v4408_v13 = vld [vmem:[%s6638_s19 + $0xb0] sm:$0xff]  ;;  %v4409_v14 = vld [vmem:[%s6638_s19 + $0xb8] sm:$0xff] }
0x1971   :  { %v4146_v18 = vmul.f32 %v5538_v16, %v4114_v6  ;;  %v4402_v6 = vld [vmem:[%s6638_s19 + $0x80] sm:$0xff]  ;;  %v5421_v16 = vpack.c.bf16 %v4409_v14, %v4408_v13  ;;  %v4400_v49 = vld [vmem:[%s6638_s19 + $0x70] sm:$0xff]  ;;  %v4401_v3 = vld [vmem:[%s6638_s19 + $0x78] sm:$0xff] }
0x1972   :  { %v4157_v20 = vmul.f32 %v4682_v15, %v4147_v17  ;;  %v5409_v44 = vpack.c.bf16 %v4403_v42, %v4402_v6  ;;  %v4392_v17 = vld [vmem:[%s6638_s19 + $0x30] sm:$0xff]  ;;  %v4289_v6 = vshrl.u32 %v294_v59, 7  ;;  %v4690_v59 = vld [vmem:[%s6641_s20] ss:$0 sm:$0xff] }
0x1973   :  { %v4156_v21 = vmul.f32 %v4682_v15, %v4146_v18  ;;  %v4393_v18 = vld [vmem:[%s6638_s19 + $0x38] sm:$0xff] }
0x1974   :  { %v4167_v23 = vadd.f32 %v4683_v19, %v4157_v20  ;;  %v4411_v20 = vld [vmem:[%s6638_s19 + $0xc8] sm:$0xff]  ;;  %v4290_v42 = vsub.s32 0, %v4289_v6 }
0x1975   :  { %v4166_v22 = vadd.f32 %v4683_v19, %v4156_v21  ;;  %v5423_v21 = vpack.c.bf16 %v4393_v18, %v4392_v17 }
0x1977   :  { %5243 = vmatprep.mubr.msk.f32.mxu1 %vm196_vm2, %v4166_v22 }
0x1978   :  { %5244 = vmatmul.mubr.msk.f32.vlgmr.msra.gmra.mrb[54].mxu1 %vm196_vm2, %v4167_v23  ;;  %v4394_v23 = vld [vmem:[%s6638_s19 + $0x40] sm:$0xff] }
0x1979   :  { %v5540_v24 = vpop.eup %5539  ;;  %5404 = vmatpush1.bf16.msra.mxu1 %v5403_v36  ;;  %v5435_v36 = vpack.c.bf16 %v4399_v41, %v4398_v48 }
0x197a   :  { %v5542_v25 = vpop.eup %5541  ;;  %v4149_v26 = vmul.f32 %v5540_v24, %v4117_v32  ;;  %v4395_v24 = vld [vmem:[%s6638_s19 + $0x48] sm:$0xff] }
0x197b   :  { %v4148_v27 = vmul.f32 %v5542_v25, %v4116_v56  ;;  %v4412_v25 = vld [vmem:[%s6638_s19 + $0xd0] sm:$0xff] }
0x197c   :  { %v4159_v28 = vmul.f32 %v4682_v15, %v4149_v26  ;;  %v4413_v26 = vld [vmem:[%s6638_s19 + $0xd8] sm:$0xff] }
0x197d   :  { %v4158_v29 = vmul.f32 %v4682_v15, %v4148_v27  ;;  %v5419_v15 = vpack.c.bf16 %v4391_v12, %v4390_v11  ;;  %v5427_v27 = vpack.c.bf16 %v4395_v24, %v4394_v23 }
0x197e   :  { %v4169_v31 = vadd.f32 %v4683_v19, %v4159_v28  ;;  %v5429_v28 = vpack.c.bf16 %v4413_v26, %v4412_v25 }
0x197f   :  { %v4168_v30 = vadd.f32 %v4683_v19, %v4158_v29  ;;  %v4410_v19 = vld [vmem:[%s6638_s19 + $0xc0] sm:$0xff]  ;;  %v4396_v29 = vld [vmem:[%s6638_s19 + $0x50] sm:$0xff] }
0x1980   :  { %v5425_v22 = vpack.c.bf16 %v4411_v20, %v4410_v19 }
0x1981   :  { %5246 = vmatprep.mubr.msk.f32.mxu1 %vm196_vm2, %v4168_v30  ;;  %v4397_v30 = vld [vmem:[%s6638_s19 + $0x58] sm:$0xff] }
0x1982   :  { %5247 = vmatmul.mubr.msk.f32.gmra.mrb[56].mxu1 %vm196_vm2, %v4169_v31  ;;  %v4414_v31 = vld [vmem:[%s6638_s19 + $0xe0] sm:$0xff]  ;;  %v5431_v62 = vpack.c.bf16 %v4397_v30, %v4396_v29 }
0x1983   :  { %4377 = vmatprep.mubr.f32.mxu1 %v5547_v33  ;;  %v4283_v33 = vld [vmem:[%s6637_s17 + $0x28] sm:$0xff]  ;;  %v5433_v35 = vpack.c.bf16 %v4415_v34, %v4414_v31 }
0x1984   :  { %v5405_v4 = vpack.c.bf16 %v4285_v38, %v4283_v33  ;;  %v4416_v33 = vld [vmem:[%s6638_s19 + $0xf0] sm:$0xff]  ;;  %v4417_v38 = vld [vmem:[%s6638_s19 + $0xf8] sm:$0xff] }
0x1986   :  { %5406 = vmatprep.subr.bf16.mxu1 %v5405_v4  ;;  %v5437_v4 = vpack.c.bf16 %v4417_v38, %v4416_v33 }
0x1987   :  { %5408 = vmatpush1.bf16.msra.mxu1 %v5407_v39  ;;  %v5439_v39 = vpack.c.bf16 %v4401_v3, %v4400_v49 }
0x1988   :  { %5410 = vmatprep.subr.bf16.mxu1 %v5409_v44  ;;  %v4286_v44 = vld [vmem:[%s6640_s18] sm:$0x3] }
0x1a4b   :  { %v5245_v8 = vpop.f32.mrb[54].mxu1 }
0x1a4c   :  { %v4265_v47 = vadd.f32 %v5245_v8, %v4684_v46  ;;  %v4259_v50 = vpop.f32.mrb[55].mxu1  ;;  %v4291_v8 = vrot.slane %v4286_v44, %v4290_v42 }
0x1a4d   :  { %v4260_v53 = vadd.f32 %v4684_v46, %v4259_v50 }
0x1a4e   :  { %v4302_v2 = vrot.slane %v4265_v47, 7 }
0x1a50   :  { %v4304_v32 = vsel %vm4303_vm7, %v4302_v2, %v4260_v53 }
0x1a55   :  { %v5248_v56 = vpop.f32.mrb[56].mxu1 }
0x1a56   :  { %v4275_v40 = vadd.f32 %v5248_v56, %v4684_v46  ;;  %v4269_v57 = vpop.f32.mrb[57].mxu1 }
0x1a57   :  { %v4270_v58 = vadd.f32 %v4684_v46, %v4269_v57  ;;  %v4294_v46 = vsub.s32 1, %v4289_v6 }
0x1a58   :  { %v4308_v43 = vrot.slane %v4275_v40, 5 }
0x1a59   :  { %v4305_v55 = vrot.slane %v4270_v58, 6  ;;  %v4295_v47 = vrot.slane %v4286_v44, %v4294_v46 }
0x1a5b   :  { %v4307_v45 = vsel %vm4306_vm8, %v4305_v55, %v4304_v32 }
0x1a5c   :  { %v4310_v1 = vsel %vm4309_vm9, %v4308_v43, %v4307_v45 }
0x1a5d   :  { %4689 = vmatmul.mubr.msk.f32.vlgmr.msra.gmra.mrb[58].mxu1 %vm196_vm2, %v4310_v1 }
0x1a5e   :  { %5412 = vmatpush3.bf16.msra.mxu1 %v5411_v52 }
0x1a5f   :  { %5414 = vmatprep.subr.bf16.mxu1 %v5413_v37  ;;  %v4691_v37 = vld [vmem:[%s6642_s21] ss:$0 sm:$0xff] }
0x1a62   :  { %5416 = vmatpush3.bf16.msra.mxu1 %v5415_v9 }
0x1a63   :  { %5418 = vmatprep.subr.bf16.mxu1 %v5417_v10 }
0x1a66   :  { %5420 = vmatpush3.bf16.msra.mxu1 %v5419_v15 }
0x1a67   :  { %5422 = vmatprep.subr.bf16.mxu1 %v5421_v16 }
0x1a6a   :  { %5424 = vmatpush3.bf16.msra.mxu1 %v5423_v21 }
0x1a6b   :  { %5426 = vmatprep.subr.bf16.mxu1 %v5425_v22 }
0x1a6e   :  { %5428 = vmatpush3.bf16.msra.mxu1 %v5427_v27 }
0x1a6f   :  { %5430 = vmatprep.subr.bf16.mxu1 %v5429_v28 }
0x1a72   :  { %5432 = vmatpush3.bf16.msra.mxu1 %v5431_v62 }
0x1a73   :  { %5434 = vmatprep.subr.bf16.mxu1 %v5433_v35 }
0x1a76   :  { %5436 = vmatpush3.bf16.msra.mxu1 %v5435_v36 }
0x1a77   :  { %5438 = vmatprep.subr.bf16.mxu1 %v5437_v4 }
0x1a7a   :  { %5440 = vmatpush3.bf16.msra.mxu1 %v5439_v39 }
0x1b30   :  { %v4379_v50 = vpop.f32.mrb[58].mxu1 }
0x1b31   :  { %v4380_v53 = vadd.f32 %v4379_v50, %v4291_v8  ;;  %v4381_v2 = vpop.f32.mrb[59].mxu1 }
0x1b32   :  { %v4382_v32 = vadd.f32 %v4381_v2, %v4295_v47 }
0x1b33   :  { %v4384_v40 = vmax.f32 %v4380_v53, 0.0 }
0x1b34   :  { %v4385_v56 = vmax.f32 %v4382_v32, 0.0 }
0x1b36   :  { %4489 = vmatprep.mubr.f32.mxu1 %v4385_v56 }
0x1b37   :  { %4490 = vmatmul.mubr.f32.vlgmr.msra.gmra.mrb[60].mxu1 %v4384_v40 }
0x1c0a   :  { %v4894_v57 = vpop.f32.mrb[60].mxu1 }
0x1c0b   :  { %v4895_v58 = vpop.f32.mrb[61].mxu1 }
0x1c0c   :  { %v4896_v60 = vadd.f32 %v4895_v58, %v4894_v57 }
0x1c0e   :  { %v4492_v61 = vadd.f32 %v4896_v60, %v4690_v59 }
0x1c10   :  { %4498 = vrot.lane.b32.xlu1 %v4492_v61, %s6673_s5 }
0x1c82   :  { %v4499_v63 = vpop.permute.xlu1 %4498 }
0x1c83   :  { %v4502_v0 = vsel %vm4501_vm10, %v4499_v63, 0.0 }
0x1c84   :  { %4503 = vadd.xlane.f32.xlu0 %v4502_v0 }
0x1d11   :  { %v4504_v55 = vpop.xlane.xlu0 %4503 }
0x1d12   :  { %v4505_v43 = vmul.f32 0.03125, %v4504_v55 }
0x1d14   :  { %v4506_v52 = vsub.f32 %v4492_v61, %v4505_v43 }
0x1d16   :  { %v4507_v45 = vmul.f32 %v4506_v52, %v4506_v52 }
0x1d18   :  { %4509 = vrot.lane.b32.xlu0 %v4507_v45, %s6673_s5 }
0x1d1c   :  { %4524 = vrot.lane.b32.xlu0 %v4691_v37, %s6672_s2 }
0x1d20   :  { %4533 = vrot.lane.b32.xlu0 %v4692_v51, %s6672_s2 }
0x1d8a   :  { %v4510_v54 = vpop.permute.xlu0 %4509 }
0x1d8b   :  { %v4512_v1 = vsel %vm4501_vm10, %v4510_v54, 0.0 }
0x1d8c   :  { %4513 = vadd.xlane.f32.xlu1 %v4512_v1 }
0x1d8e   :  { %v4525_v10 = vpop.permute.xlu0 %4524 }
0x1d92   :  { %v4534_v13 = vpop.permute.xlu0 %4533 }
0x1e19   :  { %v4514_v5 = vpop.xlane.xlu1 %4513 }
0x1e1a   :  { %v4515_v7 = vmul.f32 0.03125, %v4514_v5 }
0x1e1c   :  { %v4516_v9 = vadd.f32 1e-05, %v4515_v7 }
0x1e1e   :  { %5543 = vrsqrt.f32 %v4516_v9 }
0x1e28   :  { %v5544_v11 = vpop.eup %5543 }
0x1e29   :  { %v4518_v12 = vmul.f32 %v5544_v11, %v4506_v52 }
0x1e2b   :  { %v4527_v14 = vmul.f32 %v4525_v10, %v4518_v12 }
0x1e2d   :  { %v4536_v15 = vadd.f32 %v4534_v13, %v4527_v14 }
0x1e2f   :  { %5545 = vtanh.f32 %v4536_v15 }
0x1e39   :  { %v5546_v16 = vpop.eup %5545 }
0x1e3a   :  { %v4538_v17 = vsel %vm196_vm2, %v4492_v61, %v5546_v16 }
0x1e3b   :  { %4540 = vst.msk [vmem:[%s6644_s23] sm:$0xf] %vm4539_vm11, %v4538_v17 }

</bundles_post_ra>
